<compile_context>
chip_gen: v6e
topology: v6e:2x2x1
jax: 0.10.0
libtpu: 0.0.40
codegen_flags: <defaults>
</compile_context>

<pallas_src>
import functools

import jax
import jax.numpy as jnp
from jax import lax
from jax.experimental import pallas as pl
from jax.experimental.pallas import tpu as pltpu

NEG_INF = jnp.float32(-1e9)


# ----------------------------------------------------------------------------
# In-kernel building blocks (operate on VMEM-resident values).
# ----------------------------------------------------------------------------

def _branch(g_ref, x_ref, p_ref, c_ref, *, heads, out_ch):
    """One GCN+GAT branch. Returns the (N, out_ch) CNN feature map.

    g_ref : (3, N, N) VMEM   [adj_norm, edge_weight, additive softmax mask]
    x_ref : (N, F)    VMEM   node features
    p_ref : (6F + H*F + 8, F) VMEM   row-packed parameter slab
    c_ref : (H,)      SMEM   per-head scalar edge-attention coefficients
    """
    adj = g_ref[0]
    edge = g_ref[1]
    mask_bias = g_ref[2]
    x = x_ref[...]
    n, f = x.shape
    hf = heads * f

    # --- static slab unpacking (8-sublane-aligned rows, lane-0 columns) -----
    gcn1_w = p_ref[0:f, :]
    gcn2_w = p_ref[f:2 * f, :]
    w_stack = p_ref[2 * f:2 * f + hf, :].reshape(heads, f, f)    # (H, F, F)
    u = p_ref[2 * f + hf:3 * f + hf, 0:heads]                    # (F, H) dst coeffs
    v = p_ref[3 * f + hf:4 * f + hf, 0:heads]                    # (F, H) src coeffs
    cnn_w1t = p_ref[4 * f + hf:5 * f + hf, 0:out_ch]             # (F, C)
    cnn_w2t = p_ref[5 * f + hf:6 * f + hf, 0:out_ch]             # (F, C)
    b0 = 6 * f + hf
    gcn1_b = p_ref[b0 + 0:b0 + 1, :]                             # (1, F)
    gcn2_b = p_ref[b0 + 1:b0 + 2, :]
    gat_b = p_ref[b0 + 2:b0 + 3, :]
    cnn_b = p_ref[b0 + 3:b0 + 4, 0:out_ch]                       # (1, C)

    def gcn(feat, w, b):
        # GCNConv: D^{-1/2}(A_w + I)D^{-1/2} (X W) + b  (adj pre-normalized).
        fw = jnp.dot(feat, w, preferred_element_type=jnp.float32)
        return jnp.dot(adj, fw, preferred_element_type=jnp.float32) + b

    def gat(feat):
        # Dense GATConv(heads=H, concat=False, edge_dim=1); heads batched.
        # Per-head value projection as one batched matmul: (H, N, F).
        xh = lax.dot_general(
            jnp.broadcast_to(feat[None], (heads, n, f)), w_stack,
            (((2,), (1,)), ((0,), (0,))), preferred_element_type=jnp.float32)
        # Attention source/dest scalars (dst in (N,H), src directly as (H,N)
        # via dot_general contracting dims -> no explicit transpose).
        a_dst = jnp.dot(feat, u, preferred_element_type=jnp.float32)      # (N, H)
        a_src = lax.dot_general(v, feat, (((0,), (1,)), ((), ())),
                                preferred_element_type=jnp.float32)       # (H, N)
        # Head-stacked logits: (H, N, N); c[h] are SMEM scalars (VPU broadcast).
        logits = jnp.stack(
            [a_dst[:, h:h + 1] + a_src[h:h + 1, :] + edge * c_ref[h]
             for h in range(heads)], axis=0)
        logits = jnp.maximum(logits, 0.2 * logits)          # LeakyReLU(0.2)
        logits = logits + mask_bias[None]                   # softmax over edges only
        m = jnp.max(logits, axis=-1, keepdims=True)
        p = jnp.exp(logits - m)
        denom = jnp.sum(p, axis=-1, keepdims=True)          # >= 1 (self loop present)
        alpha = p * pl.reciprocal(denom, approx=True)       # (H, N, N)
        # Batched alpha @ value: (H, N, N) @ (H, N, F) -> (H, N, F); mean heads.
        agg = lax.dot_general(alpha, xh, (((2,), (1,)), ((0,), (0,))),
                              preferred_element_type=jnp.float32)
        return jnp.sum(agg, axis=0) * jnp.float32(1.0 / heads) + gat_b

    # Fused relu((gcn + gat) / 2) per layer; GAT params shared across layers.
    l1 = jnp.maximum((gcn(x, gcn1_w, gcn1_b) + gat(x)) * 0.5, 0.0)
    l2 = jnp.maximum((gcn(l1, gcn2_w, gcn2_b) + gat(l1)) * 0.5, 0.0)
    # Conv2d(gcn_layers=2, C, kernel=(F,1))  ==  l1 @ W1t + l2 @ W2t + b
    return (jnp.dot(l1, cnn_w1t, preferred_element_type=jnp.float32)
            + jnp.dot(l2, cnn_w2t, preferred_element_type=jnp.float32) + cnn_b)


def _fused_forward_kernel(g_dis_ref, x_dis_ref, p_dis_ref, c_dis_ref,
                          g_drug_ref, x_drug_ref, p_drug_ref, c_drug_ref,
                          out_ref, *, heads, out_ch):
    dis_fea = _branch(g_dis_ref, x_dis_ref, p_dis_ref, c_dis_ref,
                      heads=heads, out_ch=out_ch)
    drug_fea = _branch(g_drug_ref, x_drug_ref, p_drug_ref, c_drug_ref,
                       heads=heads, out_ch=out_ch)
    # scores = drug_fea @ dis_fea.T via contracting dims (no explicit .T).
    scores = lax.dot_general(drug_fea, dis_fea, (((1,), (1,)), ((), ())),
                             preferred_element_type=jnp.float32)
    n_dis, _ = dis_fea.shape
    n_drug = drug_fea.shape[0]
    # One packed output slab: [ scores | dis_fea | drug_fea ].
    out_ref[...] = jnp.zeros_like(out_ref)
    out_ref[0:n_drug, 0:n_dis] = scores
    out_ref[0:n_dis, n_dis:n_dis + out_ch] = dis_fea
    out_ref[0:n_drug, n_dis + out_ch:n_dis + 2 * out_ch] = drug_fea


# ----------------------------------------------------------------------------
# Wrapper
# ----------------------------------------------------------------------------

def gcn_dis_forward(g_dis, x_dis, p_dis, c_dis, g_drug, x_drug, p_drug, c_drug,
                    *, heads, out_channels):
    n_dis = x_dis.shape[0]
    n_drug = x_drug.shape[0]
    n_max = max(n_dis, n_drug)
    out_w = n_dis + 2 * out_channels

    vmem = lambda: pl.BlockSpec(memory_space=pltpu.MemorySpace.VMEM)
    smem = lambda: pl.BlockSpec(memory_space=pltpu.MemorySpace.SMEM)

    out = pl.pallas_call(
        functools.partial(_fused_forward_kernel, heads=heads, out_ch=out_channels),
        out_shape=jax.ShapeDtypeStruct((n_max, out_w), jnp.float32),
        in_specs=[vmem(), vmem(), vmem(), smem(),
                  vmem(), vmem(), vmem(), smem()],
        out_specs=vmem(),
    )(g_dis, x_dis, p_dis, c_dis, g_drug, x_drug, p_drug, c_drug)

    scores = out[:n_drug, :n_dis]
    dis_fea = out[:n_dis, n_dis:n_dis + out_channels]
    drug_fea = out[:n_drug, n_dis + out_channels:n_dis + 2 * out_channels]
    return scores, dis_fea, drug_fea


# ----------------------------------------------------------------------------
# Deterministic synthetic graph / parameter construction (plain JAX, init-time).
# ----------------------------------------------------------------------------

def build_graph(key, n):
    """Stacked (3, N, N) dense graph tensors from a synthetic similarity matrix."""
    sim = jax.random.uniform(key, (n, n), dtype=jnp.float32)
    sim = (sim + sim.T) * 0.5
    eye = jnp.eye(n, dtype=jnp.float32)
    has_edge = (sim > 0.5) & (eye < 0.5)                  # has_edge[src, dst]
    w = jnp.where(has_edge, sim, 0.0).T                   # A[dst, src] = edge weight
    mask = has_edge.T.astype(jnp.float32)

    # GCNConv: self loops (weight 1) + symmetric degree normalization.
    a = w + eye
    deg = jnp.sum(a, axis=1)
    dinv = 1.0 / jnp.sqrt(jnp.maximum(deg, 1e-12))
    adj_norm = a * dinv[:, None] * dinv[None, :]

    # GATConv: self loops with mean edge weight (PyG fill_value='mean').
    n_edges = jnp.maximum(jnp.sum(mask), 1.0)
    mean_w = jnp.sum(w) / n_edges
    edge_dense = w + mean_w * eye
    gat_mask = mask + eye
    mask_bias = jnp.where(gat_mask > 0, 0.0, NEG_INF)     # additive softmax mask
    return jnp.stack([adj_norm, edge_dense, mask_bias], axis=0)


def init_gcn(key, f):
    k0, k1 = jax.random.split(key)
    scale = 1.0 / jnp.sqrt(jnp.float32(f))
    return dict(w=jax.random.normal(k0, (f, f), jnp.float32) * scale,
                b=jax.random.normal(k1, (f,), jnp.float32) * 0.01)


def init_gat(key, f, heads):
    k = jax.random.split(key, 6)
    scale = 1.0 / jnp.sqrt(jnp.float32(f))
    w = jax.random.normal(k[0], (heads, f, f), jnp.float32) * scale   # lin, per head
    att_src = jax.random.normal(k[1], (heads, f), jnp.float32) * scale
    att_dst = jax.random.normal(k[2], (heads, f), jnp.float32) * scale
    att_edge = jax.random.normal(k[3], (heads, f), jnp.float32) * scale
    w_edge = jax.random.normal(k[4], (heads, f), jnp.float32)         # lin_edge: 1 -> H*F
    bias = jax.random.normal(k[5], (f,), jnp.float32) * 0.01
    # Parameter-only precomputation (hoisted out of the kernel):
    u = jnp.einsum('hfg,hg->fh', w, att_dst)        # alpha_dst coeffs (F, H)
    v = jnp.einsum('hfg,hg->fh', w, att_src)        # alpha_src coeffs (F, H)
    c = jnp.sum(w_edge * att_edge, axis=-1)         # per-head scalar edge coeff (H,)
    return dict(w=w, u=u, v=v, c=c, bias=bias)


def init_cnn(key, f, gcn_layers, out_channels):
    k0, k1 = jax.random.split(key)
    scale = 1.0 / jnp.sqrt(jnp.float32(gcn_layers * f))
    w = jax.random.normal(k0, (out_channels, gcn_layers * f), jnp.float32) * scale
    b = jax.random.normal(k1, (out_channels,), jnp.float32) * 0.01
    # Conv2d(gcn_layers, C, kernel=(F,1)) split per input channel: (F, C) each.
    return dict(w1t=w[:, :f].T, w2t=w[:, f:].T, b=b)


def pack_branch_params(gcn1, gcn2, gat, cnn, *, f, heads, out_channels):
    """Row-pack all branch parameters into one (6F + H*F + 8, F) f32 slab."""
    assert f % 8 == 0, "feature dim must be a multiple of 8 sublanes"
    hf = heads * f
    slab = jnp.zeros((6 * f + hf + 8, f), jnp.float32)

    def put(s, r, arr):
        arr = jnp.asarray(arr, jnp.float32)
        if arr.ndim == 1:
            arr = arr[None, :]
        return s.at[r:r + arr.shape[0], 0:arr.shape[1]].set(arr)

    slab = put(slab, 0, gcn1["w"])
    slab = put(slab, f, gcn2["w"])
    slab = put(slab, 2 * f, gat["w"].reshape(hf, f))
    slab = put(slab, 2 * f + hf, gat["u"])
    slab = put(slab, 3 * f + hf, gat["v"])
    slab = put(slab, 4 * f + hf, cnn["w1t"])
    slab = put(slab, 5 * f + hf, cnn["w2t"])
    b0 = 6 * f + hf
    slab = put(slab, b0 + 0, gcn1["b"])
    slab = put(slab, b0 + 1, gcn2["b"])
    slab = put(slab, b0 + 2, gat["bias"])
    slab = put(slab, b0 + 3, cnn["b"])
    return slab, gat["c"].astype(jnp.float32)


# ----------------------------------------------------------------------------
# main
# ----------------------------------------------------------------------------

if __name__ == "__main__":
    # args: disease_number=16, drug_number=12, fdis=32, fdrug=16,
    #       gcn_layers=2, out_channels=8, heads=4
    disease_number, drug_number = 16, 12
    fdis, fdrug = 32, 16
    gcn_layers, out_channels, heads = 2, 8, 4

    root = jax.random.PRNGKey(0)
    keys = jax.random.split(root, 12)

    # TODO(synk): PyTorch uses torch.manual_seed(1) + torch.randn inside forward;
    # reproduced deterministically with the JAX PRNG instead of torch's RNG stream.
    x_dis = jax.random.normal(keys[0], (disease_number, fdis), jnp.float32)
    x_drug = jax.random.normal(keys[1], (drug_number, fdrug), jnp.float32)

    g_dis = build_graph(keys[2], disease_number)
    g_drug = build_graph(keys[3], drug_number)

    p_dis, c_dis = pack_branch_params(
        init_gcn(keys[4], fdis), init_gcn(keys[5], fdis),
        init_gat(keys[6], fdis, heads),
        init_cnn(keys[7], fdis, gcn_layers, out_channels),
        f=fdis, heads=heads, out_channels=out_channels)
    p_drug, c_drug = pack_branch_params(
        init_gcn(keys[8], fdrug), init_gcn(keys[9], fdrug),
        init_gat(keys[10], fdrug, heads),
        init_cnn(keys[11], fdrug, gcn_layers, out_channels),
        f=fdrug, heads=heads, out_channels=out_channels)

    fwd = jax.jit(functools.partial(gcn_dis_forward, heads=heads,
                                    out_channels=out_channels))
    scores, dis_fea, drug_fea = fwd(g_dis, x_dis, p_dis, c_dis,
                                    g_drug, x_drug, p_drug, c_drug)
    jax.block_until_ready((scores, dis_fea, drug_fea))

    assert scores.shape == (drug_number, disease_number)
    assert dis_fea.shape == (disease_number, out_channels)
    assert drug_fea.shape == (drug_number, out_channels)
    assert bool(jnp.all(jnp.isfinite(scores)))
    assert bool(jnp.all(jnp.isfinite(dis_fea)))
    assert bool(jnp.all(jnp.isfinite(drug_fea)))

    print("KERNEL_OK")
</pallas_src>

<mosaic_0001>
module attributes {stable_mosaic.version = 11 : i64} {
  func.func @_fused_forward_kernel(%arg0: memref<3x16x16xf32, #tpu.memory_space<vmem>>, %arg1: memref<16x32xf32, #tpu.memory_space<vmem>>, %arg2: memref<328x32xf32, #tpu.memory_space<vmem>>, %arg3: memref<4xf32, #tpu.memory_space<smem>>, %arg4: memref<3x12x12xf32, #tpu.memory_space<vmem>>, %arg5: memref<12x16xf32, #tpu.memory_space<vmem>>, %arg6: memref<168x16xf32, #tpu.memory_space<vmem>>, %arg7: memref<4xf32, #tpu.memory_space<smem>>, %arg8: memref<16x32xf32, #tpu.memory_space<vmem>>) attributes {dimension_semantics = [], scalar_prefetch = 0 : i64, scratch_operands = 0 : i64, tpu.core_type = #tpu.core_type<tc>} {
    %c0 = arith.constant 0 : index
    %c0_0 = arith.constant 0 : index
    %c0_1 = arith.constant 0 : index
    %0 = vector.load %arg0[%c0, %c0_0, %c0_1] : memref<3x16x16xf32, #tpu.memory_space<vmem>>, vector<1x16x16xf32>
    %1 = vector.shape_cast %0 : vector<1x16x16xf32> to vector<16x16xf32>
    %c1 = arith.constant 1 : index
    %c0_2 = arith.constant 0 : index
    %c0_3 = arith.constant 0 : index
    %2 = vector.load %arg0[%c1, %c0_2, %c0_3] : memref<3x16x16xf32, #tpu.memory_space<vmem>>, vector<1x16x16xf32>
    %3 = vector.shape_cast %2 : vector<1x16x16xf32> to vector<16x16xf32>
    %c2 = arith.constant 2 : index
    %c0_4 = arith.constant 0 : index
    %c0_5 = arith.constant 0 : index
    %4 = vector.load %arg0[%c2, %c0_4, %c0_5] : memref<3x16x16xf32, #tpu.memory_space<vmem>>, vector<1x16x16xf32>
    %5 = vector.shape_cast %4 : vector<1x16x16xf32> to vector<16x16xf32>
    %c0_6 = arith.constant 0 : index
    %c0_7 = arith.constant 0 : index
    %6 = vector.load %arg1[%c0_6, %c0_7] : memref<16x32xf32, #tpu.memory_space<vmem>>, vector<16x32xf32>
    %c0_8 = arith.constant 0 : index
    %c0_9 = arith.constant 0 : index
    %7 = vector.load %arg2[%c0_8, %c0_9] : memref<328x32xf32, #tpu.memory_space<vmem>>, vector<32x32xf32>
    %c32 = arith.constant 32 : index
    %c0_10 = arith.constant 0 : index
    %8 = vector.load %arg2[%c32, %c0_10] : memref<328x32xf32, #tpu.memory_space<vmem>>, vector<32x32xf32>
    %c64 = arith.constant 64 : index
    %c0_11 = arith.constant 0 : index
    %9 = vector.load %arg2[%c64, %c0_11] : memref<328x32xf32, #tpu.memory_space<vmem>>, vector<128x32xf32>
    %10 = vector.shape_cast %9 : vector<128x32xf32> to vector<4x32x32xf32>
    %c192 = arith.constant 192 : index
    %c0_12 = arith.constant 0 : index
    %11 = vector.load %arg2[%c192, %c0_12] : memref<328x32xf32, #tpu.memory_space<vmem>>, vector<32x4xf32>
    %c224 = arith.constant 224 : index
    %c0_13 = arith.constant 0 : index
    %12 = vector.load %arg2[%c224, %c0_13] : memref<328x32xf32, #tpu.memory_space<vmem>>, vector<32x4xf32>
    %c256 = arith.constant 256 : index
    %c0_14 = arith.constant 0 : index
    %13 = vector.load %arg2[%c256, %c0_14] : memref<328x32xf32, #tpu.memory_space<vmem>>, vector<32x8xf32>
    %c288 = arith.constant 288 : index
    %c0_15 = arith.constant 0 : index
    %14 = vector.load %arg2[%c288, %c0_15] : memref<328x32xf32, #tpu.memory_space<vmem>>, vector<32x8xf32>
    %c320 = arith.constant 320 : index
    %c0_16 = arith.constant 0 : index
    %15 = vector.load %arg2[%c320, %c0_16] : memref<328x32xf32, #tpu.memory_space<vmem>>, vector<1x32xf32>
    %c321 = arith.constant 321 : index
    %c0_17 = arith.constant 0 : index
    %16 = vector.load %arg2[%c321, %c0_17] : memref<328x32xf32, #tpu.memory_space<vmem>>, vector<1x32xf32>
    %c322 = arith.constant 322 : index
    %c0_18 = arith.constant 0 : index
    %17 = vector.load %arg2[%c322, %c0_18] : memref<328x32xf32, #tpu.memory_space<vmem>>, vector<1x32xf32>
    %c323 = arith.constant 323 : index
    %c0_19 = arith.constant 0 : index
    %18 = vector.load %arg2[%c323, %c0_19] : memref<328x32xf32, #tpu.memory_space<vmem>>, vector<1x8xf32>
    %cst = arith.constant dense<0.000000e+00> : vector<16x32xf32>
    %19 = tpu.matmul %6, %7, %cst {dimension_numbers = #tpu.dot_dimension_numbers<[1], [0], [0], [1], [0, 0, 1, 1], [], []>} : vector<16x32xf32>, vector<32x32xf32>, vector<16x32xf32> -> vector<16x32xf32>
    %cst_20 = arith.constant dense<0.000000e+00> : vector<16x32xf32>
    %20 = tpu.matmul %1, %19, %cst_20 {dimension_numbers = #tpu.dot_dimension_numbers<[1], [0], [0], [1], [0, 0, 1, 1], [], []>} : vector<16x16xf32>, vector<16x32xf32>, vector<16x32xf32> -> vector<16x32xf32>
    %21 = vector.broadcast %15 : vector<1x32xf32> to vector<16x32xf32>
    %22 = arith.addf %20, %21 : vector<16x32xf32>
    %23 = vector.shape_cast %6 : vector<16x32xf32> to vector<1x16x32xf32>
    %24 = vector.shape_cast %23 : vector<1x16x32xf32> to vector<1x16x32xf32>
    %25 = vector.broadcast %24 : vector<1x16x32xf32> to vector<4x16x32xf32>
    %cst_21 = arith.constant dense<0.000000e+00> : vector<4x16x32xf32>
    %26 = tpu.matmul %25, %10, %cst_21 {dimension_numbers = #tpu.dot_dimension_numbers<[2], [1], [1], [2], [0, 0, 0, 1, 1, 2], [0], [0]>} : vector<4x16x32xf32>, vector<4x32x32xf32>, vector<4x16x32xf32> -> vector<4x16x32xf32>
    %cst_22 = arith.constant dense<0.000000e+00> : vector<16x4xf32>
    %27 = tpu.matmul %6, %11, %cst_22 {dimension_numbers = #tpu.dot_dimension_numbers<[1], [0], [0], [1], [0, 0, 1, 1], [], []>} : vector<16x32xf32>, vector<32x4xf32>, vector<16x4xf32> -> vector<16x4xf32>
    %cst_23 = arith.constant dense<0.000000e+00> : vector<4x16xf32>
    %28 = tpu.matmul %12, %6, %cst_23 {dimension_numbers = #tpu.dot_dimension_numbers<[0], [1], [1], [0], [0, 1, 1, 0], [], []>} : vector<32x4xf32>, vector<16x32xf32>, vector<4x16xf32> -> vector<4x16xf32>
    %29 = vector.extract_strided_slice %27 {offsets = [0, 0], sizes = [16, 1], strides = [1, 1]} : vector<16x4xf32> to vector<16x1xf32>
    %30 = vector.extract_strided_slice %28 {offsets = [0, 0], sizes = [1, 16], strides = [1, 1]} : vector<4x16xf32> to vector<1x16xf32>
    %31 = vector.broadcast %29 : vector<16x1xf32> to vector<16x16xf32>
    %32 = vector.broadcast %30 : vector<1x16xf32> to vector<16x16xf32>
    %33 = arith.addf %31, %32 : vector<16x16xf32>
    %c0_24 = arith.constant 0 : index
    %34 = memref.load %arg3[%c0_24] : memref<4xf32, #tpu.memory_space<smem>>
    %35 = vector.broadcast %34 : f32 to vector<16x16xf32>
    %36 = arith.mulf %3, %35 : vector<16x16xf32>
    %37 = arith.addf %33, %36 : vector<16x16xf32>
    %38 = vector.extract_strided_slice %27 {offsets = [0, 1], sizes = [16, 1], strides = [1, 1]} : vector<16x4xf32> to vector<16x1xf32>
    %39 = vector.extract_strided_slice %28 {offsets = [1, 0], sizes = [1, 16], strides = [1, 1]} : vector<4x16xf32> to vector<1x16xf32>
    %40 = vector.broadcast %38 : vector<16x1xf32> to vector<16x16xf32>
    %41 = vector.broadcast %39 : vector<1x16xf32> to vector<16x16xf32>
    %42 = arith.addf %40, %41 : vector<16x16xf32>
    %c1_25 = arith.constant 1 : index
    %43 = memref.load %arg3[%c1_25] : memref<4xf32, #tpu.memory_space<smem>>
    %44 = vector.broadcast %43 : f32 to vector<16x16xf32>
    %45 = arith.mulf %3, %44 : vector<16x16xf32>
    %46 = arith.addf %42, %45 : vector<16x16xf32>
    %47 = vector.extract_strided_slice %27 {offsets = [0, 2], sizes = [16, 1], strides = [1, 1]} : vector<16x4xf32> to vector<16x1xf32>
    %48 = vector.extract_strided_slice %28 {offsets = [2, 0], sizes = [1, 16], strides = [1, 1]} : vector<4x16xf32> to vector<1x16xf32>
    %49 = vector.broadcast %47 : vector<16x1xf32> to vector<16x16xf32>
    %50 = vector.broadcast %48 : vector<1x16xf32> to vector<16x16xf32>
    %51 = arith.addf %49, %50 : vector<16x16xf32>
    %c2_26 = arith.constant 2 : index
    %52 = memref.load %arg3[%c2_26] : memref<4xf32, #tpu.memory_space<smem>>
    %53 = vector.broadcast %52 : f32 to vector<16x16xf32>
    %54 = arith.mulf %3, %53 : vector<16x16xf32>
    %55 = arith.addf %51, %54 : vector<16x16xf32>
    %56 = vector.extract_strided_slice %27 {offsets = [0, 3], sizes = [16, 1], strides = [1, 1]} : vector<16x4xf32> to vector<16x1xf32>
    %57 = vector.extract_strided_slice %28 {offsets = [3, 0], sizes = [1, 16], strides = [1, 1]} : vector<4x16xf32> to vector<1x16xf32>
    %58 = vector.broadcast %56 : vector<16x1xf32> to vector<16x16xf32>
    %59 = vector.broadcast %57 : vector<1x16xf32> to vector<16x16xf32>
    %60 = arith.addf %58, %59 : vector<16x16xf32>
    %c3 = arith.constant 3 : index
    %61 = memref.load %arg3[%c3] : memref<4xf32, #tpu.memory_space<smem>>
    %62 = vector.broadcast %61 : f32 to vector<16x16xf32>
    %63 = arith.mulf %3, %62 : vector<16x16xf32>
    %64 = arith.addf %60, %63 : vector<16x16xf32>
    %65 = vector.shape_cast %37 : vector<16x16xf32> to vector<1x16x16xf32>
    %66 = vector.shape_cast %46 : vector<16x16xf32> to vector<1x16x16xf32>
    %67 = vector.shape_cast %55 : vector<16x16xf32> to vector<1x16x16xf32>
    %68 = vector.shape_cast %64 : vector<16x16xf32> to vector<1x16x16xf32>
    %69 = tpu.concatenate %65, %66, %67, %68 in 0 : vector<1x16x16xf32>, vector<1x16x16xf32>, vector<1x16x16xf32>, vector<1x16x16xf32> -> vector<4x16x16xf32>
    %cst_27 = arith.constant 2.000000e-01 : f32
    %70 = vector.broadcast %cst_27 : f32 to vector<4x16x16xf32>
    %71 = arith.mulf %70, %69 : vector<4x16x16xf32>
    %72 = arith.maximumf %69, %71 : vector<4x16x16xf32>
    %73 = vector.shape_cast %5 : vector<16x16xf32> to vector<1x16x16xf32>
    %74 = vector.broadcast %73 : vector<1x16x16xf32> to vector<4x16x16xf32>
    %75 = arith.addf %72, %74 : vector<4x16x16xf32>
    %cst_28 = arith.constant dense<0xFF800000> : vector<4x16xf32>
    %76 = vector.multi_reduction <maximumf>, %75, %cst_28 [2] : vector<4x16x16xf32> to vector<4x16xf32>
    %77 = vector.shape_cast %76 : vector<4x16xf32> to vector<4x16x1xf32>
    %78 = vector.broadcast %77 : vector<4x16x1xf32> to vector<4x16x16xf32>
    %79 = arith.subf %75, %78 : vector<4x16x16xf32>
    %80 = math.exp %79 : vector<4x16x16xf32>
    %cst_29 = arith.constant dense<0.000000e+00> : vector<4x16xf32>
    %81 = vector.multi_reduction <add>, %80, %cst_29 [2] : vector<4x16x16xf32> to vector<4x16xf32>
    %82 = vector.shape_cast %81 : vector<4x16xf32> to vector<4x16x1xf32>
    %83 = tpu.reciprocal %82 {approx = true} : vector<4x16x1xf32> -> vector<4x16x1xf32>
    %84 = vector.broadcast %83 : vector<4x16x1xf32> to vector<4x16x16xf32>
    %85 = arith.mulf %80, %84 : vector<4x16x16xf32>
    %cst_30 = arith.constant dense<0.000000e+00> : vector<4x16x32xf32>
    %86 = tpu.matmul %85, %26, %cst_30 {dimension_numbers = #tpu.dot_dimension_numbers<[2], [1], [1], [2], [0, 0, 0, 1, 1, 2], [0], [0]>} : vector<4x16x16xf32>, vector<4x16x32xf32>, vector<4x16x32xf32> -> vector<4x16x32xf32>
    %cst_31 = arith.constant dense<0.000000e+00> : vector<16x32xf32>
    %87 = vector.multi_reduction <add>, %86, %cst_31 [0] : vector<4x16x32xf32> to vector<16x32xf32>
    %cst_32 = arith.constant 2.500000e-01 : f32
    %88 = vector.broadcast %cst_32 : f32 to vector<16x32xf32>
    %89 = arith.mulf %87, %88 : vector<16x32xf32>
    %90 = vector.broadcast %17 : vector<1x32xf32> to vector<16x32xf32>
    %91 = arith.addf %89, %90 : vector<16x32xf32>
    %92 = arith.addf %22, %91 : vector<16x32xf32>
    %cst_33 = arith.constant 5.000000e-01 : f32
    %93 = vector.broadcast %cst_33 : f32 to vector<16x32xf32>
    %94 = arith.mulf %92, %93 : vector<16x32xf32>
    %cst_34 = arith.constant 0.000000e+00 : f32
    %95 = vector.broadcast %cst_34 : f32 to vector<16x32xf32>
    %96 = arith.maximumf %94, %95 : vector<16x32xf32>
    %cst_35 = arith.constant dense<0.000000e+00> : vector<16x32xf32>
    %97 = tpu.matmul %96, %8, %cst_35 {dimension_numbers = #tpu.dot_dimension_numbers<[1], [0], [0], [1], [0, 0, 1, 1], [], []>} : vector<16x32xf32>, vector<32x32xf32>, vector<16x32xf32> -> vector<16x32xf32>
    %cst_36 = arith.constant dense<0.000000e+00> : vector<16x32xf32>
    %98 = tpu.matmul %1, %97, %cst_36 {dimension_numbers = #tpu.dot_dimension_numbers<[1], [0], [0], [1], [0, 0, 1, 1], [], []>} : vector<16x16xf32>, vector<16x32xf32>, vector<16x32xf32> -> vector<16x32xf32>
    %99 = vector.broadcast %16 : vector<1x32xf32> to vector<16x32xf32>
    %100 = arith.addf %98, %99 : vector<16x32xf32>
    %101 = vector.shape_cast %96 : vector<16x32xf32> to vector<1x16x32xf32>
    %102 = vector.shape_cast %101 : vector<1x16x32xf32> to vector<1x16x32xf32>
    %103 = vector.broadcast %102 : vector<1x16x32xf32> to vector<4x16x32xf32>
    %cst_37 = arith.constant dense<0.000000e+00> : vector<4x16x32xf32>
    %104 = tpu.matmul %103, %10, %cst_37 {dimension_numbers = #tpu.dot_dimension_numbers<[2], [1], [1], [2], [0, 0, 0, 1, 1, 2], [0], [0]>} : vector<4x16x32xf32>, vector<4x32x32xf32>, vector<4x16x32xf32> -> vector<4x16x32xf32>
    %cst_38 = arith.constant dense<0.000000e+00> : vector<16x4xf32>
    %105 = tpu.matmul %96, %11, %cst_38 {dimension_numbers = #tpu.dot_dimension_numbers<[1], [0], [0], [1], [0, 0, 1, 1], [], []>} : vector<16x32xf32>, vector<32x4xf32>, vector<16x4xf32> -> vector<16x4xf32>
    %cst_39 = arith.constant dense<0.000000e+00> : vector<4x16xf32>
    %106 = tpu.matmul %12, %96, %cst_39 {dimension_numbers = #tpu.dot_dimension_numbers<[0], [1], [1], [0], [0, 1, 1, 0], [], []>} : vector<32x4xf32>, vector<16x32xf32>, vector<4x16xf32> -> vector<4x16xf32>
    %107 = vector.extract_strided_slice %105 {offsets = [0, 0], sizes = [16, 1], strides = [1, 1]} : vector<16x4xf32> to vector<16x1xf32>
    %108 = vector.extract_strided_slice %106 {offsets = [0, 0], sizes = [1, 16], strides = [1, 1]} : vector<4x16xf32> to vector<1x16xf32>
    %109 = vector.broadcast %107 : vector<16x1xf32> to vector<16x16xf32>
    %110 = vector.broadcast %108 : vector<1x16xf32> to vector<16x16xf32>
    %111 = arith.addf %109, %110 : vector<16x16xf32>
    %c0_40 = arith.constant 0 : index
    %112 = memref.load %arg3[%c0_40] : memref<4xf32, #tpu.memory_space<smem>>
    %113 = vector.broadcast %112 : f32 to vector<16x16xf32>
    %114 = arith.mulf %3, %113 : vector<16x16xf32>
    %115 = arith.addf %111, %114 : vector<16x16xf32>
    %116 = vector.extract_strided_slice %105 {offsets = [0, 1], sizes = [16, 1], strides = [1, 1]} : vector<16x4xf32> to vector<16x1xf32>
    %117 = vector.extract_strided_slice %106 {offsets = [1, 0], sizes = [1, 16], strides = [1, 1]} : vector<4x16xf32> to vector<1x16xf32>
    %118 = vector.broadcast %116 : vector<16x1xf32> to vector<16x16xf32>
    %119 = vector.broadcast %117 : vector<1x16xf32> to vector<16x16xf32>
    %120 = arith.addf %118, %119 : vector<16x16xf32>
    %c1_41 = arith.constant 1 : index
    %121 = memref.load %arg3[%c1_41] : memref<4xf32, #tpu.memory_space<smem>>
    %122 = vector.broadcast %121 : f32 to vector<16x16xf32>
    %123 = arith.mulf %3, %122 : vector<16x16xf32>
    %124 = arith.addf %120, %123 : vector<16x16xf32>
    %125 = vector.extract_strided_slice %105 {offsets = [0, 2], sizes = [16, 1], strides = [1, 1]} : vector<16x4xf32> to vector<16x1xf32>
    %126 = vector.extract_strided_slice %106 {offsets = [2, 0], sizes = [1, 16], strides = [1, 1]} : vector<4x16xf32> to vector<1x16xf32>
    %127 = vector.broadcast %125 : vector<16x1xf32> to vector<16x16xf32>
    %128 = vector.broadcast %126 : vector<1x16xf32> to vector<16x16xf32>
    %129 = arith.addf %127, %128 : vector<16x16xf32>
    %c2_42 = arith.constant 2 : index
    %130 = memref.load %arg3[%c2_42] : memref<4xf32, #tpu.memory_space<smem>>
    %131 = vector.broadcast %130 : f32 to vector<16x16xf32>
    %132 = arith.mulf %3, %131 : vector<16x16xf32>
    %133 = arith.addf %129, %132 : vector<16x16xf32>
    %134 = vector.extract_strided_slice %105 {offsets = [0, 3], sizes = [16, 1], strides = [1, 1]} : vector<16x4xf32> to vector<16x1xf32>
    %135 = vector.extract_strided_slice %106 {offsets = [3, 0], sizes = [1, 16], strides = [1, 1]} : vector<4x16xf32> to vector<1x16xf32>
    %136 = vector.broadcast %134 : vector<16x1xf32> to vector<16x16xf32>
    %137 = vector.broadcast %135 : vector<1x16xf32> to vector<16x16xf32>
    %138 = arith.addf %136, %137 : vector<16x16xf32>
    %c3_43 = arith.constant 3 : index
    %139 = memref.load %arg3[%c3_43] : memref<4xf32, #tpu.memory_space<smem>>
    %140 = vector.broadcast %139 : f32 to vector<16x16xf32>
    %141 = arith.mulf %3, %140 : vector<16x16xf32>
    %142 = arith.addf %138, %141 : vector<16x16xf32>
    %143 = vector.shape_cast %115 : vector<16x16xf32> to vector<1x16x16xf32>
    %144 = vector.shape_cast %124 : vector<16x16xf32> to vector<1x16x16xf32>
    %145 = vector.shape_cast %133 : vector<16x16xf32> to vector<1x16x16xf32>
    %146 = vector.shape_cast %142 : vector<16x16xf32> to vector<1x16x16xf32>
    %147 = tpu.concatenate %143, %144, %145, %146 in 0 : vector<1x16x16xf32>, vector<1x16x16xf32>, vector<1x16x16xf32>, vector<1x16x16xf32> -> vector<4x16x16xf32>
    %cst_44 = arith.constant 2.000000e-01 : f32
    %148 = vector.broadcast %cst_44 : f32 to vector<4x16x16xf32>
    %149 = arith.mulf %148, %147 : vector<4x16x16xf32>
    %150 = arith.maximumf %147, %149 : vector<4x16x16xf32>
    %151 = vector.shape_cast %5 : vector<16x16xf32> to vector<1x16x16xf32>
    %152 = vector.broadcast %151 : vector<1x16x16xf32> to vector<4x16x16xf32>
    %153 = arith.addf %150, %152 : vector<4x16x16xf32>
    %cst_45 = arith.constant dense<0xFF800000> : vector<4x16xf32>
    %154 = vector.multi_reduction <maximumf>, %153, %cst_45 [2] : vector<4x16x16xf32> to vector<4x16xf32>
    %155 = vector.shape_cast %154 : vector<4x16xf32> to vector<4x16x1xf32>
    %156 = vector.broadcast %155 : vector<4x16x1xf32> to vector<4x16x16xf32>
    %157 = arith.subf %153, %156 : vector<4x16x16xf32>
    %158 = math.exp %157 : vector<4x16x16xf32>
    %cst_46 = arith.constant dense<0.000000e+00> : vector<4x16xf32>
    %159 = vector.multi_reduction <add>, %158, %cst_46 [2] : vector<4x16x16xf32> to vector<4x16xf32>
    %160 = vector.shape_cast %159 : vector<4x16xf32> to vector<4x16x1xf32>
    %161 = tpu.reciprocal %160 {approx = true} : vector<4x16x1xf32> -> vector<4x16x1xf32>
    %162 = vector.broadcast %161 : vector<4x16x1xf32> to vector<4x16x16xf32>
    %163 = arith.mulf %158, %162 : vector<4x16x16xf32>
    %cst_47 = arith.constant dense<0.000000e+00> : vector<4x16x32xf32>
    %164 = tpu.matmul %163, %104, %cst_47 {dimension_numbers = #tpu.dot_dimension_numbers<[2], [1], [1], [2], [0, 0, 0, 1, 1, 2], [0], [0]>} : vector<4x16x16xf32>, vector<4x16x32xf32>, vector<4x16x32xf32> -> vector<4x16x32xf32>
    %cst_48 = arith.constant dense<0.000000e+00> : vector<16x32xf32>
    %165 = vector.multi_reduction <add>, %164, %cst_48 [0] : vector<4x16x32xf32> to vector<16x32xf32>
    %cst_49 = arith.constant 2.500000e-01 : f32
    %166 = vector.broadcast %cst_49 : f32 to vector<16x32xf32>
    %167 = arith.mulf %165, %166 : vector<16x32xf32>
    %168 = vector.broadcast %17 : vector<1x32xf32> to vector<16x32xf32>
    %169 = arith.addf %167, %168 : vector<16x32xf32>
    %170 = arith.addf %100, %169 : vector<16x32xf32>
    %cst_50 = arith.constant 5.000000e-01 : f32
    %171 = vector.broadcast %cst_50 : f32 to vector<16x32xf32>
    %172 = arith.mulf %170, %171 : vector<16x32xf32>
    %cst_51 = arith.constant 0.000000e+00 : f32
    %173 = vector.broadcast %cst_51 : f32 to vector<16x32xf32>
    %174 = arith.maximumf %172, %173 : vector<16x32xf32>
    %cst_52 = arith.constant dense<0.000000e+00> : vector<16x8xf32>
    %175 = tpu.matmul %96, %13, %cst_52 {dimension_numbers = #tpu.dot_dimension_numbers<[1], [0], [0], [1], [0, 0, 1, 1], [], []>} : vector<16x32xf32>, vector<32x8xf32>, vector<16x8xf32> -> vector<16x8xf32>
    %cst_53 = arith.constant dense<0.000000e+00> : vector<16x8xf32>
    %176 = tpu.matmul %174, %14, %cst_53 {dimension_numbers = #tpu.dot_dimension_numbers<[1], [0], [0], [1], [0, 0, 1, 1], [], []>} : vector<16x32xf32>, vector<32x8xf32>, vector<16x8xf32> -> vector<16x8xf32>
    %177 = arith.addf %175, %176 : vector<16x8xf32>
    %178 = vector.broadcast %18 : vector<1x8xf32> to vector<16x8xf32>
    %179 = arith.addf %177, %178 : vector<16x8xf32>
    %c0_54 = arith.constant 0 : index
    %c0_55 = arith.constant 0 : index
    %c0_56 = arith.constant 0 : index
    %180 = vector.load %arg4[%c0_54, %c0_55, %c0_56] : memref<3x12x12xf32, #tpu.memory_space<vmem>>, vector<1x12x12xf32>
    %181 = vector.shape_cast %180 : vector<1x12x12xf32> to vector<12x12xf32>
    %c1_57 = arith.constant 1 : index
    %c0_58 = arith.constant 0 : index
    %c0_59 = arith.constant 0 : index
    %182 = vector.load %arg4[%c1_57, %c0_58, %c0_59] : memref<3x12x12xf32, #tpu.memory_space<vmem>>, vector<1x12x12xf32>
    %183 = vector.shape_cast %182 : vector<1x12x12xf32> to vector<12x12xf32>
    %c2_60 = arith.constant 2 : index
    %c0_61 = arith.constant 0 : index
    %c0_62 = arith.constant 0 : index
    %184 = vector.load %arg4[%c2_60, %c0_61, %c0_62] : memref<3x12x12xf32, #tpu.memory_space<vmem>>, vector<1x12x12xf32>
    %185 = vector.shape_cast %184 : vector<1x12x12xf32> to vector<12x12xf32>
    %c0_63 = arith.constant 0 : index
    %c0_64 = arith.constant 0 : index
    %186 = vector.load %arg5[%c0_63, %c0_64] : memref<12x16xf32, #tpu.memory_space<vmem>>, vector<12x16xf32>
    %c0_65 = arith.constant 0 : index
    %c0_66 = arith.constant 0 : index
    %187 = vector.load %arg6[%c0_65, %c0_66] : memref<168x16xf32, #tpu.memory_space<vmem>>, vector<16x16xf32>
    %c16 = arith.constant 16 : index
    %c0_67 = arith.constant 0 : index
    %188 = vector.load %arg6[%c16, %c0_67] : memref<168x16xf32, #tpu.memory_space<vmem>>, vector<16x16xf32>
    %c32_68 = arith.constant 32 : index
    %c0_69 = arith.constant 0 : index
    %189 = vector.load %arg6[%c32_68, %c0_69] : memref<168x16xf32, #tpu.memory_space<vmem>>, vector<64x16xf32>
    %190 = vector.shape_cast %189 : vector<64x16xf32> to vector<4x16x16xf32>
    %c96 = arith.constant 96 : index
    %c0_70 = arith.constant 0 : index
    %191 = vector.load %arg6[%c96, %c0_70] : memref<168x16xf32, #tpu.memory_space<vmem>>, vector<16x4xf32>
    %c112 = arith.constant 112 : index
    %c0_71 = arith.constant 0 : index
    %192 = vector.load %arg6[%c112, %c0_71] : memref<168x16xf32, #tpu.memory_space<vmem>>, vector<16x4xf32>
    %c128 = arith.constant 128 : index
    %c0_72 = arith.constant 0 : index
    %193 = vector.load %arg6[%c128, %c0_72] : memref<168x16xf32, #tpu.memory_space<vmem>>, vector<16x8xf32>
    %c144 = arith.constant 144 : index
    %c0_73 = arith.constant 0 : index
    %194 = vector.load %arg6[%c144, %c0_73] : memref<168x16xf32, #tpu.memory_space<vmem>>, vector<16x8xf32>
    %c160 = arith.constant 160 : index
    %c0_74 = arith.constant 0 : index
    %195 = vector.load %arg6[%c160, %c0_74] : memref<168x16xf32, #tpu.memory_space<vmem>>, vector<1x16xf32>
    %c161 = arith.constant 161 : index
    %c0_75 = arith.constant 0 : index
    %196 = vector.load %arg6[%c161, %c0_75] : memref<168x16xf32, #tpu.memory_space<vmem>>, vector<1x16xf32>
    %c162 = arith.constant 162 : index
    %c0_76 = arith.constant 0 : index
    %197 = vector.load %arg6[%c162, %c0_76] : memref<168x16xf32, #tpu.memory_space<vmem>>, vector<1x16xf32>
    %c163 = arith.constant 163 : index
    %c0_77 = arith.constant 0 : index
    %198 = vector.load %arg6[%c163, %c0_77] : memref<168x16xf32, #tpu.memory_space<vmem>>, vector<1x8xf32>
    %cst_78 = arith.constant dense<0.000000e+00> : vector<12x16xf32>
    %199 = tpu.matmul %186, %187, %cst_78 {dimension_numbers = #tpu.dot_dimension_numbers<[1], [0], [0], [1], [0, 0, 1, 1], [], []>} : vector<12x16xf32>, vector<16x16xf32>, vector<12x16xf32> -> vector<12x16xf32>
    %cst_79 = arith.constant dense<0.000000e+00> : vector<12x16xf32>
    %200 = tpu.matmul %181, %199, %cst_79 {dimension_numbers = #tpu.dot_dimension_numbers<[1], [0], [0], [1], [0, 0, 1, 1], [], []>} : vector<12x12xf32>, vector<12x16xf32>, vector<12x16xf32> -> vector<12x16xf32>
    %201 = vector.broadcast %195 : vector<1x16xf32> to vector<12x16xf32>
    %202 = arith.addf %200, %201 : vector<12x16xf32>
    %203 = vector.shape_cast %186 : vector<12x16xf32> to vector<1x12x16xf32>
    %204 = vector.shape_cast %203 : vector<1x12x16xf32> to vector<1x12x16xf32>
    %205 = vector.broadcast %204 : vector<1x12x16xf32> to vector<4x12x16xf32>
    %cst_80 = arith.constant dense<0.000000e+00> : vector<4x12x16xf32>
    %206 = tpu.matmul %205, %190, %cst_80 {dimension_numbers = #tpu.dot_dimension_numbers<[2], [1], [1], [2], [0, 0, 0, 1, 1, 2], [0], [0]>} : vector<4x12x16xf32>, vector<4x16x16xf32>, vector<4x12x16xf32> -> vector<4x12x16xf32>
    %cst_81 = arith.constant dense<0.000000e+00> : vector<12x4xf32>
    %207 = tpu.matmul %186, %191, %cst_81 {dimension_numbers = #tpu.dot_dimension_numbers<[1], [0], [0], [1], [0, 0, 1, 1], [], []>} : vector<12x16xf32>, vector<16x4xf32>, vector<12x4xf32> -> vector<12x4xf32>
    %cst_82 = arith.constant dense<0.000000e+00> : vector<4x12xf32>
    %208 = tpu.matmul %192, %186, %cst_82 {dimension_numbers = #tpu.dot_dimension_numbers<[0], [1], [1], [0], [0, 1, 1, 0], [], []>} : vector<16x4xf32>, vector<12x16xf32>, vector<4x12xf32> -> vector<4x12xf32>
    %209 = vector.extract_strided_slice %207 {offsets = [0, 0], sizes = [12, 1], strides = [1, 1]} : vector<12x4xf32> to vector<12x1xf32>
    %210 = vector.extract_strided_slice %208 {offsets = [0, 0], sizes = [1, 12], strides = [1, 1]} : vector<4x12xf32> to vector<1x12xf32>
    %211 = vector.broadcast %209 : vector<12x1xf32> to vector<12x12xf32>
    %212 = vector.broadcast %210 : vector<1x12xf32> to vector<12x12xf32>
    %213 = arith.addf %211, %212 : vector<12x12xf32>
    %c0_83 = arith.constant 0 : index
    %214 = memref.load %arg7[%c0_83] : memref<4xf32, #tpu.memory_space<smem>>
    %215 = vector.broadcast %214 : f32 to vector<12x12xf32>
    %216 = arith.mulf %183, %215 : vector<12x12xf32>
    %217 = arith.addf %213, %216 : vector<12x12xf32>
    %218 = vector.extract_strided_slice %207 {offsets = [0, 1], sizes = [12, 1], strides = [1, 1]} : vector<12x4xf32> to vector<12x1xf32>
    %219 = vector.extract_strided_slice %208 {offsets = [1, 0], sizes = [1, 12], strides = [1, 1]} : vector<4x12xf32> to vector<1x12xf32>
    %220 = vector.broadcast %218 : vector<12x1xf32> to vector<12x12xf32>
    %221 = vector.broadcast %219 : vector<1x12xf32> to vector<12x12xf32>
    %222 = arith.addf %220, %221 : vector<12x12xf32>
    %c1_84 = arith.constant 1 : index
    %223 = memref.load %arg7[%c1_84] : memref<4xf32, #tpu.memory_space<smem>>
    %224 = vector.broadcast %223 : f32 to vector<12x12xf32>
    %225 = arith.mulf %183, %224 : vector<12x12xf32>
    %226 = arith.addf %222, %225 : vector<12x12xf32>
    %227 = vector.extract_strided_slice %207 {offsets = [0, 2], sizes = [12, 1], strides = [1, 1]} : vector<12x4xf32> to vector<12x1xf32>
    %228 = vector.extract_strided_slice %208 {offsets = [2, 0], sizes = [1, 12], strides = [1, 1]} : vector<4x12xf32> to vector<1x12xf32>
    %229 = vector.broadcast %227 : vector<12x1xf32> to vector<12x12xf32>
    %230 = vector.broadcast %228 : vector<1x12xf32> to vector<12x12xf32>
    %231 = arith.addf %229, %230 : vector<12x12xf32>
    %c2_85 = arith.constant 2 : index
    %232 = memref.load %arg7[%c2_85] : memref<4xf32, #tpu.memory_space<smem>>
    %233 = vector.broadcast %232 : f32 to vector<12x12xf32>
    %234 = arith.mulf %183, %233 : vector<12x12xf32>
    %235 = arith.addf %231, %234 : vector<12x12xf32>
    %236 = vector.extract_strided_slice %207 {offsets = [0, 3], sizes = [12, 1], strides = [1, 1]} : vector<12x4xf32> to vector<12x1xf32>
    %237 = vector.extract_strided_slice %208 {offsets = [3, 0], sizes = [1, 12], strides = [1, 1]} : vector<4x12xf32> to vector<1x12xf32>
    %238 = vector.broadcast %236 : vector<12x1xf32> to vector<12x12xf32>
    %239 = vector.broadcast %237 : vector<1x12xf32> to vector<12x12xf32>
    %240 = arith.addf %238, %239 : vector<12x12xf32>
    %c3_86 = arith.constant 3 : index
    %241 = memref.load %arg7[%c3_86] : memref<4xf32, #tpu.memory_space<smem>>
    %242 = vector.broadcast %241 : f32 to vector<12x12xf32>
    %243 = arith.mulf %183, %242 : vector<12x12xf32>
    %244 = arith.addf %240, %243 : vector<12x12xf32>
    %245 = vector.shape_cast %217 : vector<12x12xf32> to vector<1x12x12xf32>
    %246 = vector.shape_cast %226 : vector<12x12xf32> to vector<1x12x12xf32>
    %247 = vector.shape_cast %235 : vector<12x12xf32> to vector<1x12x12xf32>
    %248 = vector.shape_cast %244 : vector<12x12xf32> to vector<1x12x12xf32>
    %249 = tpu.concatenate %245, %246, %247, %248 in 0 : vector<1x12x12xf32>, vector<1x12x12xf32>, vector<1x12x12xf32>, vector<1x12x12xf32> -> vector<4x12x12xf32>
    %cst_87 = arith.constant 2.000000e-01 : f32
    %250 = vector.broadcast %cst_87 : f32 to vector<4x12x12xf32>
    %251 = arith.mulf %250, %249 : vector<4x12x12xf32>
    %252 = arith.maximumf %249, %251 : vector<4x12x12xf32>
    %253 = vector.shape_cast %185 : vector<12x12xf32> to vector<1x12x12xf32>
    %254 = vector.broadcast %253 : vector<1x12x12xf32> to vector<4x12x12xf32>
    %255 = arith.addf %252, %254 : vector<4x12x12xf32>
    %cst_88 = arith.constant dense<0xFF800000> : vector<4x12xf32>
    %256 = vector.multi_reduction <maximumf>, %255, %cst_88 [2] : vector<4x12x12xf32> to vector<4x12xf32>
    %257 = vector.shape_cast %256 : vector<4x12xf32> to vector<4x12x1xf32>
    %258 = vector.broadcast %257 : vector<4x12x1xf32> to vector<4x12x12xf32>
    %259 = arith.subf %255, %258 : vector<4x12x12xf32>
    %260 = math.exp %259 : vector<4x12x12xf32>
    %cst_89 = arith.constant dense<0.000000e+00> : vector<4x12xf32>
    %261 = vector.multi_reduction <add>, %260, %cst_89 [2] : vector<4x12x12xf32> to vector<4x12xf32>
    %262 = vector.shape_cast %261 : vector<4x12xf32> to vector<4x12x1xf32>
    %263 = tpu.reciprocal %262 {approx = true} : vector<4x12x1xf32> -> vector<4x12x1xf32>
    %264 = vector.broadcast %263 : vector<4x12x1xf32> to vector<4x12x12xf32>
    %265 = arith.mulf %260, %264 : vector<4x12x12xf32>
    %cst_90 = arith.constant dense<0.000000e+00> : vector<4x12x16xf32>
    %266 = tpu.matmul %265, %206, %cst_90 {dimension_numbers = #tpu.dot_dimension_numbers<[2], [1], [1], [2], [0, 0, 0, 1, 1, 2], [0], [0]>} : vector<4x12x12xf32>, vector<4x12x16xf32>, vector<4x12x16xf32> -> vector<4x12x16xf32>
    %cst_91 = arith.constant dense<0.000000e+00> : vector<12x16xf32>
    %267 = vector.multi_reduction <add>, %266, %cst_91 [0] : vector<4x12x16xf32> to vector<12x16xf32>
    %cst_92 = arith.constant 2.500000e-01 : f32
    %268 = vector.broadcast %cst_92 : f32 to vector<12x16xf32>
    %269 = arith.mulf %267, %268 : vector<12x16xf32>
    %270 = vector.broadcast %197 : vector<1x16xf32> to vector<12x16xf32>
    %271 = arith.addf %269, %270 : vector<12x16xf32>
    %272 = arith.addf %202, %271 : vector<12x16xf32>
    %cst_93 = arith.constant 5.000000e-01 : f32
    %273 = vector.broadcast %cst_93 : f32 to vector<12x16xf32>
    %274 = arith.mulf %272, %273 : vector<12x16xf32>
    %cst_94 = arith.constant 0.000000e+00 : f32
    %275 = vector.broadcast %cst_94 : f32 to vector<12x16xf32>
    %276 = arith.maximumf %274, %275 : vector<12x16xf32>
    %cst_95 = arith.constant dense<0.000000e+00> : vector<12x16xf32>
    %277 = tpu.matmul %276, %188, %cst_95 {dimension_numbers = #tpu.dot_dimension_numbers<[1], [0], [0], [1], [0, 0, 1, 1], [], []>} : vector<12x16xf32>, vector<16x16xf32>, vector<12x16xf32> -> vector<12x16xf32>
    %cst_96 = arith.constant dense<0.000000e+00> : vector<12x16xf32>
    %278 = tpu.matmul %181, %277, %cst_96 {dimension_numbers = #tpu.dot_dimension_numbers<[1], [0], [0], [1], [0, 0, 1, 1], [], []>} : vector<12x12xf32>, vector<12x16xf32>, vector<12x16xf32> -> vector<12x16xf32>
    %279 = vector.broadcast %196 : vector<1x16xf32> to vector<12x16xf32>
    %280 = arith.addf %278, %279 : vector<12x16xf32>
    %281 = vector.shape_cast %276 : vector<12x16xf32> to vector<1x12x16xf32>
    %282 = vector.shape_cast %281 : vector<1x12x16xf32> to vector<1x12x16xf32>
    %283 = vector.broadcast %282 : vector<1x12x16xf32> to vector<4x12x16xf32>
    %cst_97 = arith.constant dense<0.000000e+00> : vector<4x12x16xf32>
    %284 = tpu.matmul %283, %190, %cst_97 {dimension_numbers = #tpu.dot_dimension_numbers<[2], [1], [1], [2], [0, 0, 0, 1, 1, 2], [0], [0]>} : vector<4x12x16xf32>, vector<4x16x16xf32>, vector<4x12x16xf32> -> vector<4x12x16xf32>
    %cst_98 = arith.constant dense<0.000000e+00> : vector<12x4xf32>
    %285 = tpu.matmul %276, %191, %cst_98 {dimension_numbers = #tpu.dot_dimension_numbers<[1], [0], [0], [1], [0, 0, 1, 1], [], []>} : vector<12x16xf32>, vector<16x4xf32>, vector<12x4xf32> -> vector<12x4xf32>
    %cst_99 = arith.constant dense<0.000000e+00> : vector<4x12xf32>
    %286 = tpu.matmul %192, %276, %cst_99 {dimension_numbers = #tpu.dot_dimension_numbers<[0], [1], [1], [0], [0, 1, 1, 0], [], []>} : vector<16x4xf32>, vector<12x16xf32>, vector<4x12xf32> -> vector<4x12xf32>
    %287 = vector.extract_strided_slice %285 {offsets = [0, 0], sizes = [12, 1], strides = [1, 1]} : vector<12x4xf32> to vector<12x1xf32>
    %288 = vector.extract_strided_slice %286 {offsets = [0, 0], sizes = [1, 12], strides = [1, 1]} : vector<4x12xf32> to vector<1x12xf32>
    %289 = vector.broadcast %287 : vector<12x1xf32> to vector<12x12xf32>
    %290 = vector.broadcast %288 : vector<1x12xf32> to vector<12x12xf32>
    %291 = arith.addf %289, %290 : vector<12x12xf32>
    %c0_100 = arith.constant 0 : index
    %292 = memref.load %arg7[%c0_100] : memref<4xf32, #tpu.memory_space<smem>>
    %293 = vector.broadcast %292 : f32 to vector<12x12xf32>
    %294 = arith.mulf %183, %293 : vector<12x12xf32>
    %295 = arith.addf %291, %294 : vector<12x12xf32>
    %296 = vector.extract_strided_slice %285 {offsets = [0, 1], sizes = [12, 1], strides = [1, 1]} : vector<12x4xf32> to vector<12x1xf32>
    %297 = vector.extract_strided_slice %286 {offsets = [1, 0], sizes = [1, 12], strides = [1, 1]} : vector<4x12xf32> to vector<1x12xf32>
    %298 = vector.broadcast %296 : vector<12x1xf32> to vector<12x12xf32>
    %299 = vector.broadcast %297 : vector<1x12xf32> to vector<12x12xf32>
    %300 = arith.addf %298, %299 : vector<12x12xf32>
    %c1_101 = arith.constant 1 : index
    %301 = memref.load %arg7[%c1_101] : memref<4xf32, #tpu.memory_space<smem>>
    %302 = vector.broadcast %301 : f32 to vector<12x12xf32>
    %303 = arith.mulf %183, %302 : vector<12x12xf32>
    %304 = arith.addf %300, %303 : vector<12x12xf32>
    %305 = vector.extract_strided_slice %285 {offsets = [0, 2], sizes = [12, 1], strides = [1, 1]} : vector<12x4xf32> to vector<12x1xf32>
    %306 = vector.extract_strided_slice %286 {offsets = [2, 0], sizes = [1, 12], strides = [1, 1]} : vector<4x12xf32> to vector<1x12xf32>
    %307 = vector.broadcast %305 : vector<12x1xf32> to vector<12x12xf32>
    %308 = vector.broadcast %306 : vector<1x12xf32> to vector<12x12xf32>
    %309 = arith.addf %307, %308 : vector<12x12xf32>
    %c2_102 = arith.constant 2 : index
    %310 = memref.load %arg7[%c2_102] : memref<4xf32, #tpu.memory_space<smem>>
    %311 = vector.broadcast %310 : f32 to vector<12x12xf32>
    %312 = arith.mulf %183, %311 : vector<12x12xf32>
    %313 = arith.addf %309, %312 : vector<12x12xf32>
    %314 = vector.extract_strided_slice %285 {offsets = [0, 3], sizes = [12, 1], strides = [1, 1]} : vector<12x4xf32> to vector<12x1xf32>
    %315 = vector.extract_strided_slice %286 {offsets = [3, 0], sizes = [1, 12], strides = [1, 1]} : vector<4x12xf32> to vector<1x12xf32>
    %316 = vector.broadcast %314 : vector<12x1xf32> to vector<12x12xf32>
    %317 = vector.broadcast %315 : vector<1x12xf32> to vector<12x12xf32>
    %318 = arith.addf %316, %317 : vector<12x12xf32>
    %c3_103 = arith.constant 3 : index
    %319 = memref.load %arg7[%c3_103] : memref<4xf32, #tpu.memory_space<smem>>
    %320 = vector.broadcast %319 : f32 to vector<12x12xf32>
    %321 = arith.mulf %183, %320 : vector<12x12xf32>
    %322 = arith.addf %318, %321 : vector<12x12xf32>
    %323 = vector.shape_cast %295 : vector<12x12xf32> to vector<1x12x12xf32>
    %324 = vector.shape_cast %304 : vector<12x12xf32> to vector<1x12x12xf32>
    %325 = vector.shape_cast %313 : vector<12x12xf32> to vector<1x12x12xf32>
    %326 = vector.shape_cast %322 : vector<12x12xf32> to vector<1x12x12xf32>
    %327 = tpu.concatenate %323, %324, %325, %326 in 0 : vector<1x12x12xf32>, vector<1x12x12xf32>, vector<1x12x12xf32>, vector<1x12x12xf32> -> vector<4x12x12xf32>
    %cst_104 = arith.constant 2.000000e-01 : f32
    %328 = vector.broadcast %cst_104 : f32 to vector<4x12x12xf32>
    %329 = arith.mulf %328, %327 : vector<4x12x12xf32>
    %330 = arith.maximumf %327, %329 : vector<4x12x12xf32>
    %331 = vector.shape_cast %185 : vector<12x12xf32> to vector<1x12x12xf32>
    %332 = vector.broadcast %331 : vector<1x12x12xf32> to vector<4x12x12xf32>
    %333 = arith.addf %330, %332 : vector<4x12x12xf32>
    %cst_105 = arith.constant dense<0xFF800000> : vector<4x12xf32>
    %334 = vector.multi_reduction <maximumf>, %333, %cst_105 [2] : vector<4x12x12xf32> to vector<4x12xf32>
    %335 = vector.shape_cast %334 : vector<4x12xf32> to vector<4x12x1xf32>
    %336 = vector.broadcast %335 : vector<4x12x1xf32> to vector<4x12x12xf32>
    %337 = arith.subf %333, %336 : vector<4x12x12xf32>
    %338 = math.exp %337 : vector<4x12x12xf32>
    %cst_106 = arith.constant dense<0.000000e+00> : vector<4x12xf32>
    %339 = vector.multi_reduction <add>, %338, %cst_106 [2] : vector<4x12x12xf32> to vector<4x12xf32>
    %340 = vector.shape_cast %339 : vector<4x12xf32> to vector<4x12x1xf32>
    %341 = tpu.reciprocal %340 {approx = true} : vector<4x12x1xf32> -> vector<4x12x1xf32>
    %342 = vector.broadcast %341 : vector<4x12x1xf32> to vector<4x12x12xf32>
    %343 = arith.mulf %338, %342 : vector<4x12x12xf32>
    %cst_107 = arith.constant dense<0.000000e+00> : vector<4x12x16xf32>
    %344 = tpu.matmul %343, %284, %cst_107 {dimension_numbers = #tpu.dot_dimension_numbers<[2], [1], [1], [2], [0, 0, 0, 1, 1, 2], [0], [0]>} : vector<4x12x12xf32>, vector<4x12x16xf32>, vector<4x12x16xf32> -> vector<4x12x16xf32>
    %cst_108 = arith.constant dense<0.000000e+00> : vector<12x16xf32>
    %345 = vector.multi_reduction <add>, %344, %cst_108 [0] : vector<4x12x16xf32> to vector<12x16xf32>
    %cst_109 = arith.constant 2.500000e-01 : f32
    %346 = vector.broadcast %cst_109 : f32 to vector<12x16xf32>
    %347 = arith.mulf %345, %346 : vector<12x16xf32>
    %348 = vector.broadcast %197 : vector<1x16xf32> to vector<12x16xf32>
    %349 = arith.addf %347, %348 : vector<12x16xf32>
    %350 = arith.addf %280, %349 : vector<12x16xf32>
    %cst_110 = arith.constant 5.000000e-01 : f32
    %351 = vector.broadcast %cst_110 : f32 to vector<12x16xf32>
    %352 = arith.mulf %350, %351 : vector<12x16xf32>
    %cst_111 = arith.constant 0.000000e+00 : f32
    %353 = vector.broadcast %cst_111 : f32 to vector<12x16xf32>
    %354 = arith.maximumf %352, %353 : vector<12x16xf32>
    %cst_112 = arith.constant dense<0.000000e+00> : vector<12x8xf32>
    %355 = tpu.matmul %276, %193, %cst_112 {dimension_numbers = #tpu.dot_dimension_numbers<[1], [0], [0], [1], [0, 0, 1, 1], [], []>} : vector<12x16xf32>, vector<16x8xf32>, vector<12x8xf32> -> vector<12x8xf32>
    %cst_113 = arith.constant dense<0.000000e+00> : vector<12x8xf32>
    %356 = tpu.matmul %354, %194, %cst_113 {dimension_numbers = #tpu.dot_dimension_numbers<[1], [0], [0], [1], [0, 0, 1, 1], [], []>} : vector<12x16xf32>, vector<16x8xf32>, vector<12x8xf32> -> vector<12x8xf32>
    %357 = arith.addf %355, %356 : vector<12x8xf32>
    %358 = vector.broadcast %198 : vector<1x8xf32> to vector<12x8xf32>
    %359 = arith.addf %357, %358 : vector<12x8xf32>
    %cst_114 = arith.constant dense<0.000000e+00> : vector<12x16xf32>
    %360 = tpu.matmul %359, %179, %cst_114 {dimension_numbers = #tpu.dot_dimension_numbers<[1], [1], [0], [0], [0, 0, 1, 0], [], []>} : vector<12x8xf32>, vector<16x8xf32>, vector<12x16xf32> -> vector<12x16xf32>
    %cst_115 = arith.constant 0.000000e+00 : f32
    %361 = vector.broadcast %cst_115 : f32 to vector<16x32xf32>
    %c0_116 = arith.constant 0 : index
    %c0_117 = arith.constant 0 : index
    %362 = vector.load %arg8[%c0_116, %c0_117] : memref<16x32xf32, #tpu.memory_space<vmem>>, vector<16x32xf32>
    tpu.vector_store %arg8[%c0_116, %c0_117], %361 {strides = array<i32>} : memref<16x32xf32, #tpu.memory_space<vmem>>, vector<16x32xf32>,
    %c0_118 = arith.constant 0 : index
    %c0_119 = arith.constant 0 : index
    %363 = vector.load %arg8[%c0_118, %c0_119] : memref<16x32xf32, #tpu.memory_space<vmem>>, vector<12x16xf32>
    tpu.vector_store %arg8[%c0_118, %c0_119], %360 {strides = array<i32>} : memref<16x32xf32, #tpu.memory_space<vmem>>, vector<12x16xf32>,
    %c0_120 = arith.constant 0 : index
    %c16_121 = arith.constant 16 : index
    %364 = vector.load %arg8[%c0_120, %c16_121] : memref<16x32xf32, #tpu.memory_space<vmem>>, vector<16x8xf32>
    tpu.vector_store %arg8[%c0_120, %c16_121], %179 {strides = array<i32>} : memref<16x32xf32, #tpu.memory_space<vmem>>, vector<16x8xf32>,
    %c0_122 = arith.constant 0 : index
    %c24 = arith.constant 24 : index
    %365 = vector.load %arg8[%c0_122, %c24] : memref<16x32xf32, #tpu.memory_space<vmem>>, vector<12x8xf32>
    tpu.vector_store %arg8[%c0_122, %c24], %359 {strides = array<i32>} : memref<16x32xf32, #tpu.memory_space<vmem>>, vector<12x8xf32>,
    return
  }
}

</mosaic_0001>

<bundles_post_ra>
// kernel: gcn_dis_forward.1
= control target key start
LH: loop header
LB: loop body
LE: loop exit
PB: predicated region body
PF: predicated region fallthrough
CT: control target
= control target key end

     0   :  { %13 = vsyncpa [#allocation3], 0  ;;  %s7457_s0 = inlined_call_operand.vmem [shape: f32[3,16,16], index: 0, kind: input, shape index: {}]   ;;  %s7458_s1 = inlined_call_operand.vmem [shape: f32[16,32], index: 1, kind: input, shape index: {}]   ;;  %s7459_s2 = inlined_call_operand.vmem [shape: f32[328,32], index: 2, kind: input, shape index: {}]   ;;  %s7460_s3 = inlined_call_operand.vmem [shape: f32[4], index: 3, kind: input, shape index: {}]   ;;  %s7461_s4 = inlined_call_operand.vmem [shape: f32[3,12,12], index: 4, kind: input, shape index: {}]   ;;  %s7462_s5 = inlined_call_operand.vmem [shape: f32[12,16], index: 5, kind: input, shape index: {}]   ;;  %s7463_s6 = inlined_call_operand.vmem [shape: f32[168,16], index: 6, kind: input, shape index: {}]   ;;  %s7464_s7 = inlined_call_operand.vmem [shape: f32[4], index: 7, kind: input, shape index: {}]   ;;  %s7465_s8 = inlined_call_operand.vmem [shape: f32[16,32], index: 8, kind: output, shape index: {}]  }
   0x1   :  { %s27_s29 = sshll.u32 %s7460_s3, 4  ;;  %s28_s29 = int_to_ptr.vmem [resolvable:$true] %s27_s29 }
   0x2   :  { %14 = vsyncpa [#allocation5], 0  ;;  %s43_s10 = sshll.u32 %s7464_s7, 4  ;;  %s6238_s11 = scalar_lea.vmem %s28_s29, 16  ;;  %s44_s10 = int_to_ptr.vmem [resolvable:$true] %s43_s10 }
   0x3   :  { %p6239_p0 = scmp.ne.s32.totalorder %s28_s29, %s6238_s11  ;;  %p6243_p1 = scmp.lt.s32.totalorder %s28_s29, %s28_s29 }
   0x4   :  { %p6244_p2 = scmp.lt.s32.totalorder %s6238_s11, %s6238_s11 }
   0x6   :  { %p6245_p3 = por %p6244_p2, %p6243_p1 }
   0x8   :  { %p6246_p4 = pnand %p6245_p3, %p6239_p0 }
   0xa   :  { %6249 = shalt.err (!%p6246_p4)
}
   0xb   :  { %s6266_s12 = smov [#allocation2]   ;;  %s6250_s13 = scalar_lea.vmem %s44_s10, 16 }
   0xc   :  { %30 = dma.vmem_to_smem %s28_s29, 16, %s6266_s12, [#allocation3]  }
   0xd   :  { %p6251_p5 = scmp.ne.s32.totalorder %s44_s10, %s6250_s13  ;;  %p6255_p6 = scmp.lt.s32.totalorder %s44_s10, %s44_s10 }
   0xe   :  { %p6256_p7 = scmp.lt.s32.totalorder %s6250_s13, %s6250_s13 }
  0x10   :  { %p6257_p8 = por %p6256_p7, %p6255_p6 }
  0x12   :  { %p6258_p9 = pnand %p6257_p8, %p6251_p5 }
  0x14   :  { %6261 = shalt.err (!%p6258_p9)
}
  0x15   :  { %s6267_s3 = smov [#allocation4]  }
  0x16   :  { %46 = dma.vmem_to_smem %s44_s10, 16, %s6267_s3, [#allocation5]  }
  0x17   :  { %6262 = dma.done.wait [#allocation3], 16  }
  0x18   :  { %6263 = vsyncadd [#allocation3], 4294967280 }
  0x19   :  { %6264 = dma.done.wait [#allocation5], 16  }
  0x1a   :  { %6265 = vsyncadd [#allocation5], 4294967280 }
  0x1b   :  { %53 = sfence }
  0x1c   :  { %v67_v0 = vld [vmem:[%s7459_s2 + $0x18] sm:$0xff]  ;;  %v66_v1 = vld [vmem:[%s7459_s2 + $0x10] sm:$0xff]  ;;  %vm108_vm0 = vcmask 261120   ;;  %v6336_v2 = vld [vmem:[%s7458_s1] sm:$0xff]  ;;  %vm194_vm1 = vcmask 130048   ;;  %v7474_v11 = vmov 0.0   ;;  %v766_v54 = vlaneseq }
  0x1d   :  { %5645 = vmatprep.subr.mxu0 %v67_v0  ;;  %v65_v3 = vld [vmem:[%s7459_s2 + $0x8] sm:$0xff]  ;;  %5653 = vmatprep.mubr.msk.f32.mxu0 %vm108_vm0, %v6336_v2  ;;  %v64_v4 = vld [vmem:[%s7459_s2] sm:$0xff]  ;;  %v6371_v9 = vld [vmem:[%s7459_s2 + $0x78] sm:$0xff]  ;;  %5236 = vst.msk [vmem:[%s7465_s8] sm:$0xff] %vm108_vm0, %v7474_v11  ;;  %vm6269_vm2 = vmmov 0   ;;  %v7466_v36 = vmov 0  }
  0x1e   :  { %5646 = vmatpush3.msra.mxu0 %v67_v0  ;;  %v6349_v5 = vld [vmem:[%s7458_s1 + $0x8] sm:$0xff]  ;;  %v6358_v6 = vld [vmem:[%s7457_s0] sm:$0xff]  ;;  %v6376_v10 = vld [vmem:[%s7459_s2 + $0x70] sm:$0xff]  ;;  %5237 = vst.msk [vmem:[%s7465_s8 + $0x8] sm:$0xff] %vm108_vm0, %v7474_v11  ;;  %6082 = vset.pattern.permute.xlu1 %v7466_v36  ;;  %v7470_v37 = vmov 2   ;;  %v7472_v52 = vmov 1  }
  0x1f   :  { %5647 = vmatprep.subr.mxu0 %v66_v1  ;;  %5660 = vmatprep.mubr.msk.f32.mxu1 %vm194_vm1, %v6358_v6  ;;  %v92_v7 = vld [vmem:[%s7459_s2 + $0xe0] sm:$0xff]  ;;  %v93_v8 = vld [vmem:[%s7459_s2 + $0xe8] sm:$0xff]  ;;  %v94_v12 = vld [vmem:[%s7459_s2 + $0xf0] sm:$0xff]  ;;  %v7468_v53 = vmov 3   ;;  %s772_s30 = sld [smem:[#allocation2]]  ;;  %v767_v55 = vshrl.u32 %v766_v54, 7 }
  0x20   :  { %5648 = vmatpush3.msra.mxu0 %v66_v1  ;;  %651 = vxpose.xlu0.b32.start [1/4] (short) (narrow) %v92_v7, 8  ;;  %v6396_v13 = vld [vmem:[%s7459_s2 + $0x68] sm:$0xff]  ;;  %v6403_v14 = vld [vmem:[%s7459_s2 + $0x60] sm:$0xff]  ;;  %v95_v15 = vld [vmem:[%s7459_s2 + $0xf8] sm:$0xff]  ;;  %s6587_s9 = sld [smem:[#allocation2 + $0x1]]  ;;  %vm2714_vm3 = vcmask 97280  }
  0x21   :  { %5649 = vmatprep.subr.mxu0 %v65_v3  ;;  %v6413_v16 = vld [vmem:[%s7459_s2 + $0xb8] sm:$0xff]  ;;  %v6420_v17 = vld [vmem:[%s7459_s2 + $0xb0] sm:$0xff]  ;;  %v6429_v18 = vld [vmem:[%s7459_s2 + $0xa8] sm:$0xff]  ;;  %v6585_v56 = vsub.s32 0, %v767_v55  ;;  %v6594_v60 = vsub.s32 1, %v767_v55  ;;  %s5288_s3 = sld [smem:[#allocation2 + $0x2]] }
  0x22   :  { %5650 = vmatpush3.msra.mxu0 %v65_v3  ;;  %v6438_v19 = vld [vmem:[%s7459_s2 + $0xa0] sm:$0xff]  ;;  %v6457_v22 = vld [vmem:[%s7457_s0 + $0x8] sm:$0xff]  ;;  %v6462_v23 = vld [vmem:[%s7459_s2 + $0x58] sm:$0xff]  ;;  %s6627_s15 = sld [smem:[#allocation2 + $0x3]]  ;;  %vm2721_vm4 = vcmask 1043456   ;;  %vm3389_vm5 = vcmask 93184  }
  0x23   :  { %5651 = vmatprep.subr.mxu0 %v64_v4  ;;  %v6467_v24 = vld [vmem:[%s7459_s2 + $0x50] sm:$0xff]  ;;  %v6476_v25 = vld [vmem:[%s7459_s2 + $0x48] sm:$0xff]  ;;  %v6485_v26 = vld [vmem:[%s7459_s2 + $0x40] sm:$0xff]  ;;  %s3296_s29 = sld [smem:[#allocation4]]  ;;  %vm3818_vm6 = vcmask 125952   ;;  %s6274_s24 = smov 16  }
  0x24   :  { %5652 = vmatpush3.msra.mxu0 %v64_v4  ;;  %652 = vxpose.xlu0.b32.cont [2/4] (short) (narrow) %v93_v8, 8  ;;  %v6492_v27 = vld [vmem:[%s7459_s2 + $0x98] sm:$0xff]  ;;  %v6499_v28 = vld [vmem:[%s7459_s2 + $0x90] sm:$0xff]  ;;  %v6508_v29 = vld [vmem:[%s7459_s2 + $0x88] sm:$0xff]  ;;  %s7112_s10 = sld [smem:[#allocation4 + $0x3]]  ;;  %vm5148_vm7 = vcmask 64512  }
  0x25   :  { %5654 = vmatmul.mubr.msk.f32.vlgmr.msra.gmra.mxu0 %vm108_vm0, %v6349_v5  ;;  %5674 = vmatprep.subr.mxu0 %v6371_v9  ;;  %v6517_v30 = vld [vmem:[%s7459_s2 + $0x80] sm:$0xff]  ;;  %v6524_v31 = vld [vmem:[%s7459_s2 + $0xd8] sm:$0xff]  ;;  %v6531_v32 = vld [vmem:[%s7459_s2 + $0xd0] sm:$0xff]  ;;  %v773_v58 = vstv %s772_s30  ;;  %s5353_s30 = sld [smem:[#allocation4 + $0x1]]  ;;  %s6275_s13 = smov 24   ;;  %vm5246_vm8 = vcmask 195712  }
  0x26   :  { %5682 = vmatprep.mubr.msk.f32.mxu0 %vm108_vm0, %v6336_v2  ;;  %5675 = vmatpush3.msra.mxu0 %v6371_v9  ;;  %v6540_v33 = vld [vmem:[%s7459_s2 + $0xc8] sm:$0xff]  ;;  %v6553_v35 = vld [vmem:[%s7459_s2 + $0xc0] sm:$0xff]  ;;  %v5266_v57 = vld [vmem:[%s7457_s0 + $0x18] sm:$0xff]  ;;  %v793_v0 = vstv %s6587_s9  ;;  %s7110_s9 = sld [smem:[#allocation4 + $0x2]]  ;;  %vm5257_vm9 = vcmask 257216   ;;  %vm5255_vm10 = vcmask 261312  }
  0x27   :  { %5676 = vmatprep.subr.mxu0 %v6376_v10  ;;  %v6596_v61 = vmul.f32 %v5266_v57, %v773_v58  ;;  %v6602_v3 = vmul.f32 %v5266_v57, %v793_v0  ;;  %v6607_v8 = vld [vmem:[%s7457_s0 + $0x28] sm:$0xff] }
  0x28   :  { %653 = vxpose.xlu0.b32.cont [3/4] (short) (narrow) %v94_v12, 8  ;;  %5677 = vmatpush3.msra.mxu0 %v6376_v10 }
  0x29   :  { %5678 = vmatprep.subr.mxu0 %v6396_v13 }
  0x2a   :  { %5679 = vmatpush3.msra.mxu0 %v6396_v13 }
  0x2b   :  { %5680 = vmatprep.subr.mxu0 %v6403_v14 }
  0x2c   :  { %654 = vxpose.xlu0.b32.end [4/4] (short) (narrow) %v95_v15, 8  ;;  %5681 = vmatpush3.msra.mxu0 %v6403_v14 }
  0x2d   :  { %5696 = vmatprep.subr.mxu0 %v6413_v16  ;;  %5683 = vmatmul.mubr.msk.f32.vlgmr.msra.gmra.mxu0 %vm108_vm0, %v6349_v5 }
  0x2e   :  { %5697 = vmatpush3.msra.mxu0 %v6413_v16  ;;  %5704 = vmatprep.mubr.msk.f32.mxu0 %vm108_vm0, %v6336_v2 }
  0x2f   :  { %5698 = vmatprep.subr.mxu0 %v6420_v17 }
  0x30   :  { %5699 = vmatpush3.msra.mxu0 %v6420_v17 }
  0x31   :  { %5700 = vmatprep.subr.mxu0 %v6429_v18 }
  0x32   :  { %5701 = vmatpush3.msra.mxu0 %v6429_v18 }
  0x33   :  { %5702 = vmatprep.subr.mxu0 %v6438_v19 }
  0x34   :  { %5703 = vmatpush3.msra.mxu0 %v6438_v19 }
  0x35   :  { %5718 = vmatprep.subr.mxu0 %v7474_v11  ;;  %5705 = vmatmul.mubr.msk.f32.vlgmr.msra.gmra.mxu0 %vm108_vm0, %v6349_v5 }
  0x36   :  { %5719 = vmatpush3.xpose.msk.msra.mxu0 %vm108_vm0, %v6349_v5  ;;  %5722 = vmatprep.mubr.msk.f32.mxu0 %vm6269_vm2, %v7474_v11 }
  0x37   :  { %5720 = vmatprep.subr.mxu0 %v7474_v11 }
  0x3a   :  { %5721 = vmatpush3.xpose.msk.msra.mxu0 %vm108_vm0, %v6336_v2 }
  0x55   :  { %6086 = vset.pattern.permute.xlu0 %v7470_v37 }
  0x9c   :  { %v6544_v34 = vpop.trf.xlu0 }
  0x9d   :  { %5723 = vmatmul.mubr.msk.f32.vlgmr.msra.gmra.mxu0 %vm108_vm0, %v6544_v34 }
  0xe5   :  { %v5655_v20 = vpop.f32.mrf.mxu0 }
  0xe6   :  { %5656 = vmatprep.subr.mxu1 %v5655_v20 }
  0xe7   :  { %v181_v21 = vpop.f32.mrf.mxu0  ;;  %5657 = vmatpush3.msra.mxu1 %v5655_v20 }
  0xe8   :  { %5658 = vmatprep.subr.mxu1 %v181_v21 }
  0xe9   :  { %5659 = vmatpush3.msra.mxu1 %v181_v21 }
  0xea   :  { %5661 = vmatmul.mubr.msk.f32.vlgmr.msra.gmra.mxu1 %vm194_vm1, %v6457_v22  ;;  %5663 = vmatprep.subr.mxu1 %v6462_v23 }
  0xeb   :  { %5664 = vmatpush3.msra.mxu1 %v6462_v23  ;;  %5671 = vmatprep.mubr.msk.f32.mxu1 %vm108_vm0, %v6336_v2 }
  0xec   :  { %5665 = vmatprep.subr.mxu1 %v6467_v24 }
  0xed   :  { %5666 = vmatpush3.msra.mxu1 %v6467_v24  ;;  %v6563_v38 = vpop.f32.mrf.mxu0 }
  0xee   :  { %5667 = vmatprep.subr.mxu1 %v6476_v25 }
  0xef   :  { %5668 = vmatpush3.msra.mxu1 %v6476_v25  ;;  %v6565_v39 = vpop.f32.mrf.mxu0 }
  0xf0   :  { %5669 = vmatprep.subr.mxu1 %v6485_v26 }
  0xf1   :  { %5670 = vmatpush3.msra.mxu1 %v6485_v26 }
  0xf2   :  { %5672 = vmatmul.mubr.msk.f32.vlgmr.msra.gmra.mxu1 %vm108_vm0, %v6349_v5  ;;  %5685 = vmatprep.subr.mxu1 %v6492_v27 }
  0xf3   :  { %5686 = vmatpush3.msra.mxu1 %v6492_v27  ;;  %5693 = vmatprep.mubr.msk.f32.mxu1 %vm108_vm0, %v6336_v2 }
  0xf4   :  { %5687 = vmatprep.subr.mxu1 %v6499_v28 }
  0xf5   :  { %5688 = vmatpush3.msra.mxu1 %v6499_v28  ;;  %v5706_v40 = vpop.f32.mrf.mxu0 }
  0xf6   :  { %5689 = vmatprep.subr.mxu1 %v6508_v29  ;;  %5746 = vmatprep.subr.mxu0 %v5706_v40 }
  0xf7   :  { %5690 = vmatpush3.msra.mxu1 %v6508_v29  ;;  %v567_v41 = vpop.f32.mrf.mxu0  ;;  %5747 = vmatpush3.msra.mxu0 %v5706_v40 }
  0xf8   :  { %5691 = vmatprep.subr.mxu1 %v6517_v30  ;;  %5748 = vmatprep.subr.mxu0 %v567_v41 }
  0xf9   :  { %5692 = vmatpush3.msra.mxu1 %v6517_v30  ;;  %5749 = vmatpush3.msra.mxu0 %v567_v41 }
  0xfa   :  { %5694 = vmatmul.mubr.msk.f32.vlgmr.msra.gmra.mxu1 %vm108_vm0, %v6349_v5  ;;  %5707 = vmatprep.subr.mxu1 %v6524_v31 }
  0xfb   :  { %5708 = vmatpush3.msra.mxu1 %v6524_v31  ;;  %5715 = vmatprep.mubr.msk.f32.mxu1 %vm108_vm0, %v6336_v2 }
  0xfc   :  { %5709 = vmatprep.subr.mxu1 %v6531_v32 }
  0xfd   :  { %5710 = vmatpush3.msra.mxu1 %v6531_v32 }
  0xfe   :  { %5711 = vmatprep.subr.mxu1 %v6540_v33 }
  0xff   :  { %5712 = vmatpush3.msra.mxu1 %v6540_v33 }
 0x100   :  { %5713 = vmatprep.subr.mxu1 %v6553_v35 }
 0x101   :  { %5714 = vmatpush3.msra.mxu1 %v6553_v35 }
 0x102   :  { %5716 = vmatmul.mubr.msk.f32.vlgmr.msra.gmra.mxu1 %vm108_vm0, %v6349_v5 }
 0x15d   :  { %v6574_v47 = vpop.f32.mrf.mxu0 }
 0x15e   :  { %v769_v59 = vrot.slane %v6574_v47, %v6585_v56  ;;  %v789_v1 = vrot.slane %v6574_v47, %v6594_v60 }
 0x15f   :  { %v5724_v48 = vpop.f32.mrf.mxu0 }
 0x160   :  { %v6618_v48 = vsub.s32 2, %v767_v55 }
 0x1aa   :  { %v6567_v42 = vpop.f32.mrf.mxu1 }
 0x1ac   :  { %v6569_v43 = vpop.f32.mrf.mxu1 }
 0x1b2   :  { %v5673_v44 = vpop.f32.mrf.mxu1 }
 0x1b3   :  { %5725 = vmatprep.subr.mxu1 %v5673_v44 }
 0x1b4   :  { %v342_v45 = vpop.f32.mrf.mxu1  ;;  %5726 = vmatpush3.msra.mxu1 %v5673_v44 }
 0x1b5   :  { %5727 = vmatprep.subr.mxu1 %v342_v45 }
 0x1b6   :  { %5728 = vmatpush3.msra.mxu1 %v342_v45  ;;  %v5265_v45 = vld [vmem:[%s7457_s0 + $0x10] sm:$0xff] }
 0x1b7   :  { %5732 = vmatprep.subr.mxu1 %v6563_v38 }
 0x1ba   :  { %v6572_v46 = vpop.f32.mrf.mxu1 }
 0x1bc   :  { %v6576_v49 = vpop.f32.mrf.mxu1 }
 0x1c2   :  { %v5717_v50 = vpop.f32.mrf.mxu1 }
 0x1c3   :  { %763 = vperm.xlu1 %6082, %v5717_v50  }
 0x1c4   :  { %v642_v51 = vpop.f32.mrf.mxu1 }
 0x1c5   :  { %799 = vperm.xlu0 %6086, %v642_v51  }
 0x1c7   :  { %6083 = vset.pattern.permute.xlu1 %v7472_v52 }
 0x1c8   :  { %783 = vperm.xlu1 %6083, %v5717_v50  }
 0x1c9   :  { %6089 = vset.pattern.permute.xlu0 %v7466_v36 }
 0x1cc   :  { %6084 = vset.pattern.permute.xlu1 %v7466_v36 }
 0x1cd   :  { %758 = vperm.xlu1 %6084, %v642_v51  }
 0x1d1   :  { %6085 = vset.pattern.permute.xlu1 %v7472_v52 }
 0x1d2   :  { %779 = vperm.xlu1 %6085, %v642_v51  }
 0x1d6   :  { %6087 = vset.pattern.permute.xlu1 %v7470_v37  ;;  %v833_v37 = vstv %s6627_s15 }
 0x1d7   :  { %803 = vperm.xlu1 %6087, %v5717_v50  }
 0x1db   :  { %6088 = vset.pattern.permute.xlu1 %v7468_v53 }
 0x1dc   :  { %819 = vperm.xlu1 %6088, %v642_v51  }
 0x1e0   :  { %823 = vperm.xlu1 %6088, %v5717_v50   ;;  %v6620_v50 = vmul.f32 %v5265_v45, %v773_v58 }
 0x1e4   :  { %6090 = vset.pattern.permute.xlu1 %v7466_v36 }
 0x23e   :  { %v764_v62 = vpop.permute.xlu1 %763 }
 0x23f   :  { %v771_v63 = vadd.f32 %v769_v59, %v764_v62 }
 0x240   :  { %v800_v58 = vpop.permute.xlu0 %799 }
 0x241   :  { %v777_v2 = vadd.f32 %v6596_v61, %v771_v63 }
 0x243   :  { %v839_v4 = vmul.f32 0.2, %v777_v2  ;;  %v784_v5 = vpop.permute.xlu1 %783 }
 0x244   :  { %v791_v7 = vadd.f32 %v789_v1, %v784_v5 }
 0x245   :  { %v847_v12 = vmax.f32 %v777_v2, %v839_v4  ;;  %v809_v2 = vrot.slane %v6574_v47, %v6618_v48  ;;  %v813_v4 = vstv %s5288_s3 }
 0x246   :  { %v797_v15 = vadd.f32 %v6602_v3, %v791_v7  ;;  %v6632_v7 = vmul.f32 %v5265_v45, %v793_v0 }
 0x247   :  { %v6611_v20 = vadd.f32 %v6607_v8, %v847_v12  ;;  %v6634_v12 = vmul.f32 %v5266_v57, %v813_v4 }
 0x248   :  { %v841_v21 = vmul.f32 0.2, %v797_v15  ;;  %v759_v40 = vpop.permute.xlu1 %758  ;;  %7480 = vst [vmem:[#allocation8_spill] sm:$0xff] %v6632_v7 }
 0x249   :  { %v865_v41 = vsel %vm194_vm1, %v6611_v20, -inf  ;;  %v770_v51 = vadd.f32 %v769_v59, %v759_v40  ;;  %v6636_v40 = vsub.s32 3, %v767_v55  ;;  %v6646_v55 = vmul.f32 %v5265_v45, %v833_v37 }
 0x24a   :  { %866 = vmax.xlane.f32.xlu0 %v865_v41  ;;  %v849_v44 = vmax.f32 %v797_v15, %v841_v21  ;;  %v6638_v41 = vmul.f32 %v5265_v45, %v813_v4 }
 0x24b   :  { %v776_v5 = vadd.f32 %v6620_v50, %v770_v51  ;;  %7481 = vst [vmem:[#allocation9_spill] sm:$0xff] %v6636_v40  ;;  %v829_v0 = vrot.slane %v6574_v47, %v6636_v40 }
 0x24c   :  { %v6623_v54 = vadd.f32 %v6607_v8, %v849_v44  ;;  %v810_v44 = vadd.f32 %v809_v2, %v800_v58 }
 0x24d   :  { %v780_v62 = vpop.permute.xlu1 %779 }
 0x24e   :  { %v871_v63 = vsel %vm194_vm1, %v6623_v54, -inf  ;;  %v790_v59 = vadd.f32 %v789_v1, %v780_v62  ;;  %v816_v62 = vadd.f32 %v6638_v41, %v810_v44 }
 0x24f   :  { %872 = vmax.xlane.f32.xlu1 %v871_v63  ;;  %v838_v63 = vmul.f32 0.2, %v776_v5 }
 0x250   :  { %v796_v36 = vadd.f32 %v6632_v7, %v790_v59  ;;  %v6652_v59 = vld [vmem:[%s7457_s0 + $0x20] sm:$0xff]  ;;  %v6654_v7 = vmul.f32 %v5266_v57, %v833_v37 }
 0x251   :  { %v846_v52 = vmax.f32 %v776_v5, %v838_v63 }
 0x252   :  { %v804_v15 = vpop.permute.xlu1 %803 }
 0x253   :  { %v811_v21 = vadd.f32 %v809_v2, %v804_v15  ;;  %v840_v15 = vmul.f32 0.2, %v796_v36  ;;  %v854_v47 = vadd.f32 %v6652_v59, %v846_v52 }
 0x255   :  { %v817_v53 = vadd.f32 %v6634_v12, %v811_v21  ;;  %v842_v21 = vmul.f32 0.2, %v816_v62  ;;  %v848_v63 = vmax.f32 %v796_v36, %v840_v15 }
 0x257   :  { %v843_v51 = vmul.f32 0.2, %v817_v53  ;;  %v820_v1 = vpop.permute.xlu1 %819  ;;  %v856_v40 = vadd.f32 %v6652_v59, %v848_v63 }
 0x258   :  { %v830_v4 = vadd.f32 %v829_v0, %v820_v1  ;;  %v862_v1 = vsel %vm194_vm1, %v854_v47, -inf }
 0x259   :  { %v851_v11 = vmax.f32 %v817_v53, %v843_v51  ;;  %v850_v53 = vmax.f32 %v816_v62, %v842_v21  ;;  %v868_v57 = vsel %vm194_vm1, %v856_v40, -inf }
 0x25a   :  { %v836_v5 = vadd.f32 %v6646_v55, %v830_v4 }
 0x25b   :  { %v824_v2 = vpop.permute.xlu1 %823  ;;  %v859_v58 = vadd.f32 %v6607_v8, %v851_v11  ;;  %v858_v52 = vadd.f32 %v6652_v59, %v850_v53 }
 0x25c   :  { %v831_v44 = vadd.f32 %v829_v0, %v824_v2  ;;  %v844_v51 = vmul.f32 0.2, %v836_v5 }
 0x25d   :  { %v877_v45 = vsel %vm194_vm1, %v859_v58, -inf  ;;  %v874_v0 = vsel %vm194_vm1, %v858_v52, -inf }
 0x25e   :  { %878 = vmax.xlane.f32.xlu1 %v877_v45  ;;  %v837_v11 = vadd.f32 %v6654_v7, %v831_v44  ;;  %v852_v4 = vmax.f32 %v836_v5, %v844_v51 }
 0x260   :  { %v845_v37 = vmul.f32 0.2, %v837_v11  ;;  %v860_v36 = vadd.f32 %v6652_v59, %v852_v4 }
 0x262   :  { %863 = vmax.xlane.f32.xlu1 %v862_v1  ;;  %v853_v62 = vmax.f32 %v837_v11, %v845_v37  ;;  %v880_v15 = vsel %vm194_vm1, %v860_v36, -inf }
 0x264   :  { %v861_v2 = vadd.f32 %v6607_v8, %v853_v62 }
 0x266   :  { %869 = vmax.xlane.f32.xlu1 %v868_v57  ;;  %v883_v21 = vsel %vm194_vm1, %v861_v2, -inf }
 0x26a   :  { %875 = vmax.xlane.f32.xlu1 %v874_v0 }
 0x26e   :  { %881 = vmax.xlane.f32.xlu1 %v880_v15 }
 0x272   :  { %884 = vmax.xlane.f32.xlu1 %v883_v21 }
 0x2d3   :  { %v867_v44 = vpop.xlane.xlu0 %866 }
 0x2d4   :  { %v887_v45 = vsub.f32 %v6611_v20, %v867_v44 }
 0x2d6   :  { %v896_v63 = vmul.f32 1.442695, %v887_v45 }
 0x2d8   :  { %6110 = vpow2.f32 %v896_v63  ;;  %v873_v5 = vpop.xlane.xlu1 %872 }
 0x2d9   :  { %v889_v53 = vsub.f32 %v6623_v54, %v873_v5 }
 0x2db   :  { %v900_v51 = vmul.f32 1.442695, %v889_v53 }
 0x2dd   :  { %6112 = vpow2.f32 %v900_v51 }
 0x2e5   :  { %v6671_v11 = vpop.eup %6110 }
 0x2e6   :  { %v913_v1 = vsel %vm194_vm1, %v6671_v11, 0.0 }
 0x2e7   :  { %914 = vadd.xlane.f32.xlu1 %v913_v1  ;;  %v879_v37 = vpop.xlane.xlu1 %878 }
 0x2e8   :  { %v891_v57 = vsub.f32 %v859_v58, %v879_v37 }
 0x2ea   :  { %v6675_v4 = vpop.eup %6112  ;;  %v904_v0 = vmul.f32 1.442695, %v891_v57 }
 0x2eb   :  { %v864_v62 = vpop.xlane.xlu1 %863  ;;  %v919_v20 = vsel %vm194_vm1, %v6675_v4, 0.0 }
 0x2ec   :  { %6114 = vpow2.f32 %v904_v0  ;;  %v886_v15 = vsub.f32 %v854_v47, %v864_v62  ;;  %920 = vadd.xlane.f32.xlu1 %v919_v20 }
 0x2ee   :  { %v894_v54 = vmul.f32 1.442695, %v886_v15 }
 0x2ef   :  { %v870_v21 = vpop.xlane.xlu1 %869 }
 0x2f0   :  { %6116 = vpow2.f32 %v894_v54  ;;  %v888_v44 = vsub.f32 %v856_v40, %v870_v21 }
 0x2f2   :  { %v898_v45 = vmul.f32 1.442695, %v888_v44 }
 0x2f3   :  { %v876_v63 = vpop.xlane.xlu1 %875 }
 0x2f4   :  { %6118 = vpow2.f32 %v898_v45  ;;  %v890_v5 = vsub.f32 %v858_v52, %v876_v63 }
 0x2f6   :  { %v902_v53 = vmul.f32 1.442695, %v890_v5 }
 0x2f7   :  { %v882_v58 = vpop.xlane.xlu1 %881 }
 0x2f8   :  { %6120 = vpow2.f32 %v902_v53  ;;  %v892_v51 = vsub.f32 %v860_v36, %v882_v58 }
 0x2f9   :  { %v6115_v1 = vpop.eup %6114 }
 0x2fa   :  { %v906_v37 = vmul.f32 1.442695, %v892_v51  ;;  %v925_v57 = vsel %vm194_vm1, %v6115_v1, 0.0 }
 0x2fb   :  { %926 = vadd.xlane.f32.xlu1 %v925_v57  ;;  %v885_v0 = vpop.xlane.xlu1 %884 }
 0x2fc   :  { %6122 = vpow2.f32 %v906_v37  ;;  %v893_v47 = vsub.f32 %v861_v2, %v885_v0 }
 0x2fd   :  { %v6117_v62 = vpop.eup %6116 }
 0x2fe   :  { %v908_v20 = vmul.f32 1.442695, %v893_v47  ;;  %v910_v40 = vsel %vm194_vm1, %v6117_v62, 0.0 }
 0x2ff   :  { %911 = vadd.xlane.f32.xlu0 %v910_v40 }
 0x300   :  { %6124 = vpow2.f32 %v908_v20 }
 0x301   :  { %v6119_v15 = vpop.eup %6118 }
 0x302   :  { %v916_v52 = vsel %vm194_vm1, %v6119_v15, 0.0 }
 0x303   :  { %917 = vadd.xlane.f32.xlu0 %v916_v52 }
 0x305   :  { %v6121_v54 = vpop.eup %6120 }
 0x306   :  { %v922_v36 = vsel %vm194_vm1, %v6121_v54, 0.0 }
 0x307   :  { %923 = vadd.xlane.f32.xlu0 %v922_v36 }
 0x309   :  { %v6123_v21 = vpop.eup %6122 }
 0x30a   :  { %v928_v44 = vsel %vm194_vm1, %v6123_v21, 0.0 }
 0x30b   :  { %929 = vadd.xlane.f32.xlu0 %v928_v44 }
 0x30d   :  { %v6125_v45 = vpop.eup %6124 }
 0x30e   :  { %v931_v2 = vsel %vm194_vm1, %v6125_v45, 0.0 }
 0x30f   :  { %932 = vadd.xlane.f32.xlu1 %v931_v2 }
 0x370   :  { %v915_v63 = vpop.xlane.xlu1 %914 }
 0x371   :  { %6126 = vrcp.f32 %v915_v63 }
 0x375   :  { %v921_v53 = vpop.xlane.xlu1 %920 }
 0x37e   :  { %v6127_v0 = vpop.eup %6126 }
 0x37f   :  { %v943_v52 = vmul.f32 %v6127_v0, %v6671_v11 }
 0x384   :  { %v927_v51 = vpop.xlane.xlu1 %926 }
 0x388   :  { %v912_v5 = vpop.xlane.xlu0 %911 }
 0x389   :  { %6128 = vrcp.f32 %v912_v5 }
 0x38a   :  { %6130 = vrcp.f32 %v921_v53 }
 0x38c   :  { %v918_v58 = vpop.xlane.xlu0 %917 }
 0x38d   :  { %6132 = vrcp.f32 %v918_v58 }
 0x38e   :  { %6134 = vrcp.f32 %v927_v51 }
 0x390   :  { %v924_v37 = vpop.xlane.xlu0 %923 }
 0x391   :  { %6136 = vrcp.f32 %v924_v37 }
 0x394   :  { %v930_v57 = vpop.xlane.xlu0 %929 }
 0x395   :  { %6138 = vrcp.f32 %v930_v57 }
 0x396   :  { %v6129_v47 = vpop.eup %6128 }
 0x397   :  { %v942_v20 = vmul.f32 %v6129_v47, %v6117_v62  ;;  %v6131_v36 = vpop.eup %6130 }
 0x398   :  { %v933_v40 = vpop.xlane.xlu1 %932  ;;  %v945_v63 = vmul.f32 %v6131_v36, %v6675_v4 }
 0x399   :  { %6140 = vrcp.f32 %v933_v40  ;;  %5729 = vmatprep.mubr.msk.f32.mxu1 %vm194_vm1, %v942_v20 }
 0x39a   :  { %v6133_v44 = vpop.eup %6132  ;;  %5730 = vmatmul.mubr.msk.f32.vlgmr.msra.gmra.mxu1 %vm194_vm1, %v943_v52 }
 0x39b   :  { %5733 = vmatpush3.msra.mxu1 %v6563_v38  ;;  %v944_v2 = vmul.f32 %v6133_v44, %v6119_v15  ;;  %v6135_v5 = vpop.eup %6134 }
 0x39c   :  { %5734 = vmatprep.subr.mxu1 %v6565_v39  ;;  %v947_v38 = vmul.f32 %v6135_v5, %v6115_v1  ;;  %v69_v1 = vld [vmem:[%s7459_s2 + $0x28] sm:$0xff] }
 0x39d   :  { %5735 = vmatpush3.msra.mxu1 %v6565_v39  ;;  %5736 = vmatprep.mubr.msk.f32.mxu1 %vm194_vm1, %v944_v2 }
 0x39e   :  { %v6137_v11 = vpop.eup %6136  ;;  %5739 = vmatprep.subr.mxu1 %v6572_v46  ;;  %5737 = vmatmul.mubr.msk.f32.vlgmr.msra.gmra.mxu1 %vm194_vm1, %v945_v63 }
 0x39f   :  { %5740 = vmatpush3.msra.mxu1 %v6572_v46  ;;  %v946_v62 = vmul.f32 %v6137_v11, %v6121_v54  ;;  %v71_v46 = vld [vmem:[%s7459_s2 + $0x38] sm:$0xff] }
 0x3a0   :  { %5741 = vmatprep.subr.mxu1 %v6576_v49 }
 0x3a1   :  { %5742 = vmatpush3.msra.mxu1 %v6576_v49  ;;  %5743 = vmatprep.mubr.msk.f32.mxu1 %vm194_vm1, %v946_v62  ;;  %v70_v49 = vld [vmem:[%s7459_s2 + $0x30] sm:$0xff] }
 0x3a2   :  { %v6139_v4 = vpop.eup %6138  ;;  %5744 = vmatmul.mubr.msk.f32.vlgmr.msra.gmra.mxu1 %vm194_vm1, %v947_v38  ;;  %5753 = vmatprep.subr.mxu1 %v71_v46 }
 0x3a3   :  { %v948_v39 = vmul.f32 %v6139_v4, %v6123_v21  ;;  %5754 = vmatpush3.msra.mxu1 %v71_v46  ;;  %v5271_v4 = vld [vmem:[%s7459_s2 + $0x140] ss:$0 sm:$0xff] }
 0x3a4   :  { %5755 = vmatprep.subr.mxu1 %v70_v49 }
 0x3a5   :  { %5750 = vmatprep.mubr.msk.f32.mxu0 %vm194_vm1, %v948_v39  ;;  %5756 = vmatpush3.msra.mxu1 %v70_v49  ;;  %v6730_v39 = vld [vmem:[%s7459_s2 + $0x142] ss:$0 sm:$0xff]  ;;  %v273_v49 = vadd.f32 %v6567_v42, %v5271_v4 }
 0x3a6   :  { %v6141_v15 = vpop.eup %6140  ;;  %5757 = vmatprep.subr.mxu1 %v69_v1 }
 0x3a7   :  { %v949_v53 = vmul.f32 %v6141_v15, %v6125_v45  ;;  %5758 = vmatpush3.msra.mxu1 %v69_v1 }
 0x3a9   :  { %5751 = vmatmul.mubr.msk.f32.vlgmr.msra.gmra.mxu0 %vm194_vm1, %v949_v53 }
 0x3aa   :  { %5768 = vmatprep.mubr.msk.f32.mxu0 %vm194_vm1, %v6358_v6  ;;  %v68_v6 = vld [vmem:[%s7459_s2 + $0x20] sm:$0xff] }
 0x3ab   :  { %5759 = vmatprep.subr.mxu1 %v68_v6 }
 0x3ac   :  { %5760 = vmatpush3.msra.mxu1 %v68_v6 }
 0x3ad   :  { %5782 = vmatprep.subr.mxu1 %v6371_v9 }
 0x45a   :  { %v5731_v54 = vpop.f32.mrf.mxu1 }
 0x45b   :  { %v1281_v0 = vsel %vm108_vm0, %v5731_v54, 0.0  ;;  %v268_v54 = vadd.f32 %v5271_v4, %v6569_v43 }
 0x45c   :  { %v1022_v21 = vpop.f32.mrf.mxu1 }
 0x45d   :  { %v1274_v52 = vsel %vm108_vm0, %v1022_v21, 0.0 }
 0x45e   :  { %v5738_v45 = vpop.f32.mrf.mxu1 }
 0x45f   :  { %v1282_v37 = vsel %vm108_vm0, %v5738_v45, 0.0 }
 0x460   :  { %v1103_v58 = vpop.f32.mrf.mxu1  ;;  %v1283_v40 = vadd.f32 %v1282_v37, %v1281_v0 }
 0x461   :  { %v1275_v47 = vsel %vm108_vm0, %v1103_v58, 0.0 }
 0x462   :  { %v5745_v51 = vpop.f32.mrf.mxu1  ;;  %v1276_v44 = vadd.f32 %v1275_v47, %v1274_v52 }
 0x463   :  { %v1284_v20 = vsel %vm108_vm0, %v5745_v51, 0.0 }
 0x464   :  { %v1184_v57 = vpop.f32.mrf.mxu1  ;;  %v1285_v2 = vadd.f32 %v1284_v20, %v1283_v40 }
 0x465   :  { %v1277_v36 = vsel %vm108_vm0, %v1184_v57, 0.0 }
 0x466   :  { %v1278_v11 = vadd.f32 %v1277_v36, %v1276_v44 }
 0x469   :  { %v5752_v63 = vpop.f32.mrf.mxu0 }
 0x46a   :  { %v1286_v5 = vsel %vm108_vm0, %v5752_v63, 0.0 }
 0x46b   :  { %v1287_v62 = vadd.f32 %v1286_v5, %v1285_v2  ;;  %v1265_v38 = vpop.f32.mrf.mxu0 }
 0x46c   :  { %v1279_v15 = vsel %vm108_vm0, %v1265_v38, 0.0 }
 0x46d   :  { %v1289_v53 = vmul.f32 0.25, %v1287_v62  ;;  %v1280_v46 = vadd.f32 %v1279_v15, %v1278_v11 }
 0x46f   :  { %v1295_v1 = vadd.f32 %v6730_v39, %v1289_v53  ;;  %v1288_v6 = vmul.f32 0.25, %v1280_v46 }
 0x471   :  { %v1297_v21 = vadd.f32 %v1295_v1, %v273_v49  ;;  %v1294_v45 = vadd.f32 %v6730_v39, %v1288_v6 }
 0x473   :  { %v1296_v58 = vadd.f32 %v1294_v45, %v268_v54  ;;  %v1299_v51 = vmul.f32 0.5, %v1297_v21 }
 0x475   :  { %v1298_v37 = vmul.f32 0.5, %v1296_v58  ;;  %v6739_v0 = vmax.f32 %v1299_v51, 0.0 }
 0x477   :  { %v6737_v57 = vmax.f32 %v1298_v37, 0.0  ;;  %v7487_v37 = vld [vmem:[#allocation8_spill] sm:$0xff] }
 0x479   :  { %5761 = vmatprep.mubr.msk.f32.mxu1 %vm108_vm0, %v6737_v57 }
 0x47a   :  { %5762 = vmatmul.mubr.msk.f32.vlgmr.msra.gmra.mxu1 %vm108_vm0, %v6739_v0 }
 0x47b   :  { %5783 = vmatpush3.msra.mxu1 %v6371_v9  ;;  %5790 = vmatprep.mubr.msk.f32.mxu1 %vm108_vm0, %v6737_v57  ;;  %v7482_v9 = vmov 0.0  }
 0x47c   :  { %5784 = vmatprep.subr.mxu1 %v6376_v10 }
 0x47d   :  { %5785 = vmatpush3.msra.mxu1 %v6376_v10 }
 0x47e   :  { %5786 = vmatprep.subr.mxu1 %v6396_v13 }
 0x47f   :  { %5787 = vmatpush3.msra.mxu1 %v6396_v13 }
 0x480   :  { %5788 = vmatprep.subr.mxu1 %v6403_v14 }
 0x481   :  { %5789 = vmatpush3.msra.mxu1 %v6403_v14 }
 0x482   :  { %5791 = vmatmul.mubr.msk.f32.vlgmr.msra.gmra.mxu1 %vm108_vm0, %v6739_v0  ;;  %5804 = vmatprep.subr.mxu1 %v6413_v16 }
 0x483   :  { %5805 = vmatpush3.msra.mxu1 %v6413_v16  ;;  %5812 = vmatprep.mubr.msk.f32.mxu1 %vm108_vm0, %v6737_v57 }
 0x484   :  { %5806 = vmatprep.subr.mxu1 %v6420_v17 }
 0x485   :  { %5807 = vmatpush3.msra.mxu1 %v6420_v17 }
 0x486   :  { %5808 = vmatprep.subr.mxu1 %v6429_v18 }
 0x487   :  { %5809 = vmatpush3.msra.mxu1 %v6429_v18 }
 0x488   :  { %5810 = vmatprep.subr.mxu1 %v6438_v19 }
 0x489   :  { %5811 = vmatpush3.msra.mxu1 %v6438_v19 }
 0x48a   :  { %5813 = vmatmul.mubr.msk.f32.vlgmr.msra.gmra.mxu1 %vm108_vm0, %v6739_v0  ;;  %5826 = vmatprep.subr.mxu1 %v7482_v9 }
 0x48b   :  { %5827 = vmatpush3.xpose.msk.msra.mxu1 %vm108_vm0, %v6739_v0  ;;  %5830 = vmatprep.mubr.msk.f32.mxu1 %vm6269_vm2, %v7482_v9 }
 0x48c   :  { %5828 = vmatprep.subr.mxu1 %v7482_v9 }
 0x48f   :  { %5829 = vmatpush3.xpose.msk.msra.mxu1 %vm108_vm0, %v6737_v57 }
 0x492   :  { %5831 = vmatmul.mubr.msk.f32.vlgmr.msra.gmra.mxu1 %vm108_vm0, %v6544_v34  ;;  %v7486_v34 = vmov 0  }
 0x53a   :  { %v5763_v10 = vpop.f32.mrf.mxu1 }
 0x53b   :  { %5764 = vmatprep.subr.mxu0 %v5763_v10 }
 0x53c   :  { %v1374_v13 = vpop.f32.mrf.mxu1  ;;  %5765 = vmatpush3.msra.mxu0 %v5763_v10 }
 0x53d   :  { %5766 = vmatprep.subr.mxu0 %v1374_v13 }
 0x53e   :  { %5767 = vmatpush3.msra.mxu0 %v1374_v13 }
 0x53f   :  { %5769 = vmatmul.mubr.msk.f32.vlgmr.msra.gmra.mxu0 %vm194_vm1, %v6457_v22  ;;  %5771 = vmatprep.subr.mxu0 %v6462_v23 }
 0x540   :  { %5772 = vmatpush3.msra.mxu0 %v6462_v23  ;;  %5779 = vmatprep.mubr.msk.f32.mxu0 %vm108_vm0, %v6737_v57 }
 0x541   :  { %5773 = vmatprep.subr.mxu0 %v6467_v24 }
 0x542   :  { %v5792_v14 = vpop.f32.mrf.mxu1  ;;  %5774 = vmatpush3.msra.mxu0 %v6467_v24 }
 0x543   :  { %5840 = vmatprep.subr.mxu1 %v5792_v14  ;;  %5775 = vmatprep.subr.mxu0 %v6476_v25 }
 0x544   :  { %v1603_v16 = vpop.f32.mrf.mxu1  ;;  %5841 = vmatpush3.msra.mxu1 %v5792_v14  ;;  %5776 = vmatpush3.msra.mxu0 %v6476_v25 }
 0x545   :  { %5842 = vmatprep.subr.mxu1 %v1603_v16  ;;  %5777 = vmatprep.subr.mxu0 %v6485_v26 }
 0x546   :  { %5843 = vmatpush3.msra.mxu1 %v1603_v16  ;;  %5778 = vmatpush3.msra.mxu0 %v6485_v26 }
 0x547   :  { %5780 = vmatmul.mubr.msk.f32.vlgmr.msra.gmra.mxu0 %vm108_vm0, %v6739_v0  ;;  %5793 = vmatprep.subr.mxu0 %v6492_v27 }
 0x548   :  { %5794 = vmatpush3.msra.mxu0 %v6492_v27  ;;  %5801 = vmatprep.mubr.msk.f32.mxu0 %vm108_vm0, %v6737_v57 }
 0x549   :  { %5795 = vmatprep.subr.mxu0 %v6499_v28 }
 0x54a   :  { %v6797_v17 = vpop.f32.mrf.mxu1  ;;  %5796 = vmatpush3.msra.mxu0 %v6499_v28 }
 0x54b   :  { %5854 = vmatprep.subr.mxu1 %v6797_v17  ;;  %5797 = vmatprep.subr.mxu0 %v6508_v29 }
 0x54c   :  { %5798 = vmatpush3.msra.mxu0 %v6508_v29  ;;  %v6808_v18 = vpop.f32.mrf.mxu1 }
 0x54d   :  { %5799 = vmatprep.subr.mxu0 %v6517_v30 }
 0x54e   :  { %5800 = vmatpush3.msra.mxu0 %v6517_v30 }
 0x54f   :  { %5802 = vmatmul.mubr.msk.f32.vlgmr.msra.gmra.mxu0 %vm108_vm0, %v6739_v0  ;;  %5815 = vmatprep.subr.mxu0 %v6524_v31 }
 0x550   :  { %5816 = vmatpush3.msra.mxu0 %v6524_v31  ;;  %5823 = vmatprep.mubr.msk.f32.mxu0 %vm108_vm0, %v6737_v57  ;;  %v7483_v31 = vmov 1  }
 0x551   :  { %5817 = vmatprep.subr.mxu0 %v6531_v32 }
 0x552   :  { %v6814_v19 = vpop.f32.mrf.mxu1  ;;  %5818 = vmatpush3.msra.mxu0 %v6531_v32  ;;  %v7484_v32 = vmov 2  }
 0x553   :  { %5819 = vmatprep.subr.mxu0 %v6540_v33  ;;  %v1936_v52 = vrot.slane %v6814_v19, %v6594_v60  ;;  %v1952_v38 = vrot.slane %v6814_v19, %v6618_v48 }
 0x554   :  { %v5832_v22 = vpop.f32.mrf.mxu1  ;;  %5820 = vmatpush3.msra.mxu0 %v6540_v33  ;;  %v7485_v33 = vmov 3  }
 0x555   :  { %5821 = vmatprep.subr.mxu0 %v6553_v35 }
 0x556   :  { %5822 = vmatpush3.msra.mxu0 %v6553_v35  ;;  %v1920_v35 = vrot.slane %v6814_v19, %v6585_v56 }
 0x557   :  { %5824 = vmatmul.mubr.msk.f32.vlgmr.msra.gmra.mxu0 %vm108_vm0, %v6739_v0 }
 0x5ff   :  { %v6823_v23 = vpop.f32.mrf.mxu0 }
 0x601   :  { %v6825_v24 = vpop.f32.mrf.mxu0 }
 0x607   :  { %v5781_v25 = vpop.f32.mrf.mxu0 }
 0x608   :  { %5833 = vmatprep.subr.mxu0 %v5781_v25 }
 0x609   :  { %v1528_v26 = vpop.f32.mrf.mxu0  ;;  %5834 = vmatpush3.msra.mxu0 %v5781_v25 }
 0x60a   :  { %5835 = vmatprep.subr.mxu0 %v1528_v26 }
 0x60b   :  { %5836 = vmatpush3.msra.mxu0 %v1528_v26 }
 0x60f   :  { %v6827_v27 = vpop.f32.mrf.mxu0 }
 0x610   :  { %5847 = vmatprep.subr.mxu0 %v6827_v27 }
 0x611   :  { %v6830_v28 = vpop.f32.mrf.mxu0 }
 0x617   :  { %v5825_v29 = vpop.f32.mrf.mxu0 }
 0x618   :  { %1914 = vperm.xlu1 %6090, %v5825_v29  }
 0x619   :  { %v1828_v30 = vpop.f32.mrf.mxu0 }
 0x61a   :  { %1909 = vperm.xlu0 %6089, %v1828_v30  }
 0x61c   :  { %6091 = vset.pattern.permute.xlu1 %v7483_v31 }
 0x61d   :  { %1930 = vperm.xlu1 %6091, %v5825_v29  }
 0x621   :  { %6092 = vset.pattern.permute.xlu1 %v7484_v32 }
 0x622   :  { %1946 = vperm.xlu1 %6092, %v5825_v29  }
 0x626   :  { %6093 = vset.pattern.permute.xlu1 %v7483_v31 }
 0x627   :  { %1926 = vperm.xlu1 %6093, %v1828_v30  }
 0x62b   :  { %6094 = vset.pattern.permute.xlu1 %v7484_v32 }
 0x62c   :  { %1942 = vperm.xlu1 %6094, %v1828_v30  }
 0x630   :  { %6095 = vset.pattern.permute.xlu1 %v7485_v33 }
 0x631   :  { %1958 = vperm.xlu1 %6095, %v1828_v30  }
 0x635   :  { %1962 = vperm.xlu1 %6095, %v5825_v29   ;;  %v7488_v29 = vld [vmem:[#allocation9_spill] sm:$0xff] }
 0x636   :  { %v1968_v30 = vrot.slane %v6814_v19, %v7488_v29 }
 0x639   :  { %6096 = vset.pattern.permute.xlu1 %v7486_v34 }
 0x693   :  { %v1915_v42 = vpop.permute.xlu1 %1914 }
 0x694   :  { %v1922_v43 = vadd.f32 %v1920_v35, %v1915_v42 }
 0x695   :  { %v1910_v47 = vpop.permute.xlu0 %1909 }
 0x696   :  { %v1924_v20 = vadd.f32 %v1922_v43, %v6596_v61  ;;  %v1921_v40 = vadd.f32 %v1920_v35, %v1910_v47 }
 0x698   :  { %v1974_v36 = vmul.f32 0.2, %v1924_v20  ;;  %v1923_v44 = vadd.f32 %v1921_v40, %v6620_v50  ;;  %v1931_v2 = vpop.permute.xlu1 %1930 }
 0x699   :  { %v1938_v63 = vadd.f32 %v1936_v52, %v1931_v2 }
 0x69a   :  { %v1982_v5 = vmax.f32 %v1924_v20, %v1974_v36  ;;  %v1973_v11 = vmul.f32 0.2, %v1923_v44 }
 0x69b   :  { %v1940_v62 = vadd.f32 %v1938_v63, %v6602_v3 }
 0x69c   :  { %v1990_v4 = vadd.f32 %v6607_v8, %v1982_v5  ;;  %v1981_v1 = vmax.f32 %v1923_v44, %v1973_v11 }
 0x69d   :  { %v1976_v15 = vmul.f32 0.2, %v1940_v62  ;;  %v1947_v61 = vpop.permute.xlu1 %1946 }
 0x69e   :  { %v1954_v53 = vadd.f32 %v1952_v38, %v1947_v61  ;;  %v2000_v46 = vsel %vm194_vm1, %v1990_v4, -inf  ;;  %v1989_v58 = vadd.f32 %v6652_v59, %v1981_v1 }
 0x69f   :  { %2001 = vmax.xlane.f32.xlu0 %v2000_v46  ;;  %v1984_v49 = vmax.f32 %v1940_v62, %v1976_v15 }
 0x6a0   :  { %v1956_v50 = vadd.f32 %v1954_v53, %v6634_v12  ;;  %v1997_v16 = vsel %vm194_vm1, %v1989_v58, -inf }
 0x6a1   :  { %v1992_v6 = vadd.f32 %v6607_v8, %v1984_v49 }
 0x6a2   :  { %v1978_v54 = vmul.f32 0.2, %v1956_v50  ;;  %v1927_v21 = vpop.permute.xlu1 %1926 }
 0x6a3   :  { %v1937_v3 = vadd.f32 %v1936_v52, %v1927_v21  ;;  %v2006_v45 = vsel %vm194_vm1, %v1992_v6, -inf }
 0x6a4   :  { %2007 = vmax.xlane.f32.xlu1 %v2006_v45  ;;  %v1986_v51 = vmax.f32 %v1956_v50, %v1978_v54 }
 0x6a5   :  { %v1939_v10 = vadd.f32 %v1937_v3, %v7487_v37 }
 0x6a6   :  { %v1994_v22 = vadd.f32 %v6607_v8, %v1986_v51 }
 0x6a7   :  { %v1975_v13 = vmul.f32 0.2, %v1939_v10  ;;  %v1943_v14 = vpop.permute.xlu1 %1942 }
 0x6a8   :  { %v1953_v12 = vadd.f32 %v1952_v38, %v1943_v14  ;;  %1998 = vmax.xlane.f32.xlu1 %v1997_v16  ;;  %v2012_v35 = vsel %vm194_vm1, %v1994_v22, -inf }
 0x6a9   :  { %v1983_v25 = vmax.f32 %v1939_v10, %v1975_v13 }
 0x6aa   :  { %v1955_v26 = vadd.f32 %v1953_v12, %v6638_v41 }
 0x6ab   :  { %v1991_v42 = vadd.f32 %v6652_v59, %v1983_v25 }
 0x6ac   :  { %v1977_v43 = vmul.f32 0.2, %v1955_v26  ;;  %v1959_v47 = vpop.permute.xlu1 %1958  ;;  %2013 = vmax.xlane.f32.xlu1 %v2012_v35 }
 0x6ad   :  { %v1969_v20 = vadd.f32 %v1968_v30, %v1959_v47  ;;  %v2003_v40 = vsel %vm194_vm1, %v1991_v42, -inf }
 0x6ae   :  { %2004 = vmax.xlane.f32.xlu0 %v2003_v40  ;;  %v1985_v52 = vmax.f32 %v1955_v26, %v1977_v43 }
 0x6af   :  { %v1971_v36 = vadd.f32 %v1969_v20, %v6646_v55 }
 0x6b0   :  { %v1963_v44 = vpop.permute.xlu1 %1962  ;;  %v1993_v41 = vadd.f32 %v6652_v59, %v1985_v52 }
 0x6b1   :  { %v1979_v2 = vmul.f32 0.2, %v1971_v36  ;;  %v1970_v63 = vadd.f32 %v1968_v30, %v1963_v44 }
 0x6b2   :  { %v2009_v19 = vsel %vm194_vm1, %v1993_v41, -inf }
 0x6b3   :  { %v1972_v5 = vadd.f32 %v1970_v63, %v6654_v7  ;;  %2010 = vmax.xlane.f32.xlu0 %v2009_v19  ;;  %v1987_v11 = vmax.f32 %v1971_v36, %v1979_v2 }
 0x6b5   :  { %v1980_v62 = vmul.f32 0.2, %v1972_v5  ;;  %v1995_v38 = vadd.f32 %v6652_v59, %v1987_v11 }
 0x6b7   :  { %v2015_v15 = vsel %vm194_vm1, %v1995_v38, -inf  ;;  %v1988_v61 = vmax.f32 %v1972_v5, %v1980_v62 }
 0x6b8   :  { %2016 = vmax.xlane.f32.xlu0 %v2015_v15 }
 0x6b9   :  { %v1996_v55 = vadd.f32 %v6607_v8, %v1988_v61 }
 0x6bb   :  { %v2018_v53 = vsel %vm194_vm1, %v1996_v55, -inf }
 0x6bc   :  { %2019 = vmax.xlane.f32.xlu1 %v2018_v53 }
 0x728   :  { %v2002_v46 = vpop.xlane.xlu0 %2001 }
 0x729   :  { %v2022_v49 = vsub.f32 %v1990_v4, %v2002_v46 }
 0x72b   :  { %v2031_v1 = vmul.f32 1.442695, %v2022_v49 }
 0x72d   :  { %6142 = vpow2.f32 %v2031_v1  ;;  %v2008_v50 = vpop.xlane.xlu1 %2007 }
 0x72e   :  { %v2024_v7 = vsub.f32 %v1992_v6, %v2008_v50 }
 0x730   :  { %v2035_v54 = vmul.f32 1.442695, %v2024_v7 }
 0x731   :  { %v1999_v21 = vpop.xlane.xlu1 %1998 }
 0x732   :  { %6144 = vpow2.f32 %v2035_v54  ;;  %v2021_v3 = vsub.f32 %v1989_v58, %v1999_v21 }
 0x734   :  { %v2029_v59 = vmul.f32 1.442695, %v2021_v3 }
 0x735   :  { %v2014_v45 = vpop.xlane.xlu1 %2013 }
 0x736   :  { %6146 = vpow2.f32 %v2029_v59  ;;  %v2026_v51 = vsub.f32 %v1994_v22, %v2014_v45 }
 0x737   :  { %v2005_v37 = vpop.xlane.xlu0 %2004 }
 0x738   :  { %v2039_v10 = vmul.f32 1.442695, %v2026_v51  ;;  %v2023_v8 = vsub.f32 %v1991_v42, %v2005_v37 }
 0x73a   :  { %v6143_v13 = vpop.eup %6142  ;;  %6148 = vpow2.f32 %v2039_v10  ;;  %v2033_v14 = vmul.f32 1.442695, %v2023_v8 }
 0x73b   :  { %v2048_v4 = vsel %vm194_vm1, %v6143_v13, 0.0 }
 0x73c   :  { %6150 = vpow2.f32 %v2033_v14  ;;  %2049 = vadd.xlane.f32.xlu1 %v2048_v4  ;;  %v2011_v16 = vpop.xlane.xlu0 %2010  ;;  %v98_v4 = vld [vmem:[%s7459_s2 + $0x110] sm:$0xff] }
 0x73d   :  { %v2025_v6 = vsub.f32 %v1993_v41, %v2011_v16  ;;  %v96_v16 = vld [vmem:[%s7459_s2 + $0x100] sm:$0xff] }
 0x73f   :  { %v6145_v12 = vpop.eup %6144  ;;  %v2037_v25 = vmul.f32 1.442695, %v2025_v6  ;;  %v102_v6 = vld [vmem:[%s7459_s2 + $0x130] sm:$0xff] }
 0x740   :  { %v2054_v58 = vsel %vm194_vm1, %v6145_v12, 0.0 }
 0x741   :  { %6152 = vpow2.f32 %v2037_v25  ;;  %2055 = vadd.xlane.f32.xlu1 %v2054_v58  ;;  %v2017_v26 = vpop.xlane.xlu0 %2016  ;;  %v2606_v25 = vld [vmem:[%s7463_s6 + $0x8] sm:$0xff]  ;;  %v2619_v58 = vld [vmem:[%s7463_s6 + $0x70] sm:$0xff] }
 0x742   :  { %v2027_v22 = vsub.f32 %v1995_v38, %v2017_v26  ;;  %v2620_v26 = vld [vmem:[%s7463_s6 + $0x78] sm:$0xff] }
 0x743   :  { %v6147_v30 = vpop.eup %6146 }
 0x744   :  { %v2041_v35 = vmul.f32 1.442695, %v2027_v22  ;;  %v2045_v42 = vsel %vm194_vm1, %v6147_v30, 0.0 }
 0x745   :  { %2046 = vadd.xlane.f32.xlu0 %v2045_v42  ;;  %v2020_v43 = vpop.xlane.xlu1 %2019 }
 0x746   :  { %6154 = vpow2.f32 %v2041_v35  ;;  %v2028_v47 = vsub.f32 %v1996_v55, %v2020_v43 }
 0x747   :  { %v6149_v20 = vpop.eup %6148 }
 0x748   :  { %v2043_v40 = vmul.f32 1.442695, %v2028_v47  ;;  %v2060_v52 = vsel %vm194_vm1, %v6149_v20, 0.0 }
 0x749   :  { %v6151_v36 = vpop.eup %6150  ;;  %2061 = vadd.xlane.f32.xlu1 %v2060_v52 }
 0x74a   :  { %6156 = vpow2.f32 %v2043_v40  ;;  %v2051_v44 = vsel %vm194_vm1, %v6151_v36, 0.0 }
 0x74b   :  { %2052 = vadd.xlane.f32.xlu0 %v2051_v44 }
 0x74e   :  { %v6153_v41 = vpop.eup %6152 }
 0x74f   :  { %v2057_v2 = vsel %vm194_vm1, %v6153_v41, 0.0 }
 0x750   :  { %2058 = vadd.xlane.f32.xlu0 %v2057_v2 }
 0x753   :  { %v6155_v63 = vpop.eup %6154 }
 0x754   :  { %v2063_v19 = vsel %vm194_vm1, %v6155_v63, 0.0 }
 0x755   :  { %2064 = vadd.xlane.f32.xlu0 %v2063_v19 }
 0x757   :  { %v6157_v5 = vpop.eup %6156 }
 0x758   :  { %v2066_v11 = vsel %vm194_vm1, %v6157_v5, 0.0 }
 0x759   :  { %2067 = vadd.xlane.f32.xlu1 %v2066_v11 }
 0x782   :  { %3175 = vxpose.xlu0.b32.start [1/2] (short) (narrow) %v2619_v58, 8  ;;  %v7054_v58 = vld [vmem:[%s7463_s6 + $0x58] sm:$0xff] }
 0x786   :  { %3176 = vxpose.xlu0.b32.end [2/2] (short) (narrow) %v2620_v26, 8 }
 0x7c5   :  { %v2050_v62 = vpop.xlane.xlu1 %2049 }
 0x7c6   :  { %6158 = vrcp.f32 %v2050_v62 }
 0x7ca   :  { %v2056_v15 = vpop.xlane.xlu1 %2055 }
 0x7ce   :  { %v2047_v38 = vpop.xlane.xlu0 %2046 }
 0x7cf   :  { %6160 = vrcp.f32 %v2047_v38 }
 0x7d0   :  { %6162 = vrcp.f32 %v2056_v15 }
 0x7d2   :  { %v2062_v55 = vpop.xlane.xlu1 %2061 }
 0x7d3   :  { %v6159_v46 = vpop.eup %6158 }
 0x7d4   :  { %v2053_v61 = vpop.xlane.xlu0 %2052  ;;  %v2078_v7 = vmul.f32 %v6159_v46, %v6143_v13 }
 0x7d5   :  { %6164 = vrcp.f32 %v2053_v61  ;;  %v5301_v61 = vld [vmem:[%s7459_s2 + $0x141] ss:$0 sm:$0xff] }
 0x7d6   :  { %6166 = vrcp.f32 %v2062_v55 }
 0x7d9   :  { %v2059_v53 = vpop.xlane.xlu0 %2058 }
 0x7da   :  { %6168 = vrcp.f32 %v2059_v53 }
 0x7dc   :  { %v6161_v49 = vpop.eup %6160 }
 0x7dd   :  { %v2077_v1 = vmul.f32 %v6161_v49, %v6147_v30  ;;  %v6163_v54 = vpop.eup %6162  ;;  %v1459_v49 = vadd.f32 %v6823_v23, %v5301_v61  ;;  %v2605_v23 = vld [vmem:[%s7463_s6] sm:$0xff] }
 0x7de   :  { %v2065_v50 = vpop.xlane.xlu0 %2064  ;;  %v2080_v45 = vmul.f32 %v6163_v54, %v6145_v12  ;;  %v101_v12 = vld [vmem:[%s7459_s2 + $0x128] sm:$0xff] }
 0x7df   :  { %6170 = vrcp.f32 %v2065_v50  ;;  %5837 = vmatprep.mubr.msk.f32.mxu0 %vm194_vm1, %v2077_v1 }
 0x7e0   :  { %5838 = vmatmul.mubr.msk.f32.vlgmr.msra.gmra.mxu0 %vm194_vm1, %v2078_v7  ;;  %v1454_v7 = vadd.f32 %v5301_v61, %v6825_v24  ;;  %v6964_v24 = vld [vmem:[%s7463_s6 + $0x28] sm:$0xff]  ;;  %v5331_v61 = vld [vmem:[%s7461_s4 + $0x18] sm:$0xf] }
 0x7e1   :  { %5848 = vmatpush3.msra.mxu0 %v6827_v27  ;;  %v99_v27 = vld [vmem:[%s7459_s2 + $0x118] sm:$0xff] }
 0x7e2   :  { %v6165_v21 = vpop.eup %6164  ;;  %5849 = vmatprep.subr.mxu0 %v6830_v28  ;;  %v2068_v3 = vpop.xlane.xlu1 %2067 }
 0x7e3   :  { %6172 = vrcp.f32 %v2068_v3  ;;  %5850 = vmatpush3.msra.mxu0 %v6830_v28  ;;  %v2079_v59 = vmul.f32 %v6165_v21, %v6151_v36  ;;  %v6167_v51 = vpop.eup %6166 }
 0x7e4   :  { %v2082_v28 = vmul.f32 %v6167_v51, %v6149_v20 }
 0x7e5   :  { %5844 = vmatprep.mubr.msk.f32.mxu1 %vm194_vm1, %v2079_v59 }
 0x7e6   :  { %5845 = vmatmul.mubr.msk.f32.vlgmr.msra.gmra.mxu1 %vm194_vm1, %v2080_v45 }
 0x7e7   :  { %v6169_v37 = vpop.eup %6168  ;;  %5855 = vmatpush3.msra.mxu1 %v6797_v17 }
 0x7e8   :  { %5856 = vmatprep.subr.mxu1 %v6808_v18  ;;  %v2081_v10 = vmul.f32 %v6169_v37, %v6153_v41 }
 0x7e9   :  { %5857 = vmatpush3.msra.mxu1 %v6808_v18  ;;  %v97_v18 = vld [vmem:[%s7459_s2 + $0x108] sm:$0xff] }
 0x7ea   :  { %5851 = vmatprep.mubr.msk.f32.mxu0 %vm194_vm1, %v2081_v10  ;;  %5872 = vmatprep.subr.mxu1 %v99_v27  ;;  %v6969_v10 = vld [vmem:[%s7463_s6 + $0x20] sm:$0xff] }
 0x7eb   :  { %5852 = vmatmul.mubr.msk.f32.vlgmr.msra.gmra.mxu0 %vm194_vm1, %v2082_v28  ;;  %v6980_v28 = vld [vmem:[%s7463_s6 + $0x48] sm:$0xff] }
 0x7ec   :  { %v6171_v8 = vpop.eup %6170 }
 0x7ed   :  { %v2083_v13 = vmul.f32 %v6171_v8, %v6155_v63  ;;  %v6987_v8 = vld [vmem:[%s7463_s6 + $0x40] sm:$0xff] }
 0x7ef   :  { %5858 = vmatprep.mubr.msk.f32.mxu1 %vm194_vm1, %v2083_v13  ;;  %v6998_v13 = vld [vmem:[%s7463_s6 + $0x68] sm:$0xff] }
 0x7f0   :  { %v6173_v17 = vpop.eup %6172 }
 0x7f1   :  { %v2084_v14 = vmul.f32 %v6173_v17, %v6157_v5  ;;  %v7005_v17 = vld [vmem:[%s7463_s6 + $0x60] sm:$0xff] }
 0x7f3   :  { %5859 = vmatmul.mubr.msk.f32.vlgmr.msra.gmra.mxu1 %vm194_vm1, %v2084_v14  ;;  %v7020_v14 = vld [vmem:[%s7461_s4] sm:$0xff] }
 0x7f4   :  { %5873 = vmatpush3.msra.mxu1 %v99_v27  ;;  %5880 = vmatprep.mubr.msk.f32.mxu1 %vm108_vm0, %v6737_v57  ;;  %v103_v57 = vld [vmem:[%s7459_s2 + $0x138] sm:$0xff]  ;;  %v6947_v27 = vld [vmem:[%s7462_s5] sm:$0xff] }
 0x7f5   :  { %5874 = vmatprep.subr.mxu1 %v98_v4  ;;  %5861 = vmatprep.subr.mxu0 %v103_v57 }
 0x7f6   :  { %5875 = vmatpush3.msra.mxu1 %v98_v4  ;;  %5862 = vmatpush3.msra.mxu0 %v103_v57 }
 0x7f7   :  { %5876 = vmatprep.subr.mxu1 %v97_v18  ;;  %5863 = vmatprep.subr.mxu0 %v102_v6 }
 0x7f8   :  { %5877 = vmatpush3.msra.mxu1 %v97_v18  ;;  %5864 = vmatpush3.msra.mxu0 %v102_v6  ;;  %v7033_v6 = vld [vmem:[%s7461_s4 + $0x8] sm:$0xf] }
 0x7f9   :  { %5878 = vmatprep.subr.mxu1 %v96_v16  ;;  %5865 = vmatprep.subr.mxu0 %v101_v12 }
 0x7fa   :  { %5879 = vmatpush3.msra.mxu1 %v96_v16  ;;  %5866 = vmatpush3.msra.mxu0 %v101_v12  ;;  %v7038_v12 = vld [vmem:[%s7463_s6 + $0x38] sm:$0xff] }
 0x7fb   :  { %5881 = vmatmul.mubr.msk.f32.vlgmr.msra.gmra.mxu1 %vm108_vm0, %v6739_v0  ;;  %v100_v0 = vld [vmem:[%s7459_s2 + $0x120] sm:$0xff] }
 0x7fc   :  { %5867 = vmatprep.subr.mxu0 %v100_v0  ;;  %5894 = vmatprep.mubr.msk.f32.mxu1 %vm2714_vm3, %v7020_v14 }
 0x7fd   :  { %5868 = vmatpush3.msra.mxu0 %v100_v0  ;;  %v7043_v0 = vld [vmem:[%s7463_s6 + $0x30] sm:$0xff] }
 0x7fe   :  { %5883 = vmatprep.subr.mxu0 %v2606_v25 }
 0x8a0   :  { %v5839_v22 = vpop.f32.mrf.mxu0 }
 0x8a1   :  { %v2416_v40 = vsel %vm108_vm0, %v5839_v22, 0.0  ;;  %v7062_v22 = vld [vmem:[%s7463_s6 + $0x50] sm:$0xff] }
 0x8a2   :  { %v2157_v30 = vpop.f32.mrf.mxu0 }
 0x8a3   :  { %v2409_v41 = vsel %vm108_vm0, %v2157_v30, 0.0 }
 0x8a6   :  { %v5846_v35 = vpop.f32.mrf.mxu1 }
 0x8a7   :  { %v2417_v47 = vsel %vm108_vm0, %v5846_v35, 0.0 }
 0x8a8   :  { %v2238_v43 = vpop.f32.mrf.mxu1  ;;  %v2418_v44 = vadd.f32 %v2417_v47, %v2416_v40 }
 0x8a9   :  { %v2410_v52 = vsel %vm108_vm0, %v2238_v43, 0.0  ;;  %v7083_v43 = vpop.trf.xlu0 }
 0x8aa   :  { %v2411_v63 = vadd.f32 %v2410_v52, %v2409_v41 }
 0x8ab   :  { %v5853_v42 = vpop.f32.mrf.mxu0 }
 0x8ac   :  { %v2419_v36 = vsel %vm108_vm0, %v5853_v42, 0.0 }
 0x8ad   :  { %v2319_v20 = vpop.f32.mrf.mxu0  ;;  %v2420_v19 = vadd.f32 %v2419_v36, %v2418_v44 }
 0x8ae   :  { %v2412_v2 = vsel %vm108_vm0, %v2319_v20, 0.0 }
 0x8af   :  { %v2413_v62 = vadd.f32 %v2412_v2, %v2411_v63 }
 0x8b3   :  { %v5860_v5 = vpop.f32.mrf.mxu1 }
 0x8b4   :  { %v2421_v11 = vsel %vm108_vm0, %v5860_v5, 0.0 }
 0x8b5   :  { %v2422_v38 = vadd.f32 %v2421_v11, %v2420_v19  ;;  %v2400_v15 = vpop.f32.mrf.mxu1 }
 0x8b6   :  { %v2414_v55 = vsel %vm108_vm0, %v2400_v15, 0.0 }
 0x8b7   :  { %v2424_v53 = vmul.f32 0.25, %v2422_v38  ;;  %v2415_v46 = vadd.f32 %v2414_v55, %v2413_v62  ;;  %v3297_v55 = vstv %s3296_s29 }
 0x8b9   :  { %v2426_v1 = vadd.f32 %v6730_v39, %v2424_v53  ;;  %v2423_v50 = vmul.f32 0.25, %v2415_v46  ;;  %v5330_v53 = vld [vmem:[%s7461_s4 + $0x10] sm:$0xff]  ;;  %v3317_v46 = vstv %s5353_s30 }
 0x8bb   :  { %v2428_v54 = vadd.f32 %v2426_v1, %v1459_v49  ;;  %v2425_v21 = vadd.f32 %v6730_v39, %v2423_v50  ;;  %v6959_v39 = vld [vmem:[%s7462_s5 + $0x8] sm:$0xf]  ;;  %v7096_v36 = vpop.f32.mrf.mxu1  ;;  %v3337_v1 = vstv %s7110_s9  ;;  %v3357_v50 = vstv %s7112_s10 }
 0x8bc   :  { %7491 = vst [vmem:[#allocation10_spill] sm:$0xff] %v7096_v36 }
 0x8bd   :  { %v2427_v3 = vadd.f32 %v2425_v21, %v1454_v7  ;;  %v2430_v59 = vmul.f32 0.5, %v2428_v54  ;;  %v7098_v41 = vpop.f32.mrf.mxu1  ;;  %v7126_v54 = vmul.f32 %v5331_v61, %v3297_v55  ;;  %v7128_v21 = vmul.f32 %v5330_v53, %v3297_v55 }
 0x8be   :  { %7492 = vst [vmem:[#allocation11_spill] sm:$0xff] %v7098_v41 }
 0x8bf   :  { %v2429_v45 = vmul.f32 0.5, %v2427_v3  ;;  %v2432_v37 = vmax.f32 %v2430_v59, 0.0  ;;  %v7130_v3 = vmul.f32 %v5330_v53, %v3317_v46  ;;  %v7132_v59 = vmul.f32 %v5331_v61, %v3317_v46 }
 0x8c0   :  { %v7142_v46 = vmul.f32 %v5330_v53, %v3337_v1 }
 0x8c1   :  { %v2431_v51 = vmax.f32 %v2429_v45, 0.0 }
 0x8c3   :  { %5869 = vmatprep.mubr.msk.f32.mxu0 %vm108_vm0, %v2431_v51 }
 0x8c4   :  { %5870 = vmatmul.mubr.msk.f32.vlgmr.msra.gmra.mxu0 %vm108_vm0, %v2432_v37 }
 0x8c5   :  { %5884 = vmatpush3.msra.mxu0 %v2606_v25  ;;  %5887 = vmatprep.mubr.msk.f32.mxu0 %vm194_vm1, %v6947_v27 }
 0x8c6   :  { %5885 = vmatprep.subr.mxu0 %v2605_v23 }
 0x8c7   :  { %5886 = vmatpush3.msra.mxu0 %v2605_v23 }
 0x8c8   :  { %5888 = vmatmul.mubr.msk.f32.vlgmr.msra.gmra.mxu0 %vm194_vm1, %v6959_v39  ;;  %5897 = vmatprep.subr.mxu0 %v6964_v24 }
 0x8c9   :  { %5898 = vmatpush3.msra.mxu0 %v6964_v24  ;;  %5901 = vmatprep.mubr.msk.f32.mxu0 %vm194_vm1, %v6947_v27 }
 0x8ca   :  { %5899 = vmatprep.subr.mxu0 %v6969_v10 }
 0x8cb   :  { %5900 = vmatpush3.msra.mxu0 %v6969_v10 }
 0x8cc   :  { %5902 = vmatmul.mubr.msk.f32.vlgmr.msra.gmra.mxu0 %vm194_vm1, %v6959_v39  ;;  %5911 = vmatprep.subr.mxu0 %v6980_v28 }
 0x8cd   :  { %5912 = vmatpush3.msra.mxu0 %v6980_v28  ;;  %5915 = vmatprep.mubr.msk.f32.mxu0 %vm194_vm1, %v6947_v27 }
 0x8ce   :  { %5913 = vmatprep.subr.mxu0 %v6987_v8 }
 0x8cf   :  { %5914 = vmatpush3.msra.mxu0 %v6987_v8 }
 0x8d0   :  { %5916 = vmatmul.mubr.msk.f32.vlgmr.msra.gmra.mxu0 %vm194_vm1, %v6959_v39  ;;  %5925 = vmatprep.subr.mxu0 %v6998_v13 }
 0x8d1   :  { %5926 = vmatpush3.msra.mxu0 %v6998_v13  ;;  %5929 = vmatprep.mubr.msk.f32.mxu0 %vm194_vm1, %v6947_v27 }
 0x8d2   :  { %5927 = vmatprep.subr.mxu0 %v7005_v17 }
 0x8d3   :  { %5928 = vmatpush3.msra.mxu0 %v7005_v17 }
 0x8d4   :  { %5930 = vmatmul.mubr.msk.f32.vlgmr.msra.gmra.mxu0 %vm194_vm1, %v6959_v39 }
 0x984   :  { %v7024_v4 = vpop.f32.mrf.mxu0 }
 0x985   :  { %7489 = vst [vmem:[#allocation8_spill] sm:$0xff] %v7024_v4 }
 0x986   :  { %v7026_v18 = vpop.f32.mrf.mxu0 }
 0x987   :  { %7490 = vst [vmem:[#allocation9_spill] sm:$0xff] %v7026_v18 }
 0x988   :  { %v5889_v16 = vpop.f32.mrf.mxu0 }
 0x989   :  { %5890 = vmatprep.subr.msk.mxu1 %vm2721_vm4, %v5889_v16 }
 0x98a   :  { %v2701_v57 = vpop.f32.mrf.mxu0  ;;  %5891 = vmatpush3.msk.msra.mxu1 %vm2721_vm4, %v5889_v16  ;;  %v7140_v16 = vmul.f32 %v5331_v61, %v3357_v50 }
 0x98b   :  { %5892 = vmatprep.subr.mxu1 %v2701_v57 }
 0x98c   :  { %5893 = vmatpush3.msra.mxu1 %v2701_v57  ;;  %v5903_v25 = vpop.f32.mrf.mxu0  ;;  %7493 = vst [vmem:[#allocation12_spill] sm:$0xff] %v7140_v16 }
 0x98d   :  { %5895 = vmatmul.mubr.msk.f32.vlgmr.msra.gmra.mxu1 %vm2714_vm3, %v7033_v6  ;;  %5904 = vmatprep.subr.mxu1 %v7038_v12 }
 0x98e   :  { %5905 = vmatpush3.msra.mxu1 %v7038_v12  ;;  %5908 = vmatprep.mubr.msk.f32.mxu1 %vm194_vm1, %v6947_v27  ;;  %v2866_v26 = vpop.f32.mrf.mxu0 }
 0x98f   :  { %5906 = vmatprep.subr.mxu1 %v7043_v0  ;;  %5939 = vmatprep.subr.msk.mxu0 %vm2721_vm4, %v5903_v25 }
 0x990   :  { %5907 = vmatpush3.msra.mxu1 %v7043_v0  ;;  %v5917_v30 = vpop.f32.mrf.mxu0  ;;  %5940 = vmatpush3.msk.msra.mxu0 %vm2721_vm4, %v5903_v25 }
 0x991   :  { %5909 = vmatmul.mubr.msk.f32.vlgmr.msra.gmra.mxu1 %vm194_vm1, %v6959_v39  ;;  %5918 = vmatprep.subr.mxu1 %v7054_v58 }
 0x992   :  { %5919 = vmatpush3.msra.mxu1 %v7054_v58  ;;  %5922 = vmatprep.mubr.msk.f32.mxu1 %vm194_vm1, %v6947_v27  ;;  %v3016_v35 = vpop.f32.mrf.mxu0 }
 0x993   :  { %5920 = vmatprep.subr.mxu1 %v7062_v22  ;;  %5941 = vmatprep.subr.mxu0 %v2866_v26 }
 0x994   :  { %5921 = vmatpush3.msra.mxu1 %v7062_v22  ;;  %v5931_v42 = vpop.f32.mrf.mxu0  ;;  %5942 = vmatpush3.msra.mxu0 %v2866_v26 }
 0x995   :  { %5923 = vmatmul.mubr.msk.f32.vlgmr.msra.gmra.mxu1 %vm194_vm1, %v6959_v39  ;;  %5932 = vmatprep.subr.mxu1 %v7482_v9 }
 0x996   :  { %5933 = vmatpush3.xpose.msk.msra.mxu1 %vm194_vm1, %v6959_v39  ;;  %5936 = vmatprep.mubr.msk.f32.mxu1 %vm6269_vm2, %v7482_v9  ;;  %v3166_v47 = vpop.f32.mrf.mxu0  ;;  %v7138_v39 = vmul.f32 %v5331_v61, %v3337_v1 }
 0x997   :  { %5934 = vmatprep.subr.mxu1 %v7482_v9  ;;  %3287 = vperm.xlu1 %6096, %v5931_v42  }
 0x99a   :  { %5935 = vmatpush3.xpose.msk.msra.mxu1 %vm194_vm1, %v6947_v27 }
 0x99b   :  { %6097 = vset.pattern.permute.xlu1 %v7483_v31  ;;  %5953 = vmatprep.subr.msk.mxu1 %vm2721_vm4, %v5917_v30 }
 0x99c   :  { %3307 = vperm.xlu1 %6097, %v5931_v42  }
 0x99d   :  { %5937 = vmatmul.mubr.msk.f32.vlgmr.msra.gmra.mxu1 %vm194_vm1, %v7083_v43 }
 0x99e   :  { %5954 = vmatpush3.msk.msra.mxu1 %vm2721_vm4, %v5917_v30 }
 0x99f   :  { %5955 = vmatprep.subr.mxu1 %v3016_v35 }
 0x9a0   :  { %6098 = vset.pattern.permute.xlu1 %v7484_v32  ;;  %5956 = vmatpush3.msra.mxu1 %v3016_v35 }
 0x9a1   :  { %3327 = vperm.xlu1 %6098, %v5931_v42  }
 0x9a5   :  { %6099 = vset.pattern.permute.xlu1 %v7486_v34 }
 0x9a6   :  { %3282 = vperm.xlu1 %6099, %v3166_v47  }
 0x9aa   :  { %6100 = vset.pattern.permute.xlu1 %v7483_v31 }
 0x9ab   :  { %3303 = vperm.xlu1 %6100, %v3166_v47  }
 0x9af   :  { %6101 = vset.pattern.permute.xlu1 %v7484_v32 }
 0x9b0   :  { %3323 = vperm.xlu1 %6101, %v3166_v47  }
 0x9b4   :  { %6102 = vset.pattern.permute.xlu1 %v7485_v33 }
 0x9b5   :  { %3343 = vperm.xlu1 %6102, %v3166_v47  }
 0x9b9   :  { %3347 = vperm.xlu1 %6102, %v5931_v42  }
 0x9bd   :  { %6103 = vset.pattern.permute.xlu1 %v7483_v31 }
 0xa12   :  { %v3288_v20 = vpop.permute.xlu1 %3287 }
 0xa17   :  { %v3308_v40 = vpop.permute.xlu1 %3307 }
 0xa1c   :  { %v3328_v52 = vpop.permute.xlu1 %3327 }
 0xa21   :  { %v3283_v44 = vpop.permute.xlu1 %3282 }
 0xa26   :  { %v3304_v63 = vpop.permute.xlu1 %3303 }
 0xa2b   :  { %v3324_v62 = vpop.permute.xlu1 %3323 }
 0xa30   :  { %v3344_v15 = vpop.permute.xlu1 %3343 }
 0xa34   :  { %v3348_v57 = vpop.permute.xlu1 %3347 }
 0xa4d   :  { %v7100_v2 = vpop.f32.mrf.mxu1 }
 0xa4f   :  { %v7102_v19 = vpop.f32.mrf.mxu1 }
 0xa51   :  { %v7104_v5 = vpop.f32.mrf.mxu1 }
 0xa52   :  { %5946 = vmatprep.subr.msk.mxu0 %vm2721_vm4, %v7104_v5 }
 0xa53   :  { %v7108_v11 = vpop.f32.mrf.mxu1 }
 0xa55   :  { %v7114_v38 = vpop.f32.mrf.mxu1 }
 0xa57   :  { %v7122_v49 = vpop.f32.mrf.mxu1 }
 0xa5d   :  { %v3276_v7 = vpop.f32.mrf.mxu1 }
 0xa5e   :  { %v3293_v45 = vrot.slane %v3276_v7, %v6585_v56  ;;  %v3313_v51 = vrot.slane %v3276_v7, %v6594_v60  ;;  %v3333_v37 = vrot.slane %v3276_v7, %v6618_v48  ;;  %v3353_v27 = vrot.slane %v3276_v7, %v7488_v29 }
 0xa5f   :  { %v5938_v23 = vpop.f32.mrf.mxu1 }
 0xa60   :  { %v3294_v25 = vadd.f32 %v3293_v45, %v3283_v44  ;;  %v3295_v26 = vadd.f32 %v3293_v45, %v3288_v20  ;;  %v3314_v30 = vadd.f32 %v3313_v51, %v3304_v63  ;;  %v3315_v35 = vadd.f32 %v3313_v51, %v3308_v40  ;;  %v7151_v44 = vld [vmem:[%s7461_s4 + $0x28] sm:$0xf]  ;;  %v7156_v20 = vld [vmem:[%s7461_s4 + $0x20] sm:$0xff] }
 0xa61   :  { %v3334_v42 = vadd.f32 %v3333_v37, %v3324_v62  ;;  %v3335_v47 = vadd.f32 %v3333_v37, %v3328_v52  ;;  %v3355_v55 = vadd.f32 %v3353_v27, %v3348_v57  ;;  %v7160_v63 = vmul.f32 %v5330_v53, %v3357_v50 }
 0xa62   :  { %v3301_v36 = vadd.f32 %v7126_v54, %v3295_v26  ;;  %v3300_v4 = vadd.f32 %v7128_v21, %v3294_v25  ;;  %v3320_v7 = vadd.f32 %v7130_v3, %v3314_v30  ;;  %v3321_v23 = vadd.f32 %v7132_v59, %v3315_v35 }
 0xa63   :  { %v3341_v40 = vadd.f32 %v7138_v39, %v3335_v47  ;;  %v3361_v52 = vadd.f32 %v7140_v16, %v3355_v55  ;;  %v3354_v62 = vadd.f32 %v3353_v27, %v3344_v15  ;;  %v3340_v25 = vadd.f32 %v7142_v46, %v3334_v42 }
 0xa64   :  { %v3363_v61 = vmul.f32 0.2, %v3301_v36  ;;  %v3362_v1 = vmul.f32 0.2, %v3300_v4  ;;  %v3364_v45 = vmul.f32 0.2, %v3320_v7 }
 0xa65   :  { %v3367_v51 = vmul.f32 0.2, %v3341_v40  ;;  %v3369_v37 = vmul.f32 0.2, %v3361_v52  ;;  %v3365_v57 = vmul.f32 0.2, %v3321_v23  ;;  %v3360_v27 = vadd.f32 %v7160_v63, %v3354_v62 }
 0xa66   :  { %v3371_v26 = vmax.f32 %v3301_v36, %v3363_v61  ;;  %v3370_v30 = vmax.f32 %v3300_v4, %v3362_v1  ;;  %v3372_v35 = vmax.f32 %v3320_v7, %v3364_v45  ;;  %v3366_v15 = vmul.f32 0.2, %v3340_v25 }
 0xa67   :  { %v3375_v41 = vmax.f32 %v3341_v40, %v3367_v51  ;;  %v3377_v53 = vmax.f32 %v3361_v52, %v3369_v37  ;;  %v3373_v50 = vmax.f32 %v3321_v23, %v3365_v57  ;;  %v3368_v7 = vmul.f32 0.2, %v3360_v27 }
 0xa68   :  { %v3379_v47 = vadd.f32 %v7151_v44, %v3371_v26  ;;  %v3378_v55 = vadd.f32 %v7156_v20, %v3370_v30  ;;  %v3380_v4 = vadd.f32 %v7156_v20, %v3372_v35  ;;  %v3374_v36 = vmax.f32 %v3340_v25, %v3366_v15 }
 0xa69   :  { %v3383_v42 = vadd.f32 %v7151_v44, %v3375_v41  ;;  %v3385_v23 = vadd.f32 %v7151_v44, %v3377_v53  ;;  %v3381_v62 = vadd.f32 %v7151_v44, %v3373_v50 }
 0xa6a   :  { %v3390_v18 = vsel %vm3389_vm5, %v3379_v47, -inf  ;;  %v3386_v16 = vsel %vm2714_vm3, %v3378_v55, -inf  ;;  %v3393_v52 = vsel %vm2714_vm3, %v3380_v4, -inf  ;;  %v3382_v1 = vadd.f32 %v7156_v20, %v3374_v36 }
 0xa6b   :  { %3391 = vmax.xlane.f32.xlu0 %v3390_v18  ;;  %3387 = vmax.xlane.f32.xlu1 %v3386_v16  ;;  %v3402_v40 = vsel %vm3389_vm5, %v3383_v42, -inf  ;;  %v3408_v61 = vsel %vm3389_vm5, %v3385_v23, -inf  ;;  %v3396_v41 = vsel %vm3389_vm5, %v3381_v62, -inf  ;;  %v3376_v18 = vmax.f32 %v3360_v27, %v3368_v7 }
 0xa6c   :  { %v3399_v16 = vsel %vm2714_vm3, %v3382_v1, -inf }
 0xa6d   :  { %v3384_v45 = vadd.f32 %v7156_v20, %v3376_v18 }
 0xa6f   :  { %3403 = vmax.xlane.f32.xlu0 %v3402_v40  ;;  %3394 = vmax.xlane.f32.xlu1 %v3393_v52  ;;  %v3405_v51 = vsel %vm2714_vm3, %v3384_v45, -inf }
 0xa73   :  { %3409 = vmax.xlane.f32.xlu0 %v3408_v61  ;;  %3397 = vmax.xlane.f32.xlu1 %v3396_v41 }
 0xa77   :  { %3400 = vmax.xlane.f32.xlu1 %v3399_v16 }
 0xa7b   :  { %3406 = vmax.xlane.f32.xlu1 %v3405_v51 }
 0xaf4   :  { %v3392_v37 = vpop.xlane.xlu0 %3391  ;;  %v3388_v57 = vpop.xlane.xlu1 %3387 }
 0xaf5   :  { %v3412_v25 = vsub.f32 %v3379_v47, %v3392_v37  ;;  %v3411_v26 = vsub.f32 %v3378_v55, %v3388_v57 }
 0xaf7   :  { %v3421_v30 = vmul.f32 1.442695, %v3412_v25  ;;  %v3419_v35 = vmul.f32 1.442695, %v3411_v26 }
 0xaf8   :  { %v3404_v53 = vpop.xlane.xlu0 %3403  ;;  %v3395_v50 = vpop.xlane.xlu1 %3394 }
 0xaf9   :  { %6174 = vpow2.f32 %v3421_v30  ;;  %v3413_v15 = vsub.f32 %v3380_v4, %v3395_v50  ;;  %v3416_v36 = vsub.f32 %v3383_v42, %v3404_v53 }
 0xafa   :  { %6176 = vpow2.f32 %v3419_v35 }
 0xafb   :  { %v3423_v27 = vmul.f32 1.442695, %v3413_v15  ;;  %v3429_v41 = vmul.f32 1.442695, %v3416_v36 }
 0xafc   :  { %v3398_v7 = vpop.xlane.xlu1 %3397  ;;  %v3410_v40 = vpop.xlane.xlu0 %3409 }
 0xafd   :  { %v3414_v52 = vsub.f32 %v3381_v62, %v3398_v7  ;;  %6178 = vpow2.f32 %v3423_v27  ;;  %v3418_v18 = vsub.f32 %v3385_v23, %v3410_v40 }
 0xaff   :  { %v3425_v61 = vmul.f32 1.442695, %v3414_v52  ;;  %v3433_v55 = vmul.f32 1.442695, %v3418_v18 }
 0xb00   :  { %v3401_v16 = vpop.xlane.xlu1 %3400 }
 0xb01   :  { %v3415_v51 = vsub.f32 %v3382_v1, %v3401_v16  ;;  %6180 = vpow2.f32 %v3425_v61 }
 0xb02   :  { %6182 = vpow2.f32 %v3429_v41 }
 0xb03   :  { %v3427_v47 = vmul.f32 1.442695, %v3415_v51 }
 0xb04   :  { %v3407_v37 = vpop.xlane.xlu1 %3406 }
 0xb05   :  { %6184 = vpow2.f32 %v3427_v47  ;;  %v3417_v57 = vsub.f32 %v3384_v45, %v3407_v37 }
 0xb06   :  { %v6175_v4 = vpop.eup %6174  ;;  %6186 = vpow2.f32 %v3433_v55 }
 0xb07   :  { %v6177_v25 = vpop.eup %6176  ;;  %v3431_v26 = vmul.f32 1.442695, %v3417_v57  ;;  %v3438_v42 = vsel %vm3389_vm5, %v6175_v4, 0.0 }
 0xb08   :  { %3439 = vadd.xlane.f32.xlu0 %v3438_v42  ;;  %v3435_v62 = vsel %vm2714_vm3, %v6177_v25, 0.0 }
 0xb09   :  { %6188 = vpow2.f32 %v3431_v26  ;;  %3436 = vadd.xlane.f32.xlu1 %v3435_v62 }
 0xb0a   :  { %v6179_v23 = vpop.eup %6178 }
 0xb0b   :  { %v3441_v1 = vsel %vm2714_vm3, %v6179_v23, 0.0 }
 0xb0d   :  { %3442 = vadd.xlane.f32.xlu1 %v3441_v1 }
 0xb0e   :  { %v6181_v30 = vpop.eup %6180 }
 0xb0f   :  { %v3444_v35 = vsel %vm3389_vm5, %v6181_v30, 0.0  ;;  %v6183_v53 = vpop.eup %6182 }
 0xb10   :  { %3445 = vadd.xlane.f32.xlu0 %v3444_v35  ;;  %v3450_v15 = vsel %vm3389_vm5, %v6183_v53, 0.0 }
 0xb12   :  { %v6185_v45 = vpop.eup %6184 }
 0xb13   :  { %v3447_v50 = vsel %vm2714_vm3, %v6185_v45, 0.0  ;;  %v6187_v27 = vpop.eup %6186 }
 0xb14   :  { %3448 = vadd.xlane.f32.xlu1 %v3447_v50  ;;  %3451 = vadd.xlane.f32.xlu0 %v3450_v15  ;;  %v3456_v40 = vsel %vm3389_vm5, %v6187_v27, 0.0 }
 0xb16   :  { %v6189_v36 = vpop.eup %6188 }
 0xb17   :  { %v3453_v7 = vsel %vm2714_vm3, %v6189_v36, 0.0 }
 0xb18   :  { %3454 = vadd.xlane.f32.xlu1 %v3453_v7  ;;  %3457 = vadd.xlane.f32.xlu0 %v3456_v40 }
 0xb91   :  { %v3440_v52 = vpop.xlane.xlu0 %3439 }
 0xb92   :  { %6190 = vrcp.f32 %v3440_v52  ;;  %v3437_v61 = vpop.xlane.xlu1 %3436 }
 0xb93   :  { %6192 = vrcp.f32 %v3437_v61 }
 0xb96   :  { %v3443_v41 = vpop.xlane.xlu1 %3442 }
 0xb97   :  { %6194 = vrcp.f32 %v3443_v41 }
 0xb99   :  { %v3446_v18 = vpop.xlane.xlu0 %3445 }
 0xb9a   :  { %6196 = vrcp.f32 %v3446_v18 }
 0xb9d   :  { %v3449_v16 = vpop.xlane.xlu1 %3448  ;;  %v3452_v51 = vpop.xlane.xlu0 %3451 }
 0xb9e   :  { %6198 = vrcp.f32 %v3449_v16 }
 0xb9f   :  { %v6191_v47 = vpop.eup %6190  ;;  %6200 = vrcp.f32 %v3452_v51 }
 0xba0   :  { %v6193_v55 = vpop.eup %6192  ;;  %v3468_v37 = vmul.f32 %v6191_v47, %v6175_v4 }
 0xba1   :  { %v3455_v57 = vpop.xlane.xlu1 %3454  ;;  %v3467_v26 = vmul.f32 %v6193_v55, %v6177_v25  ;;  %v3458_v42 = vpop.xlane.xlu0 %3457 }
 0xba2   :  { %6202 = vrcp.f32 %v3455_v57 }
 0xba3   :  { %6204 = vrcp.f32 %v3458_v42  ;;  %5943 = vmatprep.mubr.msk.f32.mxu0 %vm2714_vm3, %v3467_v26 }
 0xba4   :  { %v6195_v62 = vpop.eup %6194  ;;  %5944 = vmatmul.mubr.msk.f32.vlgmr.msra.gmra.mxu0 %vm2714_vm3, %v3468_v37 }
 0xba5   :  { %5947 = vmatpush3.msk.msra.mxu0 %vm2721_vm4, %v7104_v5  ;;  %v3469_v1 = vmul.f32 %v6195_v62, %v6179_v23 }
 0xba6   :  { %5948 = vmatprep.subr.mxu0 %v7108_v11 }
 0xba7   :  { %5949 = vmatpush3.msra.mxu0 %v7108_v11  ;;  %5950 = vmatprep.mubr.msk.f32.mxu0 %vm2714_vm3, %v3469_v1  ;;  %v6197_v4 = vpop.eup %6196 }
 0xba8   :  { %5960 = vmatprep.subr.msk.mxu0 %vm2721_vm4, %v7114_v38  ;;  %v3470_v25 = vmul.f32 %v6197_v4, %v6181_v30  ;;  %v5336_v4 = vld [vmem:[%s7463_s6 + $0xa0] ss:$0 sm:$0xff] }
 0xbaa   :  { %5951 = vmatmul.mubr.msk.f32.vlgmr.msra.gmra.mxu0 %vm2714_vm3, %v3470_v25  ;;  %v7228_v25 = vld [vmem:[%s7463_s6 + $0xa2] ss:$0 sm:$0xff] }
 0xbab   :  { %v6199_v35 = vpop.eup %6198  ;;  %5961 = vmatpush3.msk.msra.mxu0 %vm2721_vm4, %v7114_v38  ;;  %v2608_v38 = vld [vmem:[%s7463_s6 + $0x18] sm:$0xff] }
 0xbac   :  { %v6201_v50 = vpop.eup %6200  ;;  %v3471_v5 = vmul.f32 %v6199_v35, %v6185_v45  ;;  %5962 = vmatprep.subr.mxu0 %v7122_v49  ;;  %5967 = vmatprep.subr.mxu1 %v2608_v38 }
 0xbad   :  { %v3472_v23 = vmul.f32 %v6201_v50, %v6183_v53  ;;  %5963 = vmatpush3.msra.mxu0 %v7122_v49  ;;  %v2607_v49 = vld [vmem:[%s7463_s6 + $0x10] sm:$0xff] }
 0xbae   :  { %5957 = vmatprep.mubr.msk.f32.mxu1 %vm2714_vm3, %v3471_v5 }
 0xbaf   :  { %v6203_v11 = vpop.eup %6202  ;;  %5958 = vmatmul.mubr.msk.f32.vlgmr.msra.gmra.mxu1 %vm2714_vm3, %v3472_v23  ;;  %v2797_v23 = vadd.f32 %v7100_v2, %v5336_v4 }
 0xbb0   :  { %v6205_v15 = vpop.eup %6204  ;;  %v3473_v30 = vmul.f32 %v6203_v11, %v6189_v36  ;;  %5968 = vmatpush3.msra.mxu1 %v2608_v38 }
 0xbb1   :  { %v3474_v7 = vmul.f32 %v6205_v15, %v6187_v27  ;;  %5969 = vmatprep.subr.mxu1 %v2607_v49 }
 0xbb2   :  { %5964 = vmatprep.mubr.msk.f32.mxu0 %vm2714_vm3, %v3473_v30  ;;  %5970 = vmatpush3.msra.mxu1 %v2607_v49  ;;  %v2792_v30 = vadd.f32 %v5336_v4, %v7102_v19 }
 0xbb3   :  { %5965 = vmatmul.mubr.msk.f32.vlgmr.msra.gmra.mxu0 %vm2714_vm3, %v3474_v7  ;;  %5981 = vmatprep.subr.mxu1 %v6964_v24 }
 0xbb4   :  { %5978 = vmatprep.mubr.msk.f32.mxu0 %vm2714_vm3, %v7020_v14 }
 0xc64   :  { %v5945_v53 = vpop.f32.mrf.mxu0 }
 0xc65   :  { %v3819_v52 = vsel %vm3818_vm6, %v5945_v53, 0.0 }
 0xc66   :  { %v3550_v45 = vpop.f32.mrf.mxu0 }
 0xc67   :  { %v3811_v51 = vsel %vm194_vm1, %v3550_v45, 0.0 }
 0xc6a   :  { %v5952_v27 = vpop.f32.mrf.mxu0 }
 0xc6b   :  { %v3820_v14 = vsel %vm3818_vm6, %v5952_v27, 0.0 }
 0xc6c   :  { %v3634_v36 = vpop.f32.mrf.mxu0  ;;  %v3821_v18 = vadd.f32 %v3820_v14, %v3819_v52 }
 0xc6d   :  { %v3812_v61 = vsel %vm194_vm1, %v3634_v36, 0.0 }
 0xc6e   :  { %v3813_v55 = vadd.f32 %v3812_v61, %v3811_v51 }
 0xc6f   :  { %v5959_v40 = vpop.f32.mrf.mxu1 }
 0xc70   :  { %v3822_v41 = vsel %vm3818_vm6, %v5959_v40, 0.0 }
 0xc71   :  { %v3718_v16 = vpop.f32.mrf.mxu1  ;;  %v3823_v37 = vadd.f32 %v3822_v41, %v3821_v18 }
 0xc72   :  { %v3814_v47 = vsel %vm194_vm1, %v3718_v16, 0.0 }
 0xc73   :  { %v5966_v57 = vpop.f32.mrf.mxu0  ;;  %v3815_v42 = vadd.f32 %v3814_v47, %v3813_v55 }
 0xc74   :  { %v3824_v26 = vsel %vm3818_vm6, %v5966_v57, 0.0 }
 0xc75   :  { %v3825_v62 = vadd.f32 %v3824_v26, %v3823_v37  ;;  %v3802_v1 = vpop.f32.mrf.mxu0 }
 0xc76   :  { %v3816_v35 = vsel %vm194_vm1, %v3802_v1, 0.0 }
 0xc77   :  { %v3827_v50 = vmul.f32 0.25, %v3825_v62  ;;  %v3817_v5 = vadd.f32 %v3816_v35, %v3815_v42 }
 0xc79   :  { %v3833_v11 = vadd.f32 %v7228_v25, %v3827_v50  ;;  %v3826_v15 = vmul.f32 0.25, %v3817_v5 }
 0xc7b   :  { %v3835_v7 = vadd.f32 %v3833_v11, %v2797_v23  ;;  %v3832_v38 = vadd.f32 %v7228_v25, %v3826_v15  ;;  %v7494_v15 = vld [vmem:[#allocation12_spill] sm:$0xff] }
 0xc7d   :  { %v3834_v49 = vadd.f32 %v3832_v38, %v2792_v30  ;;  %v3837_v53 = vmul.f32 0.5, %v3835_v7 }
 0xc7f   :  { %v3836_v45 = vmul.f32 0.5, %v3834_v49  ;;  %v7237_v36 = vmax.f32 %v3837_v53, 0.0 }
 0xc81   :  { %v7235_v27 = vmax.f32 %v3836_v45, 0.0 }
 0xc83   :  { %5971 = vmatprep.mubr.msk.f32.mxu1 %vm194_vm1, %v7235_v27 }
 0xc84   :  { %5972 = vmatmul.mubr.msk.f32.vlgmr.msra.gmra.mxu1 %vm194_vm1, %v7237_v36 }
 0xc85   :  { %5982 = vmatpush3.msra.mxu1 %v6964_v24  ;;  %5985 = vmatprep.mubr.msk.f32.mxu1 %vm194_vm1, %v7235_v27 }
 0xc86   :  { %5983 = vmatprep.subr.mxu1 %v6969_v10 }
 0xc87   :  { %5984 = vmatpush3.msra.mxu1 %v6969_v10 }
 0xc88   :  { %5986 = vmatmul.mubr.msk.f32.vlgmr.msra.gmra.mxu1 %vm194_vm1, %v7237_v36  ;;  %5995 = vmatprep.subr.mxu1 %v6980_v28 }
 0xc89   :  { %5996 = vmatpush3.msra.mxu1 %v6980_v28  ;;  %5999 = vmatprep.mubr.msk.f32.mxu1 %vm194_vm1, %v7235_v27 }
 0xc8a   :  { %5997 = vmatprep.subr.mxu1 %v6987_v8 }
 0xc8b   :  { %5998 = vmatpush3.msra.mxu1 %v6987_v8 }
 0xc8c   :  { %6000 = vmatmul.mubr.msk.f32.vlgmr.msra.gmra.mxu1 %vm194_vm1, %v7237_v36  ;;  %6009 = vmatprep.subr.mxu1 %v6998_v13 }
 0xc8d   :  { %6010 = vmatpush3.msra.mxu1 %v6998_v13  ;;  %6013 = vmatprep.mubr.msk.f32.mxu1 %vm194_vm1, %v7235_v27 }
 0xc8e   :  { %6011 = vmatprep.subr.mxu1 %v7005_v17 }
 0xc8f   :  { %6012 = vmatpush3.msra.mxu1 %v7005_v17 }
 0xc90   :  { %6014 = vmatmul.mubr.msk.f32.vlgmr.msra.gmra.mxu1 %vm194_vm1, %v7237_v36 }
 0xd44   :  { %v5973_v24 = vpop.f32.mrf.mxu1 }
 0xd45   :  { %5974 = vmatprep.subr.msk.mxu0 %vm2721_vm4, %v5973_v24 }
 0xd46   :  { %v3912_v10 = vpop.f32.mrf.mxu1  ;;  %5975 = vmatpush3.msk.msra.mxu0 %vm2721_vm4, %v5973_v24 }
 0xd47   :  { %5976 = vmatprep.subr.mxu0 %v3912_v10 }
 0xd48   :  { %5977 = vmatpush3.msra.mxu0 %v3912_v10  ;;  %v5987_v28 = vpop.f32.mrf.mxu1 }
 0xd49   :  { %5979 = vmatmul.mubr.msk.f32.vlgmr.msra.gmra.mxu0 %vm2714_vm3, %v7033_v6  ;;  %5988 = vmatprep.subr.mxu0 %v7038_v12 }
 0xd4a   :  { %6023 = vmatprep.subr.msk.mxu1 %vm2721_vm4, %v5987_v28  ;;  %v4069_v8 = vpop.f32.mrf.mxu1  ;;  %5989 = vmatpush3.msra.mxu0 %v7038_v12 }
 0xd4b   :  { %5992 = vmatprep.mubr.msk.f32.mxu0 %vm194_vm1, %v7235_v27  ;;  %6024 = vmatpush3.msk.msra.mxu1 %vm2721_vm4, %v5987_v28 }
 0xd4c   :  { %5990 = vmatprep.subr.mxu0 %v7043_v0  ;;  %6025 = vmatprep.subr.mxu1 %v4069_v8  ;;  %v6001_v13 = vpop.f32.mrf.mxu1 }
 0xd4d   :  { %5991 = vmatpush3.msra.mxu0 %v7043_v0  ;;  %6026 = vmatpush3.msra.mxu1 %v4069_v8 }
 0xd4e   :  { %5993 = vmatmul.mubr.msk.f32.vlgmr.msra.gmra.mxu0 %vm194_vm1, %v7237_v36  ;;  %6002 = vmatprep.subr.mxu0 %v7054_v58  ;;  %v4219_v17 = vpop.f32.mrf.mxu1 }
 0xd4f   :  { %6003 = vmatpush3.msra.mxu0 %v7054_v58  ;;  %6006 = vmatprep.mubr.msk.f32.mxu0 %vm194_vm1, %v7235_v27 }
 0xd50   :  { %6004 = vmatprep.subr.mxu0 %v7062_v22  ;;  %v6015_v6 = vpop.f32.mrf.mxu1 }
 0xd51   :  { %6005 = vmatpush3.msra.mxu0 %v7062_v22  ;;  %4471 = vperm.xlu1 %6103, %v6015_v6  }
 0xd52   :  { %4455 = vperm.xlu0 %6089, %v6015_v6   ;;  %6007 = vmatmul.mubr.msk.f32.vlgmr.msra.gmra.mxu0 %vm194_vm1, %v7237_v36  ;;  %v4369_v12 = vpop.f32.mrf.mxu1 }
 0xd53   :  { %6016 = vmatprep.subr.mxu0 %v7482_v9  ;;  %6020 = vmatprep.mubr.msk.f32.mxu0 %vm6269_vm2, %v7482_v9 }
 0xd54   :  { %6017 = vmatpush3.xpose.msk.msra.mxu0 %vm194_vm1, %v7237_v36 }
 0xd55   :  { %6104 = vset.pattern.permute.xlu1 %v7484_v32  ;;  %6018 = vmatprep.subr.mxu0 %v7482_v9 }
 0xd56   :  { %6107 = vset.pattern.permute.xlu0 %v7484_v32  ;;  %4487 = vperm.xlu1 %6104, %v6015_v6  }
 0xd57   :  { %4483 = vperm.xlu0 %6107, %v4369_v12  }
 0xd58   :  { %6019 = vmatpush3.xpose.msk.msra.mxu0 %vm194_vm1, %v7235_v27 }
 0xd59   :  { %6037 = vmatprep.subr.msk.mxu0 %vm2721_vm4, %v6001_v13 }
 0xd5a   :  { %6105 = vset.pattern.permute.xlu1 %v7486_v34 }
 0xd5b   :  { %6021 = vmatmul.mubr.msk.f32.vlgmr.msra.gmra.mxu0 %vm194_vm1, %v7083_v43  ;;  %6109 = vset.pattern.permute.xlu0 %v7485_v33 }
 0xd5c   :  { %6038 = vmatpush3.msk.msra.mxu0 %vm2721_vm4, %v6001_v13  ;;  %4503 = vperm.xlu0 %6109, %v6015_v6  }
 0xd5d   :  { %4450 = vperm.xlu1 %6105, %v4369_v12   ;;  %6039 = vmatprep.subr.mxu0 %v4219_v17 }
 0xd5e   :  { %6040 = vmatpush3.msra.mxu0 %v4219_v17 }
 0xd61   :  { %6106 = vset.pattern.permute.xlu1 %v7483_v31 }
 0xd62   :  { %4467 = vperm.xlu1 %6106, %v4369_v12  }
 0xd66   :  { %6108 = vset.pattern.permute.xlu1 %v7485_v33 }
 0xd67   :  { %4499 = vperm.xlu1 %6108, %v4369_v12  }
 0xdcc   :  { %v4472_v9 = vpop.permute.xlu1 %4471 }
 0xdcd   :  { %v4456_v43 = vpop.permute.xlu0 %4455 }
 0xdd1   :  { %v4488_v0 = vpop.permute.xlu1 %4487 }
 0xdd2   :  { %v4484_v19 = vpop.permute.xlu0 %4483 }
 0xdd7   :  { %v4504_v51 = vpop.permute.xlu0 %4503 }
 0xdd8   :  { %v4451_v2 = vpop.permute.xlu1 %4450 }
 0xddd   :  { %v4468_v33 = vpop.permute.xlu1 %4467 }
 0xde2   :  { %v4500_v47 = vpop.permute.xlu1 %4499 }
 0xe09   :  { %v7306_v32 = vpop.f32.mrf.mxu0 }
 0xe0b   :  { %v7308_v34 = vpop.f32.mrf.mxu0 }
 0xe0e   :  { %v7310_v58 = vpop.f32.mrf.mxu0 }
 0xe0f   :  { %6030 = vmatprep.subr.msk.mxu1 %vm2721_vm4, %v7310_v58 }
 0xe10   :  { %v7314_v22 = vpop.f32.mrf.mxu0 }
 0xe12   :  { %v7316_v31 = vpop.f32.mrf.mxu0 }
 0xe14   :  { %v7318_v14 = vpop.f32.mrf.mxu0 }
 0xe1b   :  { %v4444_v40 = vpop.f32.mrf.mxu0 }
 0xe1c   :  { %v4461_v52 = vrot.slane %v4444_v40, %v6585_v56  ;;  %v4477_v61 = vrot.slane %v4444_v40, %v6594_v60  ;;  %v4493_v41 = vrot.slane %v4444_v40, %v6618_v48  ;;  %v4509_v18 = vrot.slane %v4444_v40, %v7488_v29 }
 0xe1d   :  { %v6022_v16 = vpop.f32.mrf.mxu0 }
 0xe1e   :  { %v4462_v55 = vadd.f32 %v4461_v52, %v4451_v2  ;;  %v4463_v37 = vadd.f32 %v4461_v52, %v4456_v43  ;;  %v4478_v57 = vadd.f32 %v4477_v61, %v4468_v33  ;;  %v4479_v26 = vadd.f32 %v4477_v61, %v4472_v9 }
 0xe1f   :  { %v4494_v42 = vadd.f32 %v4493_v41, %v4484_v19  ;;  %v4495_v62 = vadd.f32 %v4493_v41, %v4488_v0  ;;  %v4510_v1 = vadd.f32 %v4509_v18, %v4500_v47  ;;  %v4511_v4 = vadd.f32 %v4509_v18, %v4504_v51 }
 0xe20   :  { %v4465_v35 = vadd.f32 %v4463_v37, %v7126_v54  ;;  %v4464_v56 = vadd.f32 %v4462_v55, %v7128_v21  ;;  %v4481_v60 = vadd.f32 %v4479_v26, %v7132_v59  ;;  %v4480_v48 = vadd.f32 %v4478_v57, %v7130_v3 }
 0xe21   :  { %v4497_v29 = vadd.f32 %v4495_v62, %v7138_v39  ;;  %v4496_v50 = vadd.f32 %v4494_v42, %v7142_v46  ;;  %v4513_v30 = vadd.f32 %v4511_v4, %v7494_v15  ;;  %v4512_v54 = vadd.f32 %v4510_v1, %v7160_v63 }
 0xe22   :  { %v4515_v5 = vmul.f32 0.2, %v4465_v35  ;;  %v4514_v23 = vmul.f32 0.2, %v4464_v56  ;;  %v4517_v11 = vmul.f32 0.2, %v4481_v60 }
 0xe23   :  { %v4516_v7 = vmul.f32 0.2, %v4480_v48  ;;  %v4519_v38 = vmul.f32 0.2, %v4497_v29  ;;  %v4518_v49 = vmul.f32 0.2, %v4496_v50 }
 0xe24   :  { %v4523_v53 = vmax.f32 %v4465_v35, %v4515_v5  ;;  %v4522_v21 = vmax.f32 %v4464_v56, %v4514_v23  ;;  %v4525_v45 = vmax.f32 %v4481_v60, %v4517_v11  ;;  %v4521_v10 = vmul.f32 0.2, %v4513_v30 }
 0xe25   :  { %v4524_v59 = vmax.f32 %v4480_v48, %v4516_v7  ;;  %v4527_v24 = vmax.f32 %v4497_v29, %v4519_v38  ;;  %v4526_v46 = vmax.f32 %v4496_v50, %v4518_v49  ;;  %v4520_v28 = vmul.f32 0.2, %v4512_v54 }
 0xe26   :  { %v4531_v3 = vadd.f32 %v7151_v44, %v4523_v53  ;;  %v4530_v39 = vadd.f32 %v7156_v20, %v4522_v21  ;;  %v4533_v17 = vadd.f32 %v7151_v44, %v4525_v45  ;;  %v4529_v12 = vmax.f32 %v4513_v30, %v4521_v10 }
 0xe27   :  { %v4532_v63 = vadd.f32 %v7156_v20, %v4524_v59  ;;  %v4535_v6 = vadd.f32 %v7151_v44, %v4527_v24  ;;  %v4534_v43 = vadd.f32 %v7156_v20, %v4526_v46  ;;  %v4528_v2 = vmax.f32 %v4512_v54, %v4520_v28 }
 0xe28   :  { %v4541_v8 = vsel %vm3389_vm5, %v4531_v3, -inf  ;;  %v4538_v13 = vsel %vm2714_vm3, %v4530_v39, -inf  ;;  %v4547_v9 = vsel %vm3389_vm5, %v4533_v17, -inf  ;;  %v4537_v40 = vadd.f32 %v7151_v44, %v4529_v12  ;;  %v7497_v12 = vld [vmem:[#allocation8_spill] sm:$0xff] }
 0xe29   :  { %4542 = vmax.xlane.f32.xlu0 %v4541_v8  ;;  %4539 = vmax.xlane.f32.xlu1 %v4538_v13  ;;  %v4544_v0 = vsel %vm2714_vm3, %v4532_v63, -inf  ;;  %v4553_v19 = vsel %vm3389_vm5, %v4535_v6, -inf  ;;  %v4550_v33 = vsel %vm2714_vm3, %v4534_v43, -inf  ;;  %v4536_v52 = vadd.f32 %v7156_v20, %v4528_v2  ;;  %v7495_v13 = vld [vmem:[#allocation9_spill] sm:$0xff] }
 0xe2a   :  { %v4559_v61 = vsel %vm3389_vm5, %v4537_v40, -inf }
 0xe2b   :  { %v4556_v41 = vsel %vm2714_vm3, %v4536_v52, -inf }
 0xe2d   :  { %4548 = vmax.xlane.f32.xlu0 %v4547_v9  ;;  %4545 = vmax.xlane.f32.xlu1 %v4544_v0  ;;  %v7498_v9 = vld [vmem:[#allocation10_spill] sm:$0xff] }
 0xe2e   :  { %v2586_v0 = vadd.f32 %v7498_v9, %v7497_v12 }
 0xe31   :  { %4554 = vmax.xlane.f32.xlu0 %v4553_v19  ;;  %4551 = vmax.xlane.f32.xlu1 %v4550_v33  ;;  %v2624_v19 = vld [vmem:[%s7463_s6 + $0x98] sm:$0xff] }
 0xe32   :  { %6051 = vmatprep.subr.mxu0 %v2624_v19 }
 0xe35   :  { %4560 = vmax.xlane.f32.xlu0 %v4559_v61  ;;  %4557 = vmax.xlane.f32.xlu1 %v4556_v41 }
 0xeb2   :  { %v4543_v18 = vpop.xlane.xlu0 %4542  ;;  %v4540_v16 = vpop.xlane.xlu1 %4539 }
 0xeb3   :  { %v4563_v51 = vsub.f32 %v4531_v3, %v4543_v18  ;;  %v4562_v47 = vsub.f32 %v4530_v39, %v4540_v16 }
 0xeb5   :  { %v4572_v55 = vmul.f32 1.442695, %v4563_v51  ;;  %v4570_v37 = vmul.f32 1.442695, %v4562_v47 }
 0xeb6   :  { %v4549_v57 = vpop.xlane.xlu0 %4548  ;;  %v4546_v26 = vpop.xlane.xlu1 %4545 }
 0xeb7   :  { %6206 = vpow2.f32 %v4572_v55  ;;  %v4565_v44 = vsub.f32 %v4533_v17, %v4549_v57  ;;  %v4564_v42 = vsub.f32 %v4532_v63, %v4546_v26  ;;  %v7496_v17 = vld [vmem:[#allocation11_spill] sm:$0xff] }
 0xeb8   :  { %6208 = vpow2.f32 %v4570_v37  ;;  %v2581_v63 = vadd.f32 %v7496_v17, %v7495_v13 }
 0xeb9   :  { %v4576_v20 = vmul.f32 1.442695, %v4565_v44  ;;  %v4574_v62 = vmul.f32 1.442695, %v4564_v42 }
 0xeba   :  { %v4555_v1 = vpop.xlane.xlu0 %4554  ;;  %v4552_v4 = vpop.xlane.xlu1 %4551 }
 0xebb   :  { %6210 = vpow2.f32 %v4576_v20  ;;  %v4567_v35 = vsub.f32 %v4535_v6, %v4555_v1  ;;  %v4566_v56 = vsub.f32 %v4534_v43, %v4552_v4  ;;  %v5329_v6 = vld [vmem:[%s7459_s2 + $0x143] ss:$0 sm:$0xff] }
 0xebc   :  { %6212 = vpow2.f32 %v4574_v62  ;;  %v7366_v43 = vadd.f32 %v5329_v6, %v2581_v63  ;;  %v7369_v2 = vadd.f32 %v5329_v6, %v2586_v0 }
 0xebd   :  { %v4580_v60 = vmul.f32 1.442695, %v4567_v35  ;;  %v4578_v48 = vmul.f32 1.442695, %v4566_v56  ;;  %v2623_v56 = vld [vmem:[%s7463_s6 + $0x90] sm:$0xff] }
 0xebe   :  { %v4561_v29 = vpop.xlane.xlu0 %4560  ;;  %v4558_v50 = vpop.xlane.xlu1 %4557 }
 0xebf   :  { %6214 = vpow2.f32 %v4580_v60  ;;  %v4569_v5 = vsub.f32 %v4537_v40, %v4561_v29  ;;  %v4568_v23 = vsub.f32 %v4536_v52, %v4558_v50 }
 0xec0   :  { %6216 = vpow2.f32 %v4578_v48 }
 0xec1   :  { %v4584_v11 = vmul.f32 1.442695, %v4569_v5  ;;  %v4582_v15 = vmul.f32 1.442695, %v4568_v23 }
 0xec3   :  { %6218 = vpow2.f32 %v4584_v11 }
 0xec4   :  { %v6207_v30 = vpop.eup %6206  ;;  %6220 = vpow2.f32 %v4582_v15 }
 0xec5   :  { %v6209_v7 = vpop.eup %6208  ;;  %v4589_v38 = vsel %vm3389_vm5, %v6207_v30, 0.0 }
 0xec6   :  { %4590 = vadd.xlane.f32.xlu0 %v4589_v38  ;;  %v4586_v49 = vsel %vm2714_vm3, %v6209_v7, 0.0 }
 0xec7   :  { %4587 = vadd.xlane.f32.xlu1 %v4586_v49 }
 0xec8   :  { %v6211_v54 = vpop.eup %6210 }
 0xec9   :  { %v6213_v53 = vpop.eup %6212  ;;  %v4595_v21 = vsel %vm3389_vm5, %v6211_v54, 0.0 }
 0xeca   :  { %4596 = vadd.xlane.f32.xlu0 %v4595_v21  ;;  %v4592_v45 = vsel %vm2714_vm3, %v6213_v53, 0.0 }
 0xecb   :  { %4593 = vadd.xlane.f32.xlu1 %v4592_v45 }
 0xecc   :  { %v6215_v59 = vpop.eup %6214 }
 0xecd   :  { %v6217_v3 = vpop.eup %6216  ;;  %v4601_v39 = vsel %vm3389_vm5, %v6215_v59, 0.0 }
 0xece   :  { %4602 = vadd.xlane.f32.xlu0 %v4601_v39  ;;  %v4598_v24 = vsel %vm2714_vm3, %v6217_v3, 0.0 }
 0xecf   :  { %4599 = vadd.xlane.f32.xlu1 %v4598_v24 }
 0xed0   :  { %v6219_v46 = vpop.eup %6218 }
 0xed1   :  { %v7354_v10 = vpop.eup %6220  ;;  %v4607_v28 = vsel %vm3389_vm5, %v6219_v46, 0.0 }
 0xed2   :  { %4608 = vadd.xlane.f32.xlu0 %v4607_v28  ;;  %v4604_v8 = vsel %vm2714_vm3, %v7354_v10, 0.0 }
 0xed3   :  { %4605 = vadd.xlane.f32.xlu1 %v4604_v8 }
 0xee4   :  { %5240 = vrot.lane.b32.xlu1 %v7366_v43, %s6274_s24 }
 0xee8   :  { %5242 = vrot.lane.b32.xlu0 %v7369_v2, %s6274_s24 }
 0xf4f   :  { %v4591_v33 = vpop.xlane.xlu0 %4590 }
 0xf50   :  { %6222 = vrcp.f32 %v4591_v33  ;;  %v4588_v40 = vpop.xlane.xlu1 %4587 }
 0xf51   :  { %6224 = vrcp.f32 %v4588_v40 }
 0xf53   :  { %v4597_v52 = vpop.xlane.xlu0 %4596 }
 0xf54   :  { %6226 = vrcp.f32 %v4597_v52  ;;  %v4594_v61 = vpop.xlane.xlu1 %4593 }
 0xf55   :  { %6228 = vrcp.f32 %v4594_v61 }
 0xf57   :  { %v4603_v41 = vpop.xlane.xlu0 %4602 }
 0xf58   :  { %6230 = vrcp.f32 %v4603_v41  ;;  %v4600_v18 = vpop.xlane.xlu1 %4599 }
 0xf59   :  { %6232 = vrcp.f32 %v4600_v18  ;;  %v5404_v18 = vld [vmem:[%s7463_s6 + $0xa3] ss:$0 sm:$0xff] }
 0xf5b   :  { %v4609_v16 = vpop.xlane.xlu0 %4608 }
 0xf5c   :  { %6234 = vrcp.f32 %v4609_v16  ;;  %v4606_v51 = vpop.xlane.xlu1 %4605 }
 0xf5d   :  { %v6223_v47 = vpop.eup %6222  ;;  %6236 = vrcp.f32 %v4606_v51 }
 0xf5e   :  { %v6225_v55 = vpop.eup %6224  ;;  %v4619_v37 = vmul.f32 %v6223_v47, %v6207_v30 }
 0xf5f   :  { %v4618_v57 = vmul.f32 %v6225_v55, %v6209_v7 }
 0xf61   :  { %v6227_v26 = vpop.eup %6226  ;;  %6027 = vmatprep.mubr.msk.f32.mxu1 %vm2714_vm3, %v4618_v57 }
 0xf62   :  { %v6229_v44 = vpop.eup %6228  ;;  %6028 = vmatmul.mubr.msk.f32.vlgmr.msra.gmra.mxu1 %vm2714_vm3, %v4619_v37  ;;  %v4621_v42 = vmul.f32 %v6227_v26, %v6211_v54  ;;  %v5243_v37 = vpop.permute.xlu0 %5242 }
 0xf63   :  { %6031 = vmatpush3.msk.msra.mxu1 %vm2721_vm4, %v7310_v58  ;;  %v4620_v20 = vmul.f32 %v6229_v44, %v6213_v53  ;;  %v2622_v58 = vld [vmem:[%s7463_s6 + $0x88] sm:$0xff] }
 0xf64   :  { %6032 = vmatprep.subr.mxu1 %v7314_v22 }
 0xf65   :  { %v6231_v62 = vpop.eup %6230  ;;  %6033 = vmatpush3.msra.mxu1 %v7314_v22  ;;  %6034 = vmatprep.mubr.msk.f32.mxu1 %vm2714_vm3, %v4620_v20 }
 0xf66   :  { %v6233_v1 = vpop.eup %6232  ;;  %6044 = vmatprep.subr.msk.mxu1 %vm2721_vm4, %v7316_v31  ;;  %6035 = vmatmul.mubr.msk.f32.vlgmr.msra.gmra.mxu1 %vm2714_vm3, %v4621_v42  ;;  %v4623_v4 = vmul.f32 %v6231_v62, %v6215_v59 }
 0xf67   :  { %6045 = vmatpush3.msk.msra.mxu1 %vm2721_vm4, %v7316_v31  ;;  %v4622_v35 = vmul.f32 %v6233_v1, %v6217_v3 }
 0xf68   :  { %6046 = vmatprep.subr.mxu1 %v7318_v14 }
 0xf69   :  { %v6235_v22 = vpop.eup %6234  ;;  %6047 = vmatpush3.msra.mxu1 %v7318_v14  ;;  %6041 = vmatprep.mubr.msk.f32.mxu0 %vm2714_vm3, %v4622_v35  ;;  %v2621_v14 = vld [vmem:[%s7463_s6 + $0x80] sm:$0xff] }
 0xf6a   :  { %v6237_v60 = vpop.eup %6236  ;;  %6042 = vmatmul.mubr.msk.f32.vlgmr.msra.gmra.mxu0 %vm2714_vm3, %v4623_v4  ;;  %v4625_v31 = vmul.f32 %v6235_v22, %v6219_v46  ;;  %6058 = vmatprep.subr.mxu1 %v2622_v58  ;;  %v5371_v46 = vld [vmem:[%s7463_s6 + $0xa1] ss:$0 sm:$0xff] }
 0xf6b   :  { %6052 = vmatpush3.msra.mxu0 %v2624_v19  ;;  %v4624_v48 = vmul.f32 %v6237_v60, %v7354_v10  ;;  %v4000_v13 = vadd.f32 %v7306_v32, %v5371_v46  ;;  %v3995_v6 = vadd.f32 %v5371_v46, %v7308_v34 }
 0xf6c   :  { %6053 = vmatprep.subr.mxu0 %v2623_v56 }
 0xf6d   :  { %6054 = vmatpush3.msra.mxu0 %v2623_v56  ;;  %6048 = vmatprep.mubr.msk.f32.mxu1 %vm2714_vm3, %v4624_v48 }
 0xf6e   :  { %6065 = vmatprep.subr.msk.mxu0 %vm5148_vm7, %v7369_v2  ;;  %6049 = vmatmul.mubr.msk.f32.vlgmr.msra.gmra.mxu1 %vm2714_vm3, %v4625_v31 }
 0xf6f   :  { %6059 = vmatpush3.msra.mxu1 %v2622_v58  ;;  %6062 = vmatprep.mubr.msk.f32.mxu1 %vm194_vm1, %v7235_v27 }
 0xf70   :  { %6060 = vmatprep.subr.mxu1 %v2621_v14 }
 0xf71   :  { %6061 = vmatpush3.msra.mxu1 %v2621_v14 }
 0xf72   :  { %6063 = vmatmul.mubr.msk.f32.vlgmr.msra.gmra.mxu1 %vm194_vm1, %v7237_v36 }
0x1022   :  { %v6029_v29 = vpop.f32.mrf.mxu1 }
0x1023   :  { %v4969_v30 = vsel %vm3818_vm6, %v6029_v29, 0.0 }
0x1024   :  { %v4701_v50 = vpop.f32.mrf.mxu1 }
0x1025   :  { %v4962_v54 = vsel %vm194_vm1, %v4701_v50, 0.0 }
0x1026   :  { %v6036_v5 = vpop.f32.mrf.mxu1 }
0x1027   :  { %v4970_v11 = vsel %vm3818_vm6, %v6036_v5, 0.0 }
0x1028   :  { %v4785_v23 = vpop.f32.mrf.mxu1  ;;  %v4971_v49 = vadd.f32 %v4970_v11, %v4969_v30 }
0x1029   :  { %v4963_v7 = vsel %vm194_vm1, %v4785_v23, 0.0 }
0x102a   :  { %v6043_v15 = vpop.f32.mrf.mxu0  ;;  %v4964_v36 = vadd.f32 %v4963_v7, %v4962_v54 }
0x102b   :  { %v4972_v38 = vsel %vm3818_vm6, %v6043_v15, 0.0 }
0x102c   :  { %v4869_v27 = vpop.f32.mrf.mxu0  ;;  %v4973_v21 = vadd.f32 %v4972_v38, %v4971_v49 }
0x102d   :  { %v4965_v53 = vsel %vm194_vm1, %v4869_v27, 0.0 }
0x102e   :  { %v6050_v45 = vpop.f32.mrf.mxu1  ;;  %v4966_v3 = vadd.f32 %v4965_v53, %v4964_v36 }
0x102f   :  { %v4974_v59 = vsel %vm3818_vm6, %v6050_v45, 0.0 }
0x1030   :  { %v4975_v39 = vadd.f32 %v4974_v59, %v4973_v21  ;;  %v4953_v24 = vpop.f32.mrf.mxu1 }
0x1031   :  { %v4967_v10 = vsel %vm194_vm1, %v4953_v24, 0.0 }
0x1032   :  { %v4977_v28 = vmul.f32 0.25, %v4975_v39  ;;  %v4968_v8 = vadd.f32 %v4967_v10, %v4966_v3  ;;  %v6064_v32 = vpop.f32.mrf.mxu1 }
0x1034   :  { %v4979_v17 = vadd.f32 %v7228_v25, %v4977_v28  ;;  %v4976_v63 = vmul.f32 0.25, %v4968_v8  ;;  %v5133_v34 = vpop.f32.mrf.mxu1 }
0x1036   :  { %v4981_v12 = vadd.f32 %v4979_v17, %v4000_v13  ;;  %v4978_v9 = vadd.f32 %v7228_v25, %v4976_v63 }
0x1038   :  { %v4980_v0 = vadd.f32 %v4978_v9, %v3995_v6  ;;  %v4983_v19 = vmul.f32 0.5, %v4981_v12 }
0x103a   :  { %v4982_v33 = vmul.f32 0.5, %v4980_v0  ;;  %v4985_v52 = vmax.f32 %v4983_v19, 0.0 }
0x103c   :  { %v4984_v40 = vmax.f32 %v4982_v33, 0.0 }
0x103e   :  { %6055 = vmatprep.mubr.msk.f32.mxu0 %vm194_vm1, %v4984_v40 }
0x103f   :  { %6056 = vmatmul.mubr.msk.f32.vlgmr.msra.gmra.mxu0 %vm194_vm1, %v4985_v52 }
0x1040   :  { %6066 = vmatpush3.xpose.msk.msra.mxu0 %vm5148_vm7, %v7369_v2 }
0x1041   :  { %6067 = vmatprep.subr.msk.mxu0 %vm5148_vm7, %v7366_v43 }
0x1044   :  { %6068 = vmatpush3.xpose.msk.msra.mxu0 %vm5148_vm7, %v7366_v43  ;;  %v5241_v43 = vpop.permute.xlu1 %5240 }
0x10ff   :  { %v6057_v25 = vpop.f32.mrf.mxu0 }
0x1100   :  { %v5139_v61 = vadd.f32 %v6064_v32, %v6057_v25 }
0x1101   :  { %v5058_v41 = vpop.f32.mrf.mxu0 }
0x1102   :  { %v5134_v16 = vadd.f32 %v5133_v34, %v5058_v41  ;;  %v5147_v47 = vadd.f32 %v5404_v18, %v5139_v61 }
0x1104   :  { %v5146_v51 = vadd.f32 %v5404_v18, %v5134_v16 }
0x1106   :  { %6069 = vmatprep.mubr.msk.f32.mxu0 %vm5148_vm7, %v5146_v51  ;;  %5249 = vrot.lane.b32.xlu1 %v5146_v51, %s6275_s13 }
0x1107   :  { %6070 = vmatmul.mubr.msk.f32.vlgmr.msra.gmra.mxu0 %vm5148_vm7, %v5147_v47 }
0x110a   :  { %5251 = vrot.lane.b32.xlu1 %v5147_v47, %s6275_s13 }
0x1178   :  { %v5250_v2 = vpop.permute.xlu1 %5249 }
0x117c   :  { %v5252_v57 = vpop.permute.xlu1 %5251 }
0x11c7   :  { %v6071_v55 = vpop.f32.mrf.mxu0 }
0x11c8   :  { %5239 = vst.msk [vmem:[%s7465_s8 + $0x8] sm:$0xf] %vm3818_vm6, %v6071_v55 }
0x11c9   :  { %5248 = vst.msk [vmem:[%s7465_s8 + $0x8] sm:$0xff] %vm5246_vm8, %v5243_v37  ;;  %v5227_v26 = vpop.f32.mrf.mxu0 }
0x11ca   :  { %5258 = vst.msk [vmem:[%s7465_s8 + $0x8] sm:$0xf] %vm5257_vm9, %v5252_v57 }
0x11cb   :  { %5238 = vst.msk [vmem:[%s7465_s8] sm:$0xff] %vm194_vm1, %v5227_v26 }
0x11cc   :  { %5247 = vst.msk [vmem:[%s7465_s8] sm:$0xff] %vm5246_vm8, %v5241_v43 }
0x11cd   :  { %5256 = vst.msk [vmem:[%s7465_s8] sm:$0xff] %vm5255_vm10, %v5250_v2 }
0x11ce   :  { %5263 = vsyncpa [#allocation3], 1 }
0x11cf   :  { %5264 = vsyncpa [#allocation5], 1 }

</bundles_post_ra>
